<compile_context>
chip_gen: v7x
topology: tpu7x:2x2x1
jax: 0.10.0
libtpu: 0.0.40
codegen_flags: <defaults>
</compile_context>

<pallas_src>
import math
import numpy as np
from numpy.fft import ifft2, ifftshift

import jax
import jax.numpy as jnp
from jax import lax
from jax.experimental import pallas as pl
from jax.experimental.pallas import tpu as pltpu

NSCALE = 4
NORIENT = 4

# bf16 MXU operands for the (dominant) inverse-DFT path; forward DFT stays f32.
# All VPU elementwise math stays f32 (v5e has no bf16 VPU path).
IFFT_DTYPE = jnp.bfloat16

DX = np.array([[3, 0, -3], [10, 0, -10], [3, 0, -3]], dtype=np.float32) / 16.0
DY = np.array([[3, 10, 3], [0, 0, 0], [-3, -10, -3]], dtype=np.float32) / 16.0


# ----------------------------------------------------------------------------------
# Host-side (numpy) construction of the fixed log-Gabor filter bank, DFT matrix and
# fused complex inverse-DFT operand blocks.
# ----------------------------------------------------------------------------------
def filtergrid(rows, cols):
    u1, u2 = np.meshgrid(
        np.linspace(-0.5, 0.5, cols, endpoint=bool(cols % 2)),
        np.linspace(-0.5, 0.5, rows, endpoint=bool(rows % 2)),
        sparse=True,
    )
    u1 = ifftshift(u1)
    u2 = ifftshift(u2)
    radius = np.sqrt(u1 * u1 + u2 * u2)
    return radius, u1, u2


def lowpassfilter(size, cutoff, n):
    rows, cols = size
    if cols % 2:
        xvals = np.arange(-(cols - 1) / 2.0, (cols - 1) / 2.0 + 1) / float(cols - 1)
    else:
        xvals = np.arange(-cols / 2.0, cols / 2.0) / float(cols)
    if rows % 2:
        yvals = np.arange(-(rows - 1) / 2.0, (rows - 1) / 2.0 + 1) / float(rows - 1)
    else:
        yvals = np.arange(-rows / 2.0, rows / 2.0) / float(rows)
    x, y = np.meshgrid(xvals, yvals, sparse=True)
    radius = np.sqrt(x * x + y * y)
    return ifftshift(1.0 / (1.0 + (radius / cutoff) ** (2.0 * n)))


def _phasecong_constants(rows, cols):
    assert rows == cols, "kernel uses a single (N,N) DFT matrix for both axes"
    minWaveLength, mult, sigmaOnf = 6, 2, 0.55
    dThetaOnSigma = 1.2
    thetaSigma = np.pi / NORIENT / dThetaOnSigma

    lp = lowpassfilter((rows, cols), 0.45, 15)
    radius, _, _ = filtergrid(rows, cols)
    radius[0, 0] = 1.0
    logGaborDenom = 2.0 * np.log(sigmaOnf) ** 2.0
    logGaborList = []
    for s in range(NSCALE):
        wavelength = minWaveLength * mult ** s
        fo = 1.0 / wavelength
        logRadOverFo = np.log(radius / fo)
        logGabor = np.exp(-(logRadOverFo * logRadOverFo) / logGaborDenom)
        logGabor = logGabor * lp
        logGabor[0, 0] = 0.0
        logGaborList.append(logGabor)

    cy = np.floor(rows / 2)
    cx = np.floor(cols / 2)
    y, x = np.mgrid[0:rows, 0:cols]
    y = (y - cy) / rows
    x = (x - cx) / cols
    theta = ifftshift(np.arctan2(-y, x))
    sintheta = np.sin(theta)
    costheta = np.cos(theta)
    spreadList = []
    for o in range(NORIENT):
        angl = o * np.pi / NORIENT
        ds = sintheta * math.cos(angl) - costheta * math.sin(angl)
        dc = costheta * math.cos(angl) + sintheta * math.sin(angl)
        dtheta = np.abs(np.arctan2(ds, dc))
        spreadList.append(np.exp(-dtheta ** 2 / (2.0 * thetaSigma ** 2)))

    filt = np.zeros((NORIENT, NSCALE, rows, cols), np.float32)
    EM_n = np.zeros((NORIENT,), np.float32)
    sumEstSumAn2 = np.zeros((NORIENT,), np.float32)
    sumEstSumAiAj = np.zeros((NORIENT,), np.float32)
    for o in range(NORIENT):
        ifftFilts = []
        for s in range(NSCALE):
            f = logGaborList[s] * spreadList[o]
            filt[o, s] = f.astype(np.float32)
            ifftFilts.append((np.real(ifft2(f)) * math.sqrt(rows * cols)).astype(np.float32))
        EM_n[o] = np.sum(filt[o, 0] ** 2)
        est_an2 = np.zeros((rows, cols), np.float32)
        for s in range(NSCALE):
            est_an2 += ifftFilts[s] ** 2
        est_aiaj = np.zeros((rows, cols), np.float32)
        for si in range(NSCALE - 1):
            for sj in range(si + 1, NSCALE):
                est_aiaj += ifftFilts[si] * ifftFilts[sj]
        sumEstSumAn2[o] = np.sum(est_an2)
        sumEstSumAiAj[o] = np.sum(est_aiaj)

    # Forward DFT matrix (N x N) split into real / imag planes, plus the fused complex
    # inverse-DFT operand blocks (G = conj(F)/N):
    #   GL = [[Gr,-Gi],[Gi,Gr]]  (left  multiply:  GL @ [Yr;Yi]  -> [Ar;Ai])
    #   GR = [[Gr, Gi],[-Gi,Gr]] (right multiply: [Ar|Ai] @ GR -> [Er|Ei])
    n = np.arange(rows)
    Wm = np.exp(-2j * np.pi * np.outer(n, n) / rows)
    Fr = Wm.real.astype(np.float32)
    Fi = Wm.imag.astype(np.float32)
    Gr = (Fr / rows).astype(np.float32)
    Gi = (-Fi / rows).astype(np.float32)
    GL = np.block([[Gr, -Gi], [Gi, Gr]]).astype(np.float32)
    GR = np.block([[Gr, Gi], [-Gi, Gr]]).astype(np.float32)
    return filt, EM_n, sumEstSumAn2, sumEstSumAiAj, Fr, Fi, GL, GR


# ----------------------------------------------------------------------------------
# Kernel 1: phase congruency spectral pipeline (FFT2, filter bank, fused bf16 IFFT2,
# orientation energy).  Grid = (num_images, NORIENT).
# ----------------------------------------------------------------------------------
def _phasecong_kernel(im_ref, fr_ref, fi_ref, gl_ref, gr_ref, filt_ref,
                      energy_ref, suman_ref, eo0_ref,
                      x_sc, y_sc, aa_sc, b_sc, ee_sc):
    o = pl.program_id(1)
    H, W = im_ref.shape

    def mm(a, b):
        return jnp.dot(a, b, preferred_element_type=jnp.float32)

    # ---- Forward 2-D DFT, once per image, cached in VMEM for all 4 orientations ----
    # Kept in f32 (review fallback for tolerance); amortised over the orientation axis.
    @pl.when(o == 0)
    def _():
        im = im_ref[...]
        Fr = fr_ref[...]
        Fi = fi_ref[...]
        Tr = mm(Fr, im)
        Ti = mm(Fi, im)
        x_sc[:, :W] = mm(Tr, Fr) - mm(Ti, Fi)      # Xr
        x_sc[:, W:] = mm(Tr, Fi) + mm(Ti, Fr)      # Xi
        suman_ref[...] = jnp.zeros_like(suman_ref)  # orientation-summed An accumulator

    xr = x_sc[:, :W]
    xi = x_sc[:, W:]

    # ---- Filtered spectra for this orientation, all scales stacked as [Yr ; Yi] ----
    # (bf16 staging: halves VMEM + feeds the native-rate bf16 MXU path).
    for s in range(NSCALE):
        f = filt_ref[o * NSCALE + s].astype(jnp.float32)
        y_sc[:H, s * W:(s + 1) * W] = (f * xr).astype(IFFT_DTYPE)
        y_sc[H:, s * W:(s + 1) * W] = (f * xi).astype(IFFT_DTYPE)

    # ---- Fused left IFFT: ONE bf16 matmul, M=2H, K=2H, N=NSCALE*W (f32 accumulate) ----
    aa_sc[...] = mm(gl_ref[...], y_sc[...]).astype(IFFT_DTYPE)   # [Ar_cat ; Ai_cat]

    # ---- Per-scale fused right IFFT (K=2H) + online orientation energy ----
    sumE = jnp.zeros((H, W), jnp.float32)
    sumO = jnp.zeros((H, W), jnp.float32)
    gr_blk = gr_ref[...]
    for s in range(NSCALE):
        # restage [ar | ai] side-by-side (tiny VMEM copy vs. the 4*H^3 MAC matmul)
        b_sc[:, :W] = aa_sc[:H, s * W:(s + 1) * W]
        b_sc[:, W:] = aa_sc[H:, s * W:(s + 1) * W]
        ee = mm(b_sc[...], gr_blk)                  # (H, 2W) f32 = [Er | Ei]
        ee_sc[s] = ee.astype(IFFT_DTYPE)            # kept for the 2nd (energy) pass
        er = ee[:, :W]
        ei = ee[:, W:]
        suman_ref[...] = suman_ref[...] + jnp.sqrt(er * er + ei * ei + 1e-12)
        sumE = sumE + er
        sumO = sumO + ei
        if s == 0:
            eo0_ref[...] = er * er + ei * ei + 1e-12   # |EO_s0|^2 for the noise median

    xen = jnp.sqrt(sumE * sumE + sumO * sumO + 1e-12) + 1e-4
    meanE = sumE / xen
    meanO = sumO / xen
    # Accumulate orientation energy directly into the output block (bounds the number
    # of live compiler-managed whole-plane temporaries; only sumE/sumO/meanE/meanO
    # remain as values).
    for s in range(NSCALE):
        ee = ee_sc[s].astype(jnp.float32)
        er = ee[:, :W]
        ei = ee[:, W:]
        contrib = er * meanE + ei * meanO - jnp.abs(er * meanO - ei * meanE)
        if s == 0:
            energy_ref[...] = contrib
        else:
            energy_ref[...] = energy_ref[...] + contrib


def phasecong_pallas(imgs, Fr, Fi, GL, GR, filt_flat):
    NB, H, W = imgs.shape
    return pl.pallas_call(
        _phasecong_kernel,
        grid=(NB, NORIENT),
        in_specs=[
            pl.BlockSpec((None, H, W), lambda b, o: (b, 0, 0)),
            pl.BlockSpec((H, H), lambda b, o: (0, 0)),                 # Fr (f32, resident)
            pl.BlockSpec((H, H), lambda b, o: (0, 0)),                 # Fi
            pl.BlockSpec((2 * H, 2 * H), lambda b, o: (0, 0)),         # GL (bf16, resident)
            pl.BlockSpec((2 * H, 2 * H), lambda b, o: (0, 0)),         # GR (bf16, resident)
            pl.BlockSpec((NORIENT * NSCALE, H, W), lambda b, o: (0, 0, 0)),  # filter bank
        ],
        out_specs=[
            pl.BlockSpec((None, None, H, W), lambda b, o: (b, o, 0, 0)),
            pl.BlockSpec((None, H, W), lambda b, o: (b, 0, 0)),
            pl.BlockSpec((None, None, H, W), lambda b, o: (b, o, 0, 0)),
        ],
        out_shape=[
            jax.ShapeDtypeStruct((NB, NORIENT, H, W), jnp.float32),   # pre-threshold energy
            jax.ShapeDtypeStruct((NB, H, W), jnp.float32),            # sumAn over orientations
            jax.ShapeDtypeStruct((NB, NORIENT, H, W), jnp.float32),   # |EO_s0|^2
        ],
        scratch_shapes=[
            pltpu.VMEM((H, 2 * W), jnp.float32),              # [Xr | Xi] (cached per image)
            pltpu.VMEM((2 * H, NSCALE * W), IFFT_DTYPE),      # [Yr ; Yi], all scales
            pltpu.VMEM((2 * H, NSCALE * W), IFFT_DTYPE),      # [Ar ; Ai], all scales
            pltpu.VMEM((H, 2 * W), IFFT_DTYPE),               # per-scale [ar | ai] staging
            pltpu.VMEM((NSCALE, H, 2 * W), IFFT_DTYPE),       # per-scale [Er | Ei]
        ],
        compiler_params=pltpu.CompilerParams(
            dimension_semantics=("parallel", "arbitrary"),
            # Raised above the default scoped limit (v5e default 16 MiB); with the bf16
            # scratch/fused-G trimming the H=512 working set fits v7x's 64 MiB physical.
            vmem_limit_bytes=64 * 1024 * 1024,
        ),
    )(imgs, Fr, Fi, GL, GR, filt_flat)


# ----------------------------------------------------------------------------------
# Kernel 2: fused threshold/orientation-sum, YIQ, 3x3 gradients (XLU rolls), FSIM
# similarity maps and per-image reductions.  Grid = (B,), one image pair per step.
# ----------------------------------------------------------------------------------
def _fsim_kernel(t1_ref, t2_ref, en1_ref, en2_ref, an1_ref, an2_ref,
                 rgb1_ref, rgb2_ref, out_ref):
    bi = pl.program_id(0)
    _, H, W = en1_ref.shape
    T1c, T2c, T3c, T4c = 0.85, 160.0, 200.0, 200.0

    # ---- fused relu(Energy - T) + orientation sum (T read from the SMEM table) ----
    en1 = jnp.zeros((H, W), jnp.float32)
    en2 = jnp.zeros((H, W), jnp.float32)
    for o in range(NORIENT):
        en1 = en1 + jnp.maximum(en1_ref[o] - t1_ref[bi, o], 0.0)
        en2 = en2 + jnp.maximum(en2_ref[o] - t2_ref[bi, o], 0.0)
    # Exact divides (no approximate reciprocal) for parity with the reference.
    pc1 = en1 / an1_ref[...]
    pc2 = en2 / an2_ref[...]

    # ---- fused YIQ transform (the x255 input scaling is folded into coefficients) ----
    rr1, gg1, bb1 = rgb1_ref[0], rgb1_ref[1], rgb1_ref[2]
    rr2, gg2, bb2 = rgb2_ref[0], rgb2_ref[1], rgb2_ref[2]
    Y1 = 255.0 * (0.299 * rr1 + 0.587 * gg1 + 0.114 * bb1)
    Y2 = 255.0 * (0.299 * rr2 + 0.587 * gg2 + 0.114 * bb2)
    I1 = 255.0 * (0.596 * rr1 - 0.274 * gg1 - 0.322 * bb1)
    I2 = 255.0 * (0.596 * rr2 - 0.274 * gg2 - 0.322 * bb2)
    Q1 = 255.0 * (0.211 * rr1 - 0.523 * gg1 + 0.312 * bb1)
    Q2 = 255.0 * (0.211 * rr2 - 0.523 * gg2 + 0.312 * bb2)

    rowi = lax.broadcasted_iota(jnp.int32, (H, W), 0)
    coli = lax.broadcasted_iota(jnp.int32, (H, W), 1)

    def grads(yv):
        # zero-padded 3x3 cross-correlation (== F.conv2d(padding=1)) via XLU rolls +
        # edge masks; no padded copy.
        ix = jnp.zeros((H, W), jnp.float32)
        iy = jnp.zeros((H, W), jnp.float32)
        for di in (-1, 0, 1):
            ry = yv if di == 0 else pltpu.roll(yv, shift=(-di) % H, axis=0)
            for dj in (-1, 0, 1):
                wx = float(DX[di + 1, dj + 1])
                wy = float(DY[di + 1, dj + 1])
                if wx == 0.0 and wy == 0.0:
                    continue
                sh = ry if dj == 0 else pltpu.roll(ry, shift=(-dj) % W, axis=1)
                conds = []
                if di == 1:
                    conds.append(rowi < H - 1)
                elif di == -1:
                    conds.append(rowi > 0)
                if dj == 1:
                    conds.append(coli < W - 1)
                elif dj == -1:
                    conds.append(coli > 0)
                if conds:
                    m = conds[0]
                    for c in conds[1:]:
                        m = m & c
                    sh = jnp.where(m, sh, 0.0)
                if wx != 0.0:
                    ix = ix + wx * sh
                if wy != 0.0:
                    iy = iy + wy * sh
        return ix, iy

    ix1, iy1 = grads(Y1)
    ix2, iy2 = grads(Y2)
    gm1 = jnp.sqrt(ix1 * ix1 + iy1 * iy1 + 1e-12)
    gm2 = jnp.sqrt(ix2 * ix2 + iy2 * iy2 + 1e-12)

    pcsim = (2.0 * pc1 * pc2 + T1c) / (pc1 * pc1 + pc2 * pc2 + T1c)
    gsim = (2.0 * gm1 * gm2 + T2c) / (gm1 * gm1 + gm2 * gm2 + T2c)
    pcm = jnp.maximum(pc1, pc2)
    isim = (2.0 * I1 * I2 + T3c) / (I1 * I1 + I2 * I2 + T3c)
    qsim = (2.0 * Q1 * Q2 + T4c) / (Q1 * Q1 + Q2 * Q2 + T4c)
    chroma = jnp.exp(0.03 * jnp.log(jnp.abs(isim * qsim) + 1e-12))   # (|.|+eps)**0.03
    # torch.sign(gradientSimMatrix) == +1 everywhere (num/den strictly positive).
    simc = gsim * pcsim * pcm * chroma

    ssum = jnp.sum(simc)
    psum = jnp.sum(pcm)
    rid = lax.broadcasted_iota(jnp.int32, (2, 128), 0)
    out_ref[...] = jnp.where(rid == 0, ssum, psum).astype(jnp.float32)


def fsim_final_pallas(T1, T2, energy, suman, rgb_ref, rgb_dis):
    B = rgb_ref.shape[0]
    _, NO, H, W = energy.shape

    def blk4(off):
        return pl.BlockSpec((None, NO, H, W), lambda b: (b + off, 0, 0, 0))

    def blk3(off):
        return pl.BlockSpec((None, H, W), lambda b: (b + off, 0, 0))

    smem = pl.BlockSpec(memory_space=pltpu.MemorySpace.SMEM)
    rgb_spec = pl.BlockSpec((None, 3, H, W), lambda b: (b, 0, 0, 0))

    out = pl.pallas_call(
        _fsim_kernel,
        grid=(B,),
        in_specs=[smem, smem,
                  blk4(0), blk4(B),
                  blk3(0), blk3(B),
                  rgb_spec, rgb_spec],
        out_specs=pl.BlockSpec((None, 2, 128), lambda b: (b, 0, 0)),
        out_shape=jax.ShapeDtypeStruct((B, 2, 128), jnp.float32),
        compiler_params=pltpu.CompilerParams(
            dimension_semantics=("parallel",),
            vmem_limit_bytes=64 * 1024 * 1024,
        ),
    )(T1, T2, energy, energy, suman, suman, rgb_ref, rgb_dis)
    return out[:, :, 0]   # (B, 2): [sum(SimMatrixC), sum(PCm)]


# ----------------------------------------------------------------------------------
# Plain-JAX glue: luminance, noise threshold (median), final score.
# ----------------------------------------------------------------------------------
def _noise_threshold(eo0, EM_n, sA2, sAA):
    # eo0: (NB, 4, H, W) -> T: (NB, 4)
    # TODO(synk): torch.median (lower-middle element of a full sort) kept as an XLA-side
    # sort; an in-kernel bit-bisection count-select median (perf-review suggestion) would
    # remove this HBM round trip but is left out for robustness.
    NB, NO, H, W = eo0.shape
    flat = eo0.reshape(NB, NO, H * W)
    med = jnp.sort(flat, axis=-1)[..., (H * W - 1) // 2]
    meanE2n = med / (-math.log(0.5))
    noisePower = meanE2n / EM_n[None, :]
    est_noise_e2 = 2.0 * noisePower * sA2[None, :] + 4.0 * noisePower * sAA[None, :]
    tau = jnp.sqrt(est_noise_e2 / 2.0 + 1e-12)
    sigma = jnp.sqrt((2.0 - math.pi / 2.0) * tau * tau + 1e-12)
    T = tau * math.sqrt(math.pi / 2.0) + 2.0 * sigma     # k = 2.0
    return T / 1.7


def fsim_loss(y, x):
    """Equivalent of FSIM(channels=3, as_loss=True).forward(y, x)."""
    ref = x.astype(jnp.float32)   # imageRef
    dis = y.astype(jnp.float32)   # imageDis
    B, C, H, W = ref.shape
    assert C == 3 and H == W
    # TODO(synk): `downsample` is undefined in the reference; the standard FSIM factor
    # max(1, round(min(H, W)/256)) == 1 for these shapes -> identity.
    assert max(1, int(round(min(H, W) / 256.0))) == 1

    (filt, EM_n, sA2, sAA, Fr, Fi, GL, GR) = _phasecong_constants(H, W)
    filt_flat = jnp.asarray(filt.reshape(NORIENT * NSCALE, H, W), dtype=IFFT_DTYPE)
    Fr = jnp.asarray(Fr)
    Fi = jnp.asarray(Fi)
    GLb = jnp.asarray(GL, dtype=IFFT_DTYPE)
    GRb = jnp.asarray(GR, dtype=IFFT_DTYPE)
    EM_n, sA2, sAA = map(jnp.asarray, (EM_n, sA2, sAA))

    # Luminance (x255 scale) is the only plane kernel 1 needs; I/Q and the gradient-Y
    # are recomputed from raw RGB inside kernel 2 (fused YIQ, no I/Q HBM materialization).
    def lum(img):
        return 255.0 * (0.299 * img[:, 0] + 0.587 * img[:, 1] + 0.114 * img[:, 2])

    Y1 = lum(ref)
    Y2 = lum(dis)
    imgs = jnp.concatenate([Y1, Y2], axis=0)                     # (2B, H, W): ref then dis

    energy, suman, eo0 = phasecong_pallas(imgs, Fr, Fi, GLb, GRb, filt_flat)
    T = _noise_threshold(eo0, EM_n, sA2, sAA)                    # (2B, NORIENT)

    sums = fsim_final_pallas(T[:B], T[B:], energy, suman, ref, dis)   # (B, 2)
    score = sums[:, 0] / sums[:, 1]                              # per-image FSIMc
    return 1.0 - jnp.mean(score)


if __name__ == "__main__":
    key = jax.random.PRNGKey(0)
    k1, k2 = jax.random.split(key)
    B, C, H, W = 2, 3, 16, 16
    x = jax.random.uniform(k1, (B, C, H, W), dtype=jnp.float32)
    y = jax.random.uniform(k2, (B, C, H, W), dtype=jnp.float32)
    loss = jax.jit(fsim_loss)(y, x)
    jax.block_until_ready(loss)
    print("KERNEL_OK")
</pallas_src>

<mosaic_0001>
module attributes {stable_mosaic.version = 11 : i64} {
  func.func @_phasecong_kernel(%arg0: i32, %arg1: i32, %arg2: memref<1x16x16xf32, #tpu.memory_space<vmem>>, %arg3: memref<16x16xf32, #tpu.memory_space<vmem>>, %arg4: memref<16x16xf32, #tpu.memory_space<vmem>>, %arg5: memref<32x32xbf16, #tpu.memory_space<vmem>>, %arg6: memref<32x32xbf16, #tpu.memory_space<vmem>>, %arg7: memref<16x16x16xbf16, #tpu.memory_space<vmem>>, %arg8: memref<1x1x16x16xf32, #tpu.memory_space<vmem>>, %arg9: memref<1x16x16xf32, #tpu.memory_space<vmem>>, %arg10: memref<1x1x16x16xf32, #tpu.memory_space<vmem>>, %arg11: memref<16x32xf32, #tpu.memory_space<vmem>>, %arg12: memref<32x64xbf16, #tpu.memory_space<vmem>>, %arg13: memref<32x64xbf16, #tpu.memory_space<vmem>>, %arg14: memref<16x32xbf16, #tpu.memory_space<vmem>>, %arg15: memref<4x16x32xbf16, #tpu.memory_space<vmem>>) attributes {dimension_semantics = [#tpu.dimension_semantics<parallel>, #tpu.dimension_semantics<arbitrary>], iteration_bounds = array<i64: 4, 4>, scalar_prefetch = 0 : i64, scratch_operands = 5 : i64, tpu.core_type = #tpu.core_type<tc>, window_params = [{transform_indices = @transform_0, window_bounds = array<i64: 1, 16, 16>}, {pipeline_mode = #tpu.pipeline_mode<synchronous>, transform_indices = @transform_1, window_bounds = array<i64: 16, 16>}, {pipeline_mode = #tpu.pipeline_mode<synchronous>, transform_indices = @transform_2, window_bounds = array<i64: 16, 16>}, {pipeline_mode = #tpu.pipeline_mode<synchronous>, transform_indices = @transform_3, window_bounds = array<i64: 32, 32>}, {pipeline_mode = #tpu.pipeline_mode<synchronous>, transform_indices = @transform_4, window_bounds = array<i64: 32, 32>}, {pipeline_mode = #tpu.pipeline_mode<synchronous>, transform_indices = @transform_5, window_bounds = array<i64: 16, 16, 16>}, {transform_indices = @transform_6, window_bounds = array<i64: 1, 1, 16, 16>}, {transform_indices = @transform_7, window_bounds = array<i64: 1, 16, 16>}, {transform_indices = @transform_8, window_bounds = array<i64: 1, 1, 16, 16>}]} {
    %c0_i32 = arith.constant 0 : i32
    %0 = arith.cmpi eq, %arg1, %c0_i32 : i32
    %1 = arith.extui %0 : i1 to i32
    %c0_i32_0 = arith.constant 0 : i32
    %2 = arith.cmpi ne, %1, %c0_i32_0 : i32
    scf.if %2 {
      %c0_167 = arith.constant 0 : index
      %c0_168 = arith.constant 0 : index
      %c0_169 = arith.constant 0 : index
      %256 = vector.load %arg2[%c0_167, %c0_168, %c0_169] : memref<1x16x16xf32, #tpu.memory_space<vmem>>, vector<1x16x16xf32>
      %257 = vector.shape_cast %256 : vector<1x16x16xf32> to vector<16x16xf32>
      %c0_170 = arith.constant 0 : index
      %c0_171 = arith.constant 0 : index
      %258 = vector.load %arg3[%c0_170, %c0_171] : memref<16x16xf32, #tpu.memory_space<vmem>>, vector<16x16xf32>
      %c0_172 = arith.constant 0 : index
      %c0_173 = arith.constant 0 : index
      %259 = vector.load %arg4[%c0_172, %c0_173] : memref<16x16xf32, #tpu.memory_space<vmem>>, vector<16x16xf32>
      %cst_174 = arith.constant dense<0.000000e+00> : vector<16x16xf32>
      %260 = tpu.matmul %258, %257, %cst_174 {dimension_numbers = #tpu.dot_dimension_numbers<[1], [0], [0], [1], [0, 0, 1, 1], [], []>} : vector<16x16xf32>, vector<16x16xf32>, vector<16x16xf32> -> vector<16x16xf32>
      %cst_175 = arith.constant dense<0.000000e+00> : vector<16x16xf32>
      %261 = tpu.matmul %259, %257, %cst_175 {dimension_numbers = #tpu.dot_dimension_numbers<[1], [0], [0], [1], [0, 0, 1, 1], [], []>} : vector<16x16xf32>, vector<16x16xf32>, vector<16x16xf32> -> vector<16x16xf32>
      %cst_176 = arith.constant dense<0.000000e+00> : vector<16x16xf32>
      %262 = tpu.matmul %260, %258, %cst_176 {dimension_numbers = #tpu.dot_dimension_numbers<[1], [0], [0], [1], [0, 0, 1, 1], [], []>} : vector<16x16xf32>, vector<16x16xf32>, vector<16x16xf32> -> vector<16x16xf32>
      %cst_177 = arith.constant dense<0.000000e+00> : vector<16x16xf32>
      %263 = tpu.matmul %261, %259, %cst_177 {dimension_numbers = #tpu.dot_dimension_numbers<[1], [0], [0], [1], [0, 0, 1, 1], [], []>} : vector<16x16xf32>, vector<16x16xf32>, vector<16x16xf32> -> vector<16x16xf32>
      %264 = arith.subf %262, %263 : vector<16x16xf32>
      %c0_178 = arith.constant 0 : index
      %c0_179 = arith.constant 0 : index
      %265 = vector.load %arg11[%c0_178, %c0_179] : memref<16x32xf32, #tpu.memory_space<vmem>>, vector<16x16xf32>
      tpu.vector_store %arg11[%c0_178, %c0_179], %264 {strides = array<i32>} : memref<16x32xf32, #tpu.memory_space<vmem>>, vector<16x16xf32>,
      %cst_180 = arith.constant dense<0.000000e+00> : vector<16x16xf32>
      %266 = tpu.matmul %260, %259, %cst_180 {dimension_numbers = #tpu.dot_dimension_numbers<[1], [0], [0], [1], [0, 0, 1, 1], [], []>} : vector<16x16xf32>, vector<16x16xf32>, vector<16x16xf32> -> vector<16x16xf32>
      %cst_181 = arith.constant dense<0.000000e+00> : vector<16x16xf32>
      %267 = tpu.matmul %261, %258, %cst_181 {dimension_numbers = #tpu.dot_dimension_numbers<[1], [0], [0], [1], [0, 0, 1, 1], [], []>} : vector<16x16xf32>, vector<16x16xf32>, vector<16x16xf32> -> vector<16x16xf32>
      %268 = arith.addf %266, %267 : vector<16x16xf32>
      %c0_182 = arith.constant 0 : index
      %c16_183 = arith.constant 16 : index
      %269 = vector.load %arg11[%c0_182, %c16_183] : memref<16x32xf32, #tpu.memory_space<vmem>>, vector<16x16xf32>
      tpu.vector_store %arg11[%c0_182, %c16_183], %268 {strides = array<i32>} : memref<16x32xf32, #tpu.memory_space<vmem>>, vector<16x16xf32>,
      %cst_184 = arith.constant 0.000000e+00 : f32
      %270 = vector.broadcast %cst_184 : f32 to vector<16x16xf32>
      %c0_185 = arith.constant 0 : index
      %c0_186 = arith.constant 0 : index
      %c0_187 = arith.constant 0 : index
      %271 = vector.load %arg9[%c0_185, %c0_186, %c0_187] : memref<1x16x16xf32, #tpu.memory_space<vmem>>, vector<1x16x16xf32>
      %272 = vector.shape_cast %271 : vector<1x16x16xf32> to vector<16x16xf32>
      %273 = vector.shape_cast %270 : vector<16x16xf32> to vector<1x16x16xf32>
      tpu.vector_store %arg9[%c0_185, %c0_186, %c0_187], %273 {strides = array<i32>} : memref<1x16x16xf32, #tpu.memory_space<vmem>>, vector<1x16x16xf32>,
    } else {
    }
    %c0 = arith.constant 0 : index
    %c0_1 = arith.constant 0 : index
    %3 = vector.load %arg11[%c0, %c0_1] : memref<16x32xf32, #tpu.memory_space<vmem>>, vector<16x16xf32>
    %c0_2 = arith.constant 0 : index
    %c16 = arith.constant 16 : index
    %4 = vector.load %arg11[%c0_2, %c16] : memref<16x32xf32, #tpu.memory_space<vmem>>, vector<16x16xf32>
    %c4_i32 = arith.constant 4 : i32
    %5 = arith.muli %arg1, %c4_i32 : i32
    %c0_i32_3 = arith.constant 0 : i32
    %6 = arith.addi %5, %c0_i32_3 : i32
    %7 = arith.index_cast %6 : i32 to index
    %c0_4 = arith.constant 0 : index
    %c0_5 = arith.constant 0 : index
    %8 = vector.load %arg7[%7, %c0_4, %c0_5] : memref<16x16x16xbf16, #tpu.memory_space<vmem>>, vector<1x16x16xbf16>
    %9 = vector.shape_cast %8 : vector<1x16x16xbf16> to vector<16x16xbf16>
    %10 = arith.extf %9 : vector<16x16xbf16> to vector<16x16xf32>
    %11 = arith.mulf %10, %3 : vector<16x16xf32>
    %12 = arith.truncf %11 : vector<16x16xf32> to vector<16x16xbf16>
    %c0_6 = arith.constant 0 : index
    %c0_7 = arith.constant 0 : index
    %13 = vector.load %arg12[%c0_6, %c0_7] : memref<32x64xbf16, #tpu.memory_space<vmem>>, vector<16x16xbf16>
    tpu.vector_store %arg12[%c0_6, %c0_7], %12 {strides = array<i32>} : memref<32x64xbf16, #tpu.memory_space<vmem>>, vector<16x16xbf16>,
    %14 = arith.mulf %10, %4 : vector<16x16xf32>
    %15 = arith.truncf %14 : vector<16x16xf32> to vector<16x16xbf16>
    %c16_8 = arith.constant 16 : index
    %c0_9 = arith.constant 0 : index
    %16 = vector.load %arg12[%c16_8, %c0_9] : memref<32x64xbf16, #tpu.memory_space<vmem>>, vector<16x16xbf16>
    tpu.vector_store %arg12[%c16_8, %c0_9], %15 {strides = array<i32>} : memref<32x64xbf16, #tpu.memory_space<vmem>>, vector<16x16xbf16>,
    %c4_i32_10 = arith.constant 4 : i32
    %17 = arith.muli %arg1, %c4_i32_10 : i32
    %c1_i32 = arith.constant 1 : i32
    %18 = arith.addi %17, %c1_i32 : i32
    %19 = arith.index_cast %18 : i32 to index
    %c0_11 = arith.constant 0 : index
    %c0_12 = arith.constant 0 : index
    %20 = vector.load %arg7[%19, %c0_11, %c0_12] : memref<16x16x16xbf16, #tpu.memory_space<vmem>>, vector<1x16x16xbf16>
    %21 = vector.shape_cast %20 : vector<1x16x16xbf16> to vector<16x16xbf16>
    %22 = arith.extf %21 : vector<16x16xbf16> to vector<16x16xf32>
    %23 = arith.mulf %22, %3 : vector<16x16xf32>
    %24 = arith.truncf %23 : vector<16x16xf32> to vector<16x16xbf16>
    %c0_13 = arith.constant 0 : index
    %c16_14 = arith.constant 16 : index
    %25 = vector.load %arg12[%c0_13, %c16_14] : memref<32x64xbf16, #tpu.memory_space<vmem>>, vector<16x16xbf16>
    tpu.vector_store %arg12[%c0_13, %c16_14], %24 {strides = array<i32>} : memref<32x64xbf16, #tpu.memory_space<vmem>>, vector<16x16xbf16>,
    %26 = arith.mulf %22, %4 : vector<16x16xf32>
    %27 = arith.truncf %26 : vector<16x16xf32> to vector<16x16xbf16>
    %c16_15 = arith.constant 16 : index
    %c16_16 = arith.constant 16 : index
    %28 = vector.load %arg12[%c16_15, %c16_16] : memref<32x64xbf16, #tpu.memory_space<vmem>>, vector<16x16xbf16>
    tpu.vector_store %arg12[%c16_15, %c16_16], %27 {strides = array<i32>} : memref<32x64xbf16, #tpu.memory_space<vmem>>, vector<16x16xbf16>,
    %c4_i32_17 = arith.constant 4 : i32
    %29 = arith.muli %arg1, %c4_i32_17 : i32
    %c2_i32 = arith.constant 2 : i32
    %30 = arith.addi %29, %c2_i32 : i32
    %31 = arith.index_cast %30 : i32 to index
    %c0_18 = arith.constant 0 : index
    %c0_19 = arith.constant 0 : index
    %32 = vector.load %arg7[%31, %c0_18, %c0_19] : memref<16x16x16xbf16, #tpu.memory_space<vmem>>, vector<1x16x16xbf16>
    %33 = vector.shape_cast %32 : vector<1x16x16xbf16> to vector<16x16xbf16>
    %34 = arith.extf %33 : vector<16x16xbf16> to vector<16x16xf32>
    %35 = arith.mulf %34, %3 : vector<16x16xf32>
    %36 = arith.truncf %35 : vector<16x16xf32> to vector<16x16xbf16>
    %c0_20 = arith.constant 0 : index
    %c32 = arith.constant 32 : index
    %37 = vector.load %arg12[%c0_20, %c32] : memref<32x64xbf16, #tpu.memory_space<vmem>>, vector<16x16xbf16>
    tpu.vector_store %arg12[%c0_20, %c32], %36 {strides = array<i32>} : memref<32x64xbf16, #tpu.memory_space<vmem>>, vector<16x16xbf16>,
    %38 = arith.mulf %34, %4 : vector<16x16xf32>
    %39 = arith.truncf %38 : vector<16x16xf32> to vector<16x16xbf16>
    %c16_21 = arith.constant 16 : index
    %c32_22 = arith.constant 32 : index
    %40 = vector.load %arg12[%c16_21, %c32_22] : memref<32x64xbf16, #tpu.memory_space<vmem>>, vector<16x16xbf16>
    tpu.vector_store %arg12[%c16_21, %c32_22], %39 {strides = array<i32>} : memref<32x64xbf16, #tpu.memory_space<vmem>>, vector<16x16xbf16>,
    %c4_i32_23 = arith.constant 4 : i32
    %41 = arith.muli %arg1, %c4_i32_23 : i32
    %c3_i32 = arith.constant 3 : i32
    %42 = arith.addi %41, %c3_i32 : i32
    %43 = arith.index_cast %42 : i32 to index
    %c0_24 = arith.constant 0 : index
    %c0_25 = arith.constant 0 : index
    %44 = vector.load %arg7[%43, %c0_24, %c0_25] : memref<16x16x16xbf16, #tpu.memory_space<vmem>>, vector<1x16x16xbf16>
    %45 = vector.shape_cast %44 : vector<1x16x16xbf16> to vector<16x16xbf16>
    %46 = arith.extf %45 : vector<16x16xbf16> to vector<16x16xf32>
    %47 = arith.mulf %46, %3 : vector<16x16xf32>
    %48 = arith.truncf %47 : vector<16x16xf32> to vector<16x16xbf16>
    %c0_26 = arith.constant 0 : index
    %c48 = arith.constant 48 : index
    %49 = vector.load %arg12[%c0_26, %c48] : memref<32x64xbf16, #tpu.memory_space<vmem>>, vector<16x16xbf16>
    tpu.vector_store %arg12[%c0_26, %c48], %48 {strides = array<i32>} : memref<32x64xbf16, #tpu.memory_space<vmem>>, vector<16x16xbf16>,
    %50 = arith.mulf %46, %4 : vector<16x16xf32>
    %51 = arith.truncf %50 : vector<16x16xf32> to vector<16x16xbf16>
    %c16_27 = arith.constant 16 : index
    %c48_28 = arith.constant 48 : index
    %52 = vector.load %arg12[%c16_27, %c48_28] : memref<32x64xbf16, #tpu.memory_space<vmem>>, vector<16x16xbf16>
    tpu.vector_store %arg12[%c16_27, %c48_28], %51 {strides = array<i32>} : memref<32x64xbf16, #tpu.memory_space<vmem>>, vector<16x16xbf16>,
    %c0_29 = arith.constant 0 : index
    %c0_30 = arith.constant 0 : index
    %53 = vector.load %arg5[%c0_29, %c0_30] : memref<32x32xbf16, #tpu.memory_space<vmem>>, vector<32x32xbf16>
    %c0_31 = arith.constant 0 : index
    %c0_32 = arith.constant 0 : index
    %54 = vector.load %arg12[%c0_31, %c0_32] : memref<32x64xbf16, #tpu.memory_space<vmem>>, vector<32x64xbf16>
    %cst = arith.constant dense<0.000000e+00> : vector<32x64xf32>
    %55 = tpu.matmul %53, %54, %cst {dimension_numbers = #tpu.dot_dimension_numbers<[1], [0], [0], [1], [0, 0, 1, 1], [], []>} : vector<32x32xbf16>, vector<32x64xbf16>, vector<32x64xf32> -> vector<32x64xf32>
    %56 = arith.truncf %55 : vector<32x64xf32> to vector<32x64xbf16>
    %c0_33 = arith.constant 0 : index
    %c0_34 = arith.constant 0 : index
    %57 = vector.load %arg13[%c0_33, %c0_34] : memref<32x64xbf16, #tpu.memory_space<vmem>>, vector<32x64xbf16>
    tpu.vector_store %arg13[%c0_33, %c0_34], %56 {strides = array<i32>} : memref<32x64xbf16, #tpu.memory_space<vmem>>, vector<32x64xbf16>,
    %cst_35 = arith.constant 0.000000e+00 : f32
    %58 = vector.broadcast %cst_35 : f32 to vector<16x16xf32>
    %cst_36 = arith.constant 0.000000e+00 : f32
    %59 = vector.broadcast %cst_36 : f32 to vector<16x16xf32>
    %c0_37 = arith.constant 0 : index
    %c0_38 = arith.constant 0 : index
    %60 = vector.load %arg6[%c0_37, %c0_38] : memref<32x32xbf16, #tpu.memory_space<vmem>>, vector<32x32xbf16>
    %c0_39 = arith.constant 0 : index
    %c0_40 = arith.constant 0 : index
    %61 = vector.load %arg13[%c0_39, %c0_40] : memref<32x64xbf16, #tpu.memory_space<vmem>>, vector<16x16xbf16>
    %c0_41 = arith.constant 0 : index
    %c0_42 = arith.constant 0 : index
    %62 = vector.load %arg14[%c0_41, %c0_42] : memref<16x32xbf16, #tpu.memory_space<vmem>>, vector<16x16xbf16>
    tpu.vector_store %arg14[%c0_41, %c0_42], %61 {strides = array<i32>} : memref<16x32xbf16, #tpu.memory_space<vmem>>, vector<16x16xbf16>,
    %c16_43 = arith.constant 16 : index
    %c0_44 = arith.constant 0 : index
    %63 = vector.load %arg13[%c16_43, %c0_44] : memref<32x64xbf16, #tpu.memory_space<vmem>>, vector<16x16xbf16>
    %c0_45 = arith.constant 0 : index
    %c16_46 = arith.constant 16 : index
    %64 = vector.load %arg14[%c0_45, %c16_46] : memref<16x32xbf16, #tpu.memory_space<vmem>>, vector<16x16xbf16>
    tpu.vector_store %arg14[%c0_45, %c16_46], %63 {strides = array<i32>} : memref<16x32xbf16, #tpu.memory_space<vmem>>, vector<16x16xbf16>,
    %c0_47 = arith.constant 0 : index
    %c0_48 = arith.constant 0 : index
    %65 = vector.load %arg14[%c0_47, %c0_48] : memref<16x32xbf16, #tpu.memory_space<vmem>>, vector<16x32xbf16>
    %cst_49 = arith.constant dense<0.000000e+00> : vector<16x32xf32>
    %66 = tpu.matmul %65, %60, %cst_49 {dimension_numbers = #tpu.dot_dimension_numbers<[1], [0], [0], [1], [0, 0, 1, 1], [], []>} : vector<16x32xbf16>, vector<32x32xbf16>, vector<16x32xf32> -> vector<16x32xf32>
    %67 = arith.truncf %66 : vector<16x32xf32> to vector<16x32xbf16>
    %c0_50 = arith.constant 0 : index
    %c0_51 = arith.constant 0 : index
    %c0_52 = arith.constant 0 : index
    %68 = vector.load %arg15[%c0_50, %c0_51, %c0_52] : memref<4x16x32xbf16, #tpu.memory_space<vmem>>, vector<1x16x32xbf16>
    %69 = vector.shape_cast %68 : vector<1x16x32xbf16> to vector<16x32xbf16>
    %70 = vector.shape_cast %67 : vector<16x32xbf16> to vector<1x16x32xbf16>
    tpu.vector_store %arg15[%c0_50, %c0_51, %c0_52], %70 {strides = array<i32>} : memref<4x16x32xbf16, #tpu.memory_space<vmem>>, vector<1x16x32xbf16>,
    %71 = vector.extract_strided_slice %66 {offsets = [0, 0], sizes = [16, 16], strides = [1, 1]} : vector<16x32xf32> to vector<16x16xf32>
    %72 = vector.extract_strided_slice %66 {offsets = [0, 16], sizes = [16, 16], strides = [1, 1]} : vector<16x32xf32> to vector<16x16xf32>
    %c0_53 = arith.constant 0 : index
    %c0_54 = arith.constant 0 : index
    %c0_55 = arith.constant 0 : index
    %73 = vector.load %arg9[%c0_53, %c0_54, %c0_55] : memref<1x16x16xf32, #tpu.memory_space<vmem>>, vector<1x16x16xf32>
    %74 = vector.shape_cast %73 : vector<1x16x16xf32> to vector<16x16xf32>
    %75 = arith.mulf %71, %71 : vector<16x16xf32>
    %76 = arith.mulf %72, %72 : vector<16x16xf32>
    %77 = arith.addf %75, %76 : vector<16x16xf32>
    %cst_56 = arith.constant 9.99999996E-13 : f32
    %78 = vector.broadcast %cst_56 : f32 to vector<16x16xf32>
    %79 = arith.addf %77, %78 : vector<16x16xf32>
    %80 = math.sqrt %79 : vector<16x16xf32>
    %81 = arith.addf %74, %80 : vector<16x16xf32>
    %c0_57 = arith.constant 0 : index
    %c0_58 = arith.constant 0 : index
    %c0_59 = arith.constant 0 : index
    %82 = vector.load %arg9[%c0_57, %c0_58, %c0_59] : memref<1x16x16xf32, #tpu.memory_space<vmem>>, vector<1x16x16xf32>
    %83 = vector.shape_cast %82 : vector<1x16x16xf32> to vector<16x16xf32>
    %84 = vector.shape_cast %81 : vector<16x16xf32> to vector<1x16x16xf32>
    tpu.vector_store %arg9[%c0_57, %c0_58, %c0_59], %84 {strides = array<i32>} : memref<1x16x16xf32, #tpu.memory_space<vmem>>, vector<1x16x16xf32>,
    %85 = arith.addf %58, %71 : vector<16x16xf32>
    %86 = arith.addf %59, %72 : vector<16x16xf32>
    %87 = arith.mulf %71, %71 : vector<16x16xf32>
    %88 = arith.mulf %72, %72 : vector<16x16xf32>
    %89 = arith.addf %87, %88 : vector<16x16xf32>
    %cst_60 = arith.constant 9.99999996E-13 : f32
    %90 = vector.broadcast %cst_60 : f32 to vector<16x16xf32>
    %91 = arith.addf %89, %90 : vector<16x16xf32>
    %c0_61 = arith.constant 0 : index
    %c0_62 = arith.constant 0 : index
    %c0_63 = arith.constant 0 : index
    %c0_64 = arith.constant 0 : index
    %92 = vector.load %arg10[%c0_61, %c0_62, %c0_63, %c0_64] : memref<1x1x16x16xf32, #tpu.memory_space<vmem>>, vector<1x1x16x16xf32>
    %93 = vector.shape_cast %92 : vector<1x1x16x16xf32> to vector<16x16xf32>
    %94 = vector.shape_cast %91 : vector<16x16xf32> to vector<1x1x16x16xf32>
    tpu.vector_store %arg10[%c0_61, %c0_62, %c0_63, %c0_64], %94 {strides = array<i32>} : memref<1x1x16x16xf32, #tpu.memory_space<vmem>>, vector<1x1x16x16xf32>,
    %c0_65 = arith.constant 0 : index
    %c16_66 = arith.constant 16 : index
    %95 = vector.load %arg13[%c0_65, %c16_66] : memref<32x64xbf16, #tpu.memory_space<vmem>>, vector<16x16xbf16>
    %c0_67 = arith.constant 0 : index
    %c0_68 = arith.constant 0 : index
    %96 = vector.load %arg14[%c0_67, %c0_68] : memref<16x32xbf16, #tpu.memory_space<vmem>>, vector<16x16xbf16>
    tpu.vector_store %arg14[%c0_67, %c0_68], %95 {strides = array<i32>} : memref<16x32xbf16, #tpu.memory_space<vmem>>, vector<16x16xbf16>,
    %c16_69 = arith.constant 16 : index
    %c16_70 = arith.constant 16 : index
    %97 = vector.load %arg13[%c16_69, %c16_70] : memref<32x64xbf16, #tpu.memory_space<vmem>>, vector<16x16xbf16>
    %c0_71 = arith.constant 0 : index
    %c16_72 = arith.constant 16 : index
    %98 = vector.load %arg14[%c0_71, %c16_72] : memref<16x32xbf16, #tpu.memory_space<vmem>>, vector<16x16xbf16>
    tpu.vector_store %arg14[%c0_71, %c16_72], %97 {strides = array<i32>} : memref<16x32xbf16, #tpu.memory_space<vmem>>, vector<16x16xbf16>,
    %c0_73 = arith.constant 0 : index
    %c0_74 = arith.constant 0 : index
    %99 = vector.load %arg14[%c0_73, %c0_74] : memref<16x32xbf16, #tpu.memory_space<vmem>>, vector<16x32xbf16>
    %cst_75 = arith.constant dense<0.000000e+00> : vector<16x32xf32>
    %100 = tpu.matmul %99, %60, %cst_75 {dimension_numbers = #tpu.dot_dimension_numbers<[1], [0], [0], [1], [0, 0, 1, 1], [], []>} : vector<16x32xbf16>, vector<32x32xbf16>, vector<16x32xf32> -> vector<16x32xf32>
    %101 = arith.truncf %100 : vector<16x32xf32> to vector<16x32xbf16>
    %c1 = arith.constant 1 : index
    %c0_76 = arith.constant 0 : index
    %c0_77 = arith.constant 0 : index
    %102 = vector.load %arg15[%c1, %c0_76, %c0_77] : memref<4x16x32xbf16, #tpu.memory_space<vmem>>, vector<1x16x32xbf16>
    %103 = vector.shape_cast %102 : vector<1x16x32xbf16> to vector<16x32xbf16>
    %104 = vector.shape_cast %101 : vector<16x32xbf16> to vector<1x16x32xbf16>
    tpu.vector_store %arg15[%c1, %c0_76, %c0_77], %104 {strides = array<i32>} : memref<4x16x32xbf16, #tpu.memory_space<vmem>>, vector<1x16x32xbf16>,
    %105 = vector.extract_strided_slice %100 {offsets = [0, 0], sizes = [16, 16], strides = [1, 1]} : vector<16x32xf32> to vector<16x16xf32>
    %106 = vector.extract_strided_slice %100 {offsets = [0, 16], sizes = [16, 16], strides = [1, 1]} : vector<16x32xf32> to vector<16x16xf32>
    %c0_78 = arith.constant 0 : index
    %c0_79 = arith.constant 0 : index
    %c0_80 = arith.constant 0 : index
    %107 = vector.load %arg9[%c0_78, %c0_79, %c0_80] : memref<1x16x16xf32, #tpu.memory_space<vmem>>, vector<1x16x16xf32>
    %108 = vector.shape_cast %107 : vector<1x16x16xf32> to vector<16x16xf32>
    %109 = arith.mulf %105, %105 : vector<16x16xf32>
    %110 = arith.mulf %106, %106 : vector<16x16xf32>
    %111 = arith.addf %109, %110 : vector<16x16xf32>
    %cst_81 = arith.constant 9.99999996E-13 : f32
    %112 = vector.broadcast %cst_81 : f32 to vector<16x16xf32>
    %113 = arith.addf %111, %112 : vector<16x16xf32>
    %114 = math.sqrt %113 : vector<16x16xf32>
    %115 = arith.addf %108, %114 : vector<16x16xf32>
    %c0_82 = arith.constant 0 : index
    %c0_83 = arith.constant 0 : index
    %c0_84 = arith.constant 0 : index
    %116 = vector.load %arg9[%c0_82, %c0_83, %c0_84] : memref<1x16x16xf32, #tpu.memory_space<vmem>>, vector<1x16x16xf32>
    %117 = vector.shape_cast %116 : vector<1x16x16xf32> to vector<16x16xf32>
    %118 = vector.shape_cast %115 : vector<16x16xf32> to vector<1x16x16xf32>
    tpu.vector_store %arg9[%c0_82, %c0_83, %c0_84], %118 {strides = array<i32>} : memref<1x16x16xf32, #tpu.memory_space<vmem>>, vector<1x16x16xf32>,
    %119 = arith.addf %85, %105 : vector<16x16xf32>
    %120 = arith.addf %86, %106 : vector<16x16xf32>
    %c0_85 = arith.constant 0 : index
    %c32_86 = arith.constant 32 : index
    %121 = vector.load %arg13[%c0_85, %c32_86] : memref<32x64xbf16, #tpu.memory_space<vmem>>, vector<16x16xbf16>
    %c0_87 = arith.constant 0 : index
    %c0_88 = arith.constant 0 : index
    %122 = vector.load %arg14[%c0_87, %c0_88] : memref<16x32xbf16, #tpu.memory_space<vmem>>, vector<16x16xbf16>
    tpu.vector_store %arg14[%c0_87, %c0_88], %121 {strides = array<i32>} : memref<16x32xbf16, #tpu.memory_space<vmem>>, vector<16x16xbf16>,
    %c16_89 = arith.constant 16 : index
    %c32_90 = arith.constant 32 : index
    %123 = vector.load %arg13[%c16_89, %c32_90] : memref<32x64xbf16, #tpu.memory_space<vmem>>, vector<16x16xbf16>
    %c0_91 = arith.constant 0 : index
    %c16_92 = arith.constant 16 : index
    %124 = vector.load %arg14[%c0_91, %c16_92] : memref<16x32xbf16, #tpu.memory_space<vmem>>, vector<16x16xbf16>
    tpu.vector_store %arg14[%c0_91, %c16_92], %123 {strides = array<i32>} : memref<16x32xbf16, #tpu.memory_space<vmem>>, vector<16x16xbf16>,
    %c0_93 = arith.constant 0 : index
    %c0_94 = arith.constant 0 : index
    %125 = vector.load %arg14[%c0_93, %c0_94] : memref<16x32xbf16, #tpu.memory_space<vmem>>, vector<16x32xbf16>
    %cst_95 = arith.constant dense<0.000000e+00> : vector<16x32xf32>
    %126 = tpu.matmul %125, %60, %cst_95 {dimension_numbers = #tpu.dot_dimension_numbers<[1], [0], [0], [1], [0, 0, 1, 1], [], []>} : vector<16x32xbf16>, vector<32x32xbf16>, vector<16x32xf32> -> vector<16x32xf32>
    %127 = arith.truncf %126 : vector<16x32xf32> to vector<16x32xbf16>
    %c2 = arith.constant 2 : index
    %c0_96 = arith.constant 0 : index
    %c0_97 = arith.constant 0 : index
    %128 = vector.load %arg15[%c2, %c0_96, %c0_97] : memref<4x16x32xbf16, #tpu.memory_space<vmem>>, vector<1x16x32xbf16>
    %129 = vector.shape_cast %128 : vector<1x16x32xbf16> to vector<16x32xbf16>
    %130 = vector.shape_cast %127 : vector<16x32xbf16> to vector<1x16x32xbf16>
    tpu.vector_store %arg15[%c2, %c0_96, %c0_97], %130 {strides = array<i32>} : memref<4x16x32xbf16, #tpu.memory_space<vmem>>, vector<1x16x32xbf16>,
    %131 = vector.extract_strided_slice %126 {offsets = [0, 0], sizes = [16, 16], strides = [1, 1]} : vector<16x32xf32> to vector<16x16xf32>
    %132 = vector.extract_strided_slice %126 {offsets = [0, 16], sizes = [16, 16], strides = [1, 1]} : vector<16x32xf32> to vector<16x16xf32>
    %c0_98 = arith.constant 0 : index
    %c0_99 = arith.constant 0 : index
    %c0_100 = arith.constant 0 : index
    %133 = vector.load %arg9[%c0_98, %c0_99, %c0_100] : memref<1x16x16xf32, #tpu.memory_space<vmem>>, vector<1x16x16xf32>
    %134 = vector.shape_cast %133 : vector<1x16x16xf32> to vector<16x16xf32>
    %135 = arith.mulf %131, %131 : vector<16x16xf32>
    %136 = arith.mulf %132, %132 : vector<16x16xf32>
    %137 = arith.addf %135, %136 : vector<16x16xf32>
    %cst_101 = arith.constant 9.99999996E-13 : f32
    %138 = vector.broadcast %cst_101 : f32 to vector<16x16xf32>
    %139 = arith.addf %137, %138 : vector<16x16xf32>
    %140 = math.sqrt %139 : vector<16x16xf32>
    %141 = arith.addf %134, %140 : vector<16x16xf32>
    %c0_102 = arith.constant 0 : index
    %c0_103 = arith.constant 0 : index
    %c0_104 = arith.constant 0 : index
    %142 = vector.load %arg9[%c0_102, %c0_103, %c0_104] : memref<1x16x16xf32, #tpu.memory_space<vmem>>, vector<1x16x16xf32>
    %143 = vector.shape_cast %142 : vector<1x16x16xf32> to vector<16x16xf32>
    %144 = vector.shape_cast %141 : vector<16x16xf32> to vector<1x16x16xf32>
    tpu.vector_store %arg9[%c0_102, %c0_103, %c0_104], %144 {strides = array<i32>} : memref<1x16x16xf32, #tpu.memory_space<vmem>>, vector<1x16x16xf32>,
    %145 = arith.addf %119, %131 : vector<16x16xf32>
    %146 = arith.addf %120, %132 : vector<16x16xf32>
    %c0_105 = arith.constant 0 : index
    %c48_106 = arith.constant 48 : index
    %147 = vector.load %arg13[%c0_105, %c48_106] : memref<32x64xbf16, #tpu.memory_space<vmem>>, vector<16x16xbf16>
    %c0_107 = arith.constant 0 : index
    %c0_108 = arith.constant 0 : index
    %148 = vector.load %arg14[%c0_107, %c0_108] : memref<16x32xbf16, #tpu.memory_space<vmem>>, vector<16x16xbf16>
    tpu.vector_store %arg14[%c0_107, %c0_108], %147 {strides = array<i32>} : memref<16x32xbf16, #tpu.memory_space<vmem>>, vector<16x16xbf16>,
    %c16_109 = arith.constant 16 : index
    %c48_110 = arith.constant 48 : index
    %149 = vector.load %arg13[%c16_109, %c48_110] : memref<32x64xbf16, #tpu.memory_space<vmem>>, vector<16x16xbf16>
    %c0_111 = arith.constant 0 : index
    %c16_112 = arith.constant 16 : index
    %150 = vector.load %arg14[%c0_111, %c16_112] : memref<16x32xbf16, #tpu.memory_space<vmem>>, vector<16x16xbf16>
    tpu.vector_store %arg14[%c0_111, %c16_112], %149 {strides = array<i32>} : memref<16x32xbf16, #tpu.memory_space<vmem>>, vector<16x16xbf16>,
    %c0_113 = arith.constant 0 : index
    %c0_114 = arith.constant 0 : index
    %151 = vector.load %arg14[%c0_113, %c0_114] : memref<16x32xbf16, #tpu.memory_space<vmem>>, vector<16x32xbf16>
    %cst_115 = arith.constant dense<0.000000e+00> : vector<16x32xf32>
    %152 = tpu.matmul %151, %60, %cst_115 {dimension_numbers = #tpu.dot_dimension_numbers<[1], [0], [0], [1], [0, 0, 1, 1], [], []>} : vector<16x32xbf16>, vector<32x32xbf16>, vector<16x32xf32> -> vector<16x32xf32>
    %153 = arith.truncf %152 : vector<16x32xf32> to vector<16x32xbf16>
    %c3 = arith.constant 3 : index
    %c0_116 = arith.constant 0 : index
    %c0_117 = arith.constant 0 : index
    %154 = vector.load %arg15[%c3, %c0_116, %c0_117] : memref<4x16x32xbf16, #tpu.memory_space<vmem>>, vector<1x16x32xbf16>
    %155 = vector.shape_cast %154 : vector<1x16x32xbf16> to vector<16x32xbf16>
    %156 = vector.shape_cast %153 : vector<16x32xbf16> to vector<1x16x32xbf16>
    tpu.vector_store %arg15[%c3, %c0_116, %c0_117], %156 {strides = array<i32>} : memref<4x16x32xbf16, #tpu.memory_space<vmem>>, vector<1x16x32xbf16>,
    %157 = vector.extract_strided_slice %152 {offsets = [0, 0], sizes = [16, 16], strides = [1, 1]} : vector<16x32xf32> to vector<16x16xf32>
    %158 = vector.extract_strided_slice %152 {offsets = [0, 16], sizes = [16, 16], strides = [1, 1]} : vector<16x32xf32> to vector<16x16xf32>
    %c0_118 = arith.constant 0 : index
    %c0_119 = arith.constant 0 : index
    %c0_120 = arith.constant 0 : index
    %159 = vector.load %arg9[%c0_118, %c0_119, %c0_120] : memref<1x16x16xf32, #tpu.memory_space<vmem>>, vector<1x16x16xf32>
    %160 = vector.shape_cast %159 : vector<1x16x16xf32> to vector<16x16xf32>
    %161 = arith.mulf %157, %157 : vector<16x16xf32>
    %162 = arith.mulf %158, %158 : vector<16x16xf32>
    %163 = arith.addf %161, %162 : vector<16x16xf32>
    %cst_121 = arith.constant 9.99999996E-13 : f32
    %164 = vector.broadcast %cst_121 : f32 to vector<16x16xf32>
    %165 = arith.addf %163, %164 : vector<16x16xf32>
    %166 = math.sqrt %165 : vector<16x16xf32>
    %167 = arith.addf %160, %166 : vector<16x16xf32>
    %c0_122 = arith.constant 0 : index
    %c0_123 = arith.constant 0 : index
    %c0_124 = arith.constant 0 : index
    %168 = vector.load %arg9[%c0_122, %c0_123, %c0_124] : memref<1x16x16xf32, #tpu.memory_space<vmem>>, vector<1x16x16xf32>
    %169 = vector.shape_cast %168 : vector<1x16x16xf32> to vector<16x16xf32>
    %170 = vector.shape_cast %167 : vector<16x16xf32> to vector<1x16x16xf32>
    tpu.vector_store %arg9[%c0_122, %c0_123, %c0_124], %170 {strides = array<i32>} : memref<1x16x16xf32, #tpu.memory_space<vmem>>, vector<1x16x16xf32>,
    %171 = arith.addf %145, %157 : vector<16x16xf32>
    %172 = arith.addf %146, %158 : vector<16x16xf32>
    %173 = arith.mulf %171, %171 : vector<16x16xf32>
    %174 = arith.mulf %172, %172 : vector<16x16xf32>
    %175 = arith.addf %173, %174 : vector<16x16xf32>
    %cst_125 = arith.constant 9.99999996E-13 : f32
    %176 = vector.broadcast %cst_125 : f32 to vector<16x16xf32>
    %177 = arith.addf %175, %176 : vector<16x16xf32>
    %178 = math.sqrt %177 : vector<16x16xf32>
    %cst_126 = arith.constant 9.99999974E-5 : f32
    %179 = vector.broadcast %cst_126 : f32 to vector<16x16xf32>
    %180 = arith.addf %178, %179 : vector<16x16xf32>
    %181 = arith.divf %171, %180 : vector<16x16xf32>
    %182 = arith.divf %172, %180 : vector<16x16xf32>
    %c0_127 = arith.constant 0 : index
    %c0_128 = arith.constant 0 : index
    %c0_129 = arith.constant 0 : index
    %183 = vector.load %arg15[%c0_127, %c0_128, %c0_129] : memref<4x16x32xbf16, #tpu.memory_space<vmem>>, vector<1x16x32xbf16>
    %184 = vector.shape_cast %183 : vector<1x16x32xbf16> to vector<16x32xbf16>
    %185 = arith.extf %184 : vector<16x32xbf16> to vector<16x32xf32>
    %186 = vector.extract_strided_slice %185 {offsets = [0, 0], sizes = [16, 16], strides = [1, 1]} : vector<16x32xf32> to vector<16x16xf32>
    %187 = vector.extract_strided_slice %185 {offsets = [0, 16], sizes = [16, 16], strides = [1, 1]} : vector<16x32xf32> to vector<16x16xf32>
    %188 = arith.mulf %186, %181 : vector<16x16xf32>
    %189 = arith.mulf %187, %182 : vector<16x16xf32>
    %190 = arith.addf %188, %189 : vector<16x16xf32>
    %191 = arith.mulf %186, %182 : vector<16x16xf32>
    %192 = arith.mulf %187, %181 : vector<16x16xf32>
    %193 = arith.subf %191, %192 : vector<16x16xf32>
    %194 = math.absf %193 : vector<16x16xf32>
    %195 = arith.subf %190, %194 : vector<16x16xf32>
    %c0_130 = arith.constant 0 : index
    %c0_131 = arith.constant 0 : index
    %c0_132 = arith.constant 0 : index
    %c0_133 = arith.constant 0 : index
    %196 = vector.load %arg8[%c0_130, %c0_131, %c0_132, %c0_133] : memref<1x1x16x16xf32, #tpu.memory_space<vmem>>, vector<1x1x16x16xf32>
    %197 = vector.shape_cast %196 : vector<1x1x16x16xf32> to vector<16x16xf32>
    %198 = vector.shape_cast %195 : vector<16x16xf32> to vector<1x1x16x16xf32>
    tpu.vector_store %arg8[%c0_130, %c0_131, %c0_132, %c0_133], %198 {strides = array<i32>} : memref<1x1x16x16xf32, #tpu.memory_space<vmem>>, vector<1x1x16x16xf32>,
    %c1_134 = arith.constant 1 : index
    %c0_135 = arith.constant 0 : index
    %c0_136 = arith.constant 0 : index
    %199 = vector.load %arg15[%c1_134, %c0_135, %c0_136] : memref<4x16x32xbf16, #tpu.memory_space<vmem>>, vector<1x16x32xbf16>
    %200 = vector.shape_cast %199 : vector<1x16x32xbf16> to vector<16x32xbf16>
    %201 = arith.extf %200 : vector<16x32xbf16> to vector<16x32xf32>
    %202 = vector.extract_strided_slice %201 {offsets = [0, 0], sizes = [16, 16], strides = [1, 1]} : vector<16x32xf32> to vector<16x16xf32>
    %203 = vector.extract_strided_slice %201 {offsets = [0, 16], sizes = [16, 16], strides = [1, 1]} : vector<16x32xf32> to vector<16x16xf32>
    %204 = arith.mulf %202, %181 : vector<16x16xf32>
    %205 = arith.mulf %203, %182 : vector<16x16xf32>
    %206 = arith.addf %204, %205 : vector<16x16xf32>
    %207 = arith.mulf %202, %182 : vector<16x16xf32>
    %208 = arith.mulf %203, %181 : vector<16x16xf32>
    %209 = arith.subf %207, %208 : vector<16x16xf32>
    %210 = math.absf %209 : vector<16x16xf32>
    %211 = arith.subf %206, %210 : vector<16x16xf32>
    %c0_137 = arith.constant 0 : index
    %c0_138 = arith.constant 0 : index
    %c0_139 = arith.constant 0 : index
    %c0_140 = arith.constant 0 : index
    %212 = vector.load %arg8[%c0_137, %c0_138, %c0_139, %c0_140] : memref<1x1x16x16xf32, #tpu.memory_space<vmem>>, vector<1x1x16x16xf32>
    %213 = vector.shape_cast %212 : vector<1x1x16x16xf32> to vector<16x16xf32>
    %214 = arith.addf %213, %211 : vector<16x16xf32>
    %c0_141 = arith.constant 0 : index
    %c0_142 = arith.constant 0 : index
    %c0_143 = arith.constant 0 : index
    %c0_144 = arith.constant 0 : index
    %215 = vector.load %arg8[%c0_141, %c0_142, %c0_143, %c0_144] : memref<1x1x16x16xf32, #tpu.memory_space<vmem>>, vector<1x1x16x16xf32>
    %216 = vector.shape_cast %215 : vector<1x1x16x16xf32> to vector<16x16xf32>
    %217 = vector.shape_cast %214 : vector<16x16xf32> to vector<1x1x16x16xf32>
    tpu.vector_store %arg8[%c0_141, %c0_142, %c0_143, %c0_144], %217 {strides = array<i32>} : memref<1x1x16x16xf32, #tpu.memory_space<vmem>>, vector<1x1x16x16xf32>,
    %c2_145 = arith.constant 2 : index
    %c0_146 = arith.constant 0 : index
    %c0_147 = arith.constant 0 : index
    %218 = vector.load %arg15[%c2_145, %c0_146, %c0_147] : memref<4x16x32xbf16, #tpu.memory_space<vmem>>, vector<1x16x32xbf16>
    %219 = vector.shape_cast %218 : vector<1x16x32xbf16> to vector<16x32xbf16>
    %220 = arith.extf %219 : vector<16x32xbf16> to vector<16x32xf32>
    %221 = vector.extract_strided_slice %220 {offsets = [0, 0], sizes = [16, 16], strides = [1, 1]} : vector<16x32xf32> to vector<16x16xf32>
    %222 = vector.extract_strided_slice %220 {offsets = [0, 16], sizes = [16, 16], strides = [1, 1]} : vector<16x32xf32> to vector<16x16xf32>
    %223 = arith.mulf %221, %181 : vector<16x16xf32>
    %224 = arith.mulf %222, %182 : vector<16x16xf32>
    %225 = arith.addf %223, %224 : vector<16x16xf32>
    %226 = arith.mulf %221, %182 : vector<16x16xf32>
    %227 = arith.mulf %222, %181 : vector<16x16xf32>
    %228 = arith.subf %226, %227 : vector<16x16xf32>
    %229 = math.absf %228 : vector<16x16xf32>
    %230 = arith.subf %225, %229 : vector<16x16xf32>
    %c0_148 = arith.constant 0 : index
    %c0_149 = arith.constant 0 : index
    %c0_150 = arith.constant 0 : index
    %c0_151 = arith.constant 0 : index
    %231 = vector.load %arg8[%c0_148, %c0_149, %c0_150, %c0_151] : memref<1x1x16x16xf32, #tpu.memory_space<vmem>>, vector<1x1x16x16xf32>
    %232 = vector.shape_cast %231 : vector<1x1x16x16xf32> to vector<16x16xf32>
    %233 = arith.addf %232, %230 : vector<16x16xf32>
    %c0_152 = arith.constant 0 : index
    %c0_153 = arith.constant 0 : index
    %c0_154 = arith.constant 0 : index
    %c0_155 = arith.constant 0 : index
    %234 = vector.load %arg8[%c0_152, %c0_153, %c0_154, %c0_155] : memref<1x1x16x16xf32, #tpu.memory_space<vmem>>, vector<1x1x16x16xf32>
    %235 = vector.shape_cast %234 : vector<1x1x16x16xf32> to vector<16x16xf32>
    %236 = vector.shape_cast %233 : vector<16x16xf32> to vector<1x1x16x16xf32>
    tpu.vector_store %arg8[%c0_152, %c0_153, %c0_154, %c0_155], %236 {strides = array<i32>} : memref<1x1x16x16xf32, #tpu.memory_space<vmem>>, vector<1x1x16x16xf32>,
    %c3_156 = arith.constant 3 : index
    %c0_157 = arith.constant 0 : index
    %c0_158 = arith.constant 0 : index
    %237 = vector.load %arg15[%c3_156, %c0_157, %c0_158] : memref<4x16x32xbf16, #tpu.memory_space<vmem>>, vector<1x16x32xbf16>
    %238 = vector.shape_cast %237 : vector<1x16x32xbf16> to vector<16x32xbf16>
    %239 = arith.extf %238 : vector<16x32xbf16> to vector<16x32xf32>
    %240 = vector.extract_strided_slice %239 {offsets = [0, 0], sizes = [16, 16], strides = [1, 1]} : vector<16x32xf32> to vector<16x16xf32>
    %241 = vector.extract_strided_slice %239 {offsets = [0, 16], sizes = [16, 16], strides = [1, 1]} : vector<16x32xf32> to vector<16x16xf32>
    %242 = arith.mulf %240, %181 : vector<16x16xf32>
    %243 = arith.mulf %241, %182 : vector<16x16xf32>
    %244 = arith.addf %242, %243 : vector<16x16xf32>
    %245 = arith.mulf %240, %182 : vector<16x16xf32>
    %246 = arith.mulf %241, %181 : vector<16x16xf32>
    %247 = arith.subf %245, %246 : vector<16x16xf32>
    %248 = math.absf %247 : vector<16x16xf32>
    %249 = arith.subf %244, %248 : vector<16x16xf32>
    %c0_159 = arith.constant 0 : index
    %c0_160 = arith.constant 0 : index
    %c0_161 = arith.constant 0 : index
    %c0_162 = arith.constant 0 : index
    %250 = vector.load %arg8[%c0_159, %c0_160, %c0_161, %c0_162] : memref<1x1x16x16xf32, #tpu.memory_space<vmem>>, vector<1x1x16x16xf32>
    %251 = vector.shape_cast %250 : vector<1x1x16x16xf32> to vector<16x16xf32>
    %252 = arith.addf %251, %249 : vector<16x16xf32>
    %c0_163 = arith.constant 0 : index
    %c0_164 = arith.constant 0 : index
    %c0_165 = arith.constant 0 : index
    %c0_166 = arith.constant 0 : index
    %253 = vector.load %arg8[%c0_163, %c0_164, %c0_165, %c0_166] : memref<1x1x16x16xf32, #tpu.memory_space<vmem>>, vector<1x1x16x16xf32>
    %254 = vector.shape_cast %253 : vector<1x1x16x16xf32> to vector<16x16xf32>
    %255 = vector.shape_cast %252 : vector<16x16xf32> to vector<1x1x16x16xf32>
    tpu.vector_store %arg8[%c0_163, %c0_164, %c0_165, %c0_166], %255 {strides = array<i32>} : memref<1x1x16x16xf32, #tpu.memory_space<vmem>>, vector<1x1x16x16xf32>,
    return
  }
  func.func @transform_0(%arg0: i32, %arg1: i32) -> (i32, i32, i32) {
    %c0_i32 = arith.constant 0 : i32
    %c0_i32_0 = arith.constant 0 : i32
    %c0_i32_1 = arith.constant 0 : i32
    return %arg0, %c0_i32, %c0_i32_0 : i32, i32, i32
  }
  func.func @transform_1(%arg0: i32, %arg1: i32) -> (i32, i32) {
    %c0_i32 = arith.constant 0 : i32
    %c0_i32_0 = arith.constant 0 : i32
    %c0_i32_1 = arith.constant 0 : i32
    return %c0_i32, %c0_i32_0 : i32, i32
  }
  func.func @transform_2(%arg0: i32, %arg1: i32) -> (i32, i32) {
    %c0_i32 = arith.constant 0 : i32
    %c0_i32_0 = arith.constant 0 : i32
    %c0_i32_1 = arith.constant 0 : i32
    return %c0_i32, %c0_i32_0 : i32, i32
  }
  func.func @transform_3(%arg0: i32, %arg1: i32) -> (i32, i32) {
    %c0_i32 = arith.constant 0 : i32
    %c0_i32_0 = arith.constant 0 : i32
    %c0_i32_1 = arith.constant 0 : i32
    return %c0_i32, %c0_i32_0 : i32, i32
  }
  func.func @transform_4(%arg0: i32, %arg1: i32) -> (i32, i32) {
    %c0_i32 = arith.constant 0 : i32
    %c0_i32_0 = arith.constant 0 : i32
    %c0_i32_1 = arith.constant 0 : i32
    return %c0_i32, %c0_i32_0 : i32, i32
  }
  func.func @transform_5(%arg0: i32, %arg1: i32) -> (i32, i32, i32) {
    %c0_i32 = arith.constant 0 : i32
    %c0_i32_0 = arith.constant 0 : i32
    %c0_i32_1 = arith.constant 0 : i32
    %c0_i32_2 = arith.constant 0 : i32
    return %c0_i32, %c0_i32_0, %c0_i32_1 : i32, i32, i32
  }
  func.func @transform_6(%arg0: i32, %arg1: i32) -> (i32, i32, i32, i32) {
    %c0_i32 = arith.constant 0 : i32
    %c0_i32_0 = arith.constant 0 : i32
    %c0_i32_1 = arith.constant 0 : i32
    return %arg0, %arg1, %c0_i32, %c0_i32_0 : i32, i32, i32, i32
  }
  func.func @transform_7(%arg0: i32, %arg1: i32) -> (i32, i32, i32) {
    %c0_i32 = arith.constant 0 : i32
    %c0_i32_0 = arith.constant 0 : i32
    %c0_i32_1 = arith.constant 0 : i32
    return %arg0, %c0_i32, %c0_i32_0 : i32, i32, i32
  }
  func.func @transform_8(%arg0: i32, %arg1: i32) -> (i32, i32, i32, i32) {
    %c0_i32 = arith.constant 0 : i32
    %c0_i32_0 = arith.constant 0 : i32
    %c0_i32_1 = arith.constant 0 : i32
    return %arg0, %arg1, %c0_i32, %c0_i32_0 : i32, i32, i32, i32
  }
}

module attributes {stable_mosaic.version = 11 : i64} {
  func.func @_fsim_kernel(%arg0: i32, %arg1: memref<2x4xf32, #tpu.memory_space<smem>>, %arg2: memref<2x4xf32, #tpu.memory_space<smem>>, %arg3: memref<1x4x16x16xf32, #tpu.memory_space<vmem>>, %arg4: memref<1x4x16x16xf32, #tpu.memory_space<vmem>>, %arg5: memref<1x16x16xf32, #tpu.memory_space<vmem>>, %arg6: memref<1x16x16xf32, #tpu.memory_space<vmem>>, %arg7: memref<1x3x16x16xf32, #tpu.memory_space<vmem>>, %arg8: memref<1x3x16x16xf32, #tpu.memory_space<vmem>>, %arg9: memref<1x2x128xf32, #tpu.memory_space<vmem>>) attributes {dimension_semantics = [#tpu.dimension_semantics<parallel>], iteration_bounds = array<i64: 2>, scalar_prefetch = 0 : i64, scratch_operands = 0 : i64, tpu.core_type = #tpu.core_type<tc>, window_params = [{transform_indices = @transform_0, window_bounds = array<i64: 2, 4>}, {transform_indices = @transform_1, window_bounds = array<i64: 2, 4>}, {transform_indices = @transform_2, window_bounds = array<i64: 1, 4, 16, 16>}, {transform_indices = @transform_3, window_bounds = array<i64: 1, 4, 16, 16>}, {transform_indices = @transform_4, window_bounds = array<i64: 1, 16, 16>}, {transform_indices = @transform_5, window_bounds = array<i64: 1, 16, 16>}, {transform_indices = @transform_6, window_bounds = array<i64: 1, 3, 16, 16>}, {transform_indices = @transform_7, window_bounds = array<i64: 1, 3, 16, 16>}, {transform_indices = @transform_8, window_bounds = array<i64: 1, 2, 128>}]} {
    %cst = arith.constant 0.000000e+00 : f32
    %0 = vector.broadcast %cst : f32 to vector<16x16xf32>
    %cst_0 = arith.constant 0.000000e+00 : f32
    %1 = vector.broadcast %cst_0 : f32 to vector<16x16xf32>
    %c0 = arith.constant 0 : index
    %c0_1 = arith.constant 0 : index
    %c0_2 = arith.constant 0 : index
    %c0_3 = arith.constant 0 : index
    %2 = vector.load %arg3[%c0, %c0_1, %c0_2, %c0_3] : memref<1x4x16x16xf32, #tpu.memory_space<vmem>>, vector<1x1x16x16xf32>
    %3 = vector.shape_cast %2 : vector<1x1x16x16xf32> to vector<16x16xf32>
    %4 = arith.index_cast %arg0 : i32 to index
    %c0_4 = arith.constant 0 : index
    %5 = memref.load %arg1[%4, %c0_4] : memref<2x4xf32, #tpu.memory_space<smem>>
    %6 = vector.broadcast %5 : f32 to vector<16x16xf32>
    %7 = arith.subf %3, %6 : vector<16x16xf32>
    %cst_5 = arith.constant 0.000000e+00 : f32
    %8 = vector.broadcast %cst_5 : f32 to vector<16x16xf32>
    %9 = arith.maximumf %7, %8 : vector<16x16xf32>
    %10 = arith.addf %0, %9 : vector<16x16xf32>
    %c0_6 = arith.constant 0 : index
    %c0_7 = arith.constant 0 : index
    %c0_8 = arith.constant 0 : index
    %c0_9 = arith.constant 0 : index
    %11 = vector.load %arg4[%c0_6, %c0_7, %c0_8, %c0_9] : memref<1x4x16x16xf32, #tpu.memory_space<vmem>>, vector<1x1x16x16xf32>
    %12 = vector.shape_cast %11 : vector<1x1x16x16xf32> to vector<16x16xf32>
    %13 = arith.index_cast %arg0 : i32 to index
    %c0_10 = arith.constant 0 : index
    %14 = memref.load %arg2[%13, %c0_10] : memref<2x4xf32, #tpu.memory_space<smem>>
    %15 = vector.broadcast %14 : f32 to vector<16x16xf32>
    %16 = arith.subf %12, %15 : vector<16x16xf32>
    %cst_11 = arith.constant 0.000000e+00 : f32
    %17 = vector.broadcast %cst_11 : f32 to vector<16x16xf32>
    %18 = arith.maximumf %16, %17 : vector<16x16xf32>
    %19 = arith.addf %1, %18 : vector<16x16xf32>
    %c0_12 = arith.constant 0 : index
    %c1 = arith.constant 1 : index
    %c0_13 = arith.constant 0 : index
    %c0_14 = arith.constant 0 : index
    %20 = vector.load %arg3[%c0_12, %c1, %c0_13, %c0_14] : memref<1x4x16x16xf32, #tpu.memory_space<vmem>>, vector<1x1x16x16xf32>
    %21 = vector.shape_cast %20 : vector<1x1x16x16xf32> to vector<16x16xf32>
    %22 = arith.index_cast %arg0 : i32 to index
    %c1_15 = arith.constant 1 : index
    %23 = memref.load %arg1[%22, %c1_15] : memref<2x4xf32, #tpu.memory_space<smem>>
    %24 = vector.broadcast %23 : f32 to vector<16x16xf32>
    %25 = arith.subf %21, %24 : vector<16x16xf32>
    %cst_16 = arith.constant 0.000000e+00 : f32
    %26 = vector.broadcast %cst_16 : f32 to vector<16x16xf32>
    %27 = arith.maximumf %25, %26 : vector<16x16xf32>
    %28 = arith.addf %10, %27 : vector<16x16xf32>
    %c0_17 = arith.constant 0 : index
    %c1_18 = arith.constant 1 : index
    %c0_19 = arith.constant 0 : index
    %c0_20 = arith.constant 0 : index
    %29 = vector.load %arg4[%c0_17, %c1_18, %c0_19, %c0_20] : memref<1x4x16x16xf32, #tpu.memory_space<vmem>>, vector<1x1x16x16xf32>
    %30 = vector.shape_cast %29 : vector<1x1x16x16xf32> to vector<16x16xf32>
    %31 = arith.index_cast %arg0 : i32 to index
    %c1_21 = arith.constant 1 : index
    %32 = memref.load %arg2[%31, %c1_21] : memref<2x4xf32, #tpu.memory_space<smem>>
    %33 = vector.broadcast %32 : f32 to vector<16x16xf32>
    %34 = arith.subf %30, %33 : vector<16x16xf32>
    %cst_22 = arith.constant 0.000000e+00 : f32
    %35 = vector.broadcast %cst_22 : f32 to vector<16x16xf32>
    %36 = arith.maximumf %34, %35 : vector<16x16xf32>
    %37 = arith.addf %19, %36 : vector<16x16xf32>
    %c0_23 = arith.constant 0 : index
    %c2 = arith.constant 2 : index
    %c0_24 = arith.constant 0 : index
    %c0_25 = arith.constant 0 : index
    %38 = vector.load %arg3[%c0_23, %c2, %c0_24, %c0_25] : memref<1x4x16x16xf32, #tpu.memory_space<vmem>>, vector<1x1x16x16xf32>
    %39 = vector.shape_cast %38 : vector<1x1x16x16xf32> to vector<16x16xf32>
    %40 = arith.index_cast %arg0 : i32 to index
    %c2_26 = arith.constant 2 : index
    %41 = memref.load %arg1[%40, %c2_26] : memref<2x4xf32, #tpu.memory_space<smem>>
    %42 = vector.broadcast %41 : f32 to vector<16x16xf32>
    %43 = arith.subf %39, %42 : vector<16x16xf32>
    %cst_27 = arith.constant 0.000000e+00 : f32
    %44 = vector.broadcast %cst_27 : f32 to vector<16x16xf32>
    %45 = arith.maximumf %43, %44 : vector<16x16xf32>
    %46 = arith.addf %28, %45 : vector<16x16xf32>
    %c0_28 = arith.constant 0 : index
    %c2_29 = arith.constant 2 : index
    %c0_30 = arith.constant 0 : index
    %c0_31 = arith.constant 0 : index
    %47 = vector.load %arg4[%c0_28, %c2_29, %c0_30, %c0_31] : memref<1x4x16x16xf32, #tpu.memory_space<vmem>>, vector<1x1x16x16xf32>
    %48 = vector.shape_cast %47 : vector<1x1x16x16xf32> to vector<16x16xf32>
    %49 = arith.index_cast %arg0 : i32 to index
    %c2_32 = arith.constant 2 : index
    %50 = memref.load %arg2[%49, %c2_32] : memref<2x4xf32, #tpu.memory_space<smem>>
    %51 = vector.broadcast %50 : f32 to vector<16x16xf32>
    %52 = arith.subf %48, %51 : vector<16x16xf32>
    %cst_33 = arith.constant 0.000000e+00 : f32
    %53 = vector.broadcast %cst_33 : f32 to vector<16x16xf32>
    %54 = arith.maximumf %52, %53 : vector<16x16xf32>
    %55 = arith.addf %37, %54 : vector<16x16xf32>
    %c0_34 = arith.constant 0 : index
    %c3 = arith.constant 3 : index
    %c0_35 = arith.constant 0 : index
    %c0_36 = arith.constant 0 : index
    %56 = vector.load %arg3[%c0_34, %c3, %c0_35, %c0_36] : memref<1x4x16x16xf32, #tpu.memory_space<vmem>>, vector<1x1x16x16xf32>
    %57 = vector.shape_cast %56 : vector<1x1x16x16xf32> to vector<16x16xf32>
    %58 = arith.index_cast %arg0 : i32 to index
    %c3_37 = arith.constant 3 : index
    %59 = memref.load %arg1[%58, %c3_37] : memref<2x4xf32, #tpu.memory_space<smem>>
    %60 = vector.broadcast %59 : f32 to vector<16x16xf32>
    %61 = arith.subf %57, %60 : vector<16x16xf32>
    %cst_38 = arith.constant 0.000000e+00 : f32
    %62 = vector.broadcast %cst_38 : f32 to vector<16x16xf32>
    %63 = arith.maximumf %61, %62 : vector<16x16xf32>
    %64 = arith.addf %46, %63 : vector<16x16xf32>
    %c0_39 = arith.constant 0 : index
    %c3_40 = arith.constant 3 : index
    %c0_41 = arith.constant 0 : index
    %c0_42 = arith.constant 0 : index
    %65 = vector.load %arg4[%c0_39, %c3_40, %c0_41, %c0_42] : memref<1x4x16x16xf32, #tpu.memory_space<vmem>>, vector<1x1x16x16xf32>
    %66 = vector.shape_cast %65 : vector<1x1x16x16xf32> to vector<16x16xf32>
    %67 = arith.index_cast %arg0 : i32 to index
    %c3_43 = arith.constant 3 : index
    %68 = memref.load %arg2[%67, %c3_43] : memref<2x4xf32, #tpu.memory_space<smem>>
    %69 = vector.broadcast %68 : f32 to vector<16x16xf32>
    %70 = arith.subf %66, %69 : vector<16x16xf32>
    %cst_44 = arith.constant 0.000000e+00 : f32
    %71 = vector.broadcast %cst_44 : f32 to vector<16x16xf32>
    %72 = arith.maximumf %70, %71 : vector<16x16xf32>
    %73 = arith.addf %55, %72 : vector<16x16xf32>
    %c0_45 = arith.constant 0 : index
    %c0_46 = arith.constant 0 : index
    %c0_47 = arith.constant 0 : index
    %74 = vector.load %arg5[%c0_45, %c0_46, %c0_47] : memref<1x16x16xf32, #tpu.memory_space<vmem>>, vector<1x16x16xf32>
    %75 = vector.shape_cast %74 : vector<1x16x16xf32> to vector<16x16xf32>
    %76 = arith.divf %64, %75 : vector<16x16xf32>
    %c0_48 = arith.constant 0 : index
    %c0_49 = arith.constant 0 : index
    %c0_50 = arith.constant 0 : index
    %77 = vector.load %arg6[%c0_48, %c0_49, %c0_50] : memref<1x16x16xf32, #tpu.memory_space<vmem>>, vector<1x16x16xf32>
    %78 = vector.shape_cast %77 : vector<1x16x16xf32> to vector<16x16xf32>
    %79 = arith.divf %73, %78 : vector<16x16xf32>
    %c0_51 = arith.constant 0 : index
    %c0_52 = arith.constant 0 : index
    %c0_53 = arith.constant 0 : index
    %c0_54 = arith.constant 0 : index
    %80 = vector.load %arg7[%c0_51, %c0_52, %c0_53, %c0_54] : memref<1x3x16x16xf32, #tpu.memory_space<vmem>>, vector<1x1x16x16xf32>
    %81 = vector.shape_cast %80 : vector<1x1x16x16xf32> to vector<16x16xf32>
    %c0_55 = arith.constant 0 : index
    %c1_56 = arith.constant 1 : index
    %c0_57 = arith.constant 0 : index
    %c0_58 = arith.constant 0 : index
    %82 = vector.load %arg7[%c0_55, %c1_56, %c0_57, %c0_58] : memref<1x3x16x16xf32, #tpu.memory_space<vmem>>, vector<1x1x16x16xf32>
    %83 = vector.shape_cast %82 : vector<1x1x16x16xf32> to vector<16x16xf32>
    %c0_59 = arith.constant 0 : index
    %c2_60 = arith.constant 2 : index
    %c0_61 = arith.constant 0 : index
    %c0_62 = arith.constant 0 : index
    %84 = vector.load %arg7[%c0_59, %c2_60, %c0_61, %c0_62] : memref<1x3x16x16xf32, #tpu.memory_space<vmem>>, vector<1x1x16x16xf32>
    %85 = vector.shape_cast %84 : vector<1x1x16x16xf32> to vector<16x16xf32>
    %c0_63 = arith.constant 0 : index
    %c0_64 = arith.constant 0 : index
    %c0_65 = arith.constant 0 : index
    %c0_66 = arith.constant 0 : index
    %86 = vector.load %arg8[%c0_63, %c0_64, %c0_65, %c0_66] : memref<1x3x16x16xf32, #tpu.memory_space<vmem>>, vector<1x1x16x16xf32>
    %87 = vector.shape_cast %86 : vector<1x1x16x16xf32> to vector<16x16xf32>
    %c0_67 = arith.constant 0 : index
    %c1_68 = arith.constant 1 : index
    %c0_69 = arith.constant 0 : index
    %c0_70 = arith.constant 0 : index
    %88 = vector.load %arg8[%c0_67, %c1_68, %c0_69, %c0_70] : memref<1x3x16x16xf32, #tpu.memory_space<vmem>>, vector<1x1x16x16xf32>
    %89 = vector.shape_cast %88 : vector<1x1x16x16xf32> to vector<16x16xf32>
    %c0_71 = arith.constant 0 : index
    %c2_72 = arith.constant 2 : index
    %c0_73 = arith.constant 0 : index
    %c0_74 = arith.constant 0 : index
    %90 = vector.load %arg8[%c0_71, %c2_72, %c0_73, %c0_74] : memref<1x3x16x16xf32, #tpu.memory_space<vmem>>, vector<1x1x16x16xf32>
    %91 = vector.shape_cast %90 : vector<1x1x16x16xf32> to vector<16x16xf32>
    %cst_75 = arith.constant 2.990000e-01 : f32
    %92 = vector.broadcast %cst_75 : f32 to vector<16x16xf32>
    %93 = arith.mulf %92, %81 : vector<16x16xf32>
    %cst_76 = arith.constant 5.870000e-01 : f32
    %94 = vector.broadcast %cst_76 : f32 to vector<16x16xf32>
    %95 = arith.mulf %94, %83 : vector<16x16xf32>
    %96 = arith.addf %93, %95 : vector<16x16xf32>
    %cst_77 = arith.constant 1.140000e-01 : f32
    %97 = vector.broadcast %cst_77 : f32 to vector<16x16xf32>
    %98 = arith.mulf %97, %85 : vector<16x16xf32>
    %99 = arith.addf %96, %98 : vector<16x16xf32>
    %cst_78 = arith.constant 2.550000e+02 : f32
    %100 = vector.broadcast %cst_78 : f32 to vector<16x16xf32>
    %101 = arith.mulf %100, %99 : vector<16x16xf32>
    %cst_79 = arith.constant 2.990000e-01 : f32
    %102 = vector.broadcast %cst_79 : f32 to vector<16x16xf32>
    %103 = arith.mulf %102, %87 : vector<16x16xf32>
    %cst_80 = arith.constant 5.870000e-01 : f32
    %104 = vector.broadcast %cst_80 : f32 to vector<16x16xf32>
    %105 = arith.mulf %104, %89 : vector<16x16xf32>
    %106 = arith.addf %103, %105 : vector<16x16xf32>
    %cst_81 = arith.constant 1.140000e-01 : f32
    %107 = vector.broadcast %cst_81 : f32 to vector<16x16xf32>
    %108 = arith.mulf %107, %91 : vector<16x16xf32>
    %109 = arith.addf %106, %108 : vector<16x16xf32>
    %cst_82 = arith.constant 2.550000e+02 : f32
    %110 = vector.broadcast %cst_82 : f32 to vector<16x16xf32>
    %111 = arith.mulf %110, %109 : vector<16x16xf32>
    %cst_83 = arith.constant 5.960000e-01 : f32
    %112 = vector.broadcast %cst_83 : f32 to vector<16x16xf32>
    %113 = arith.mulf %112, %81 : vector<16x16xf32>
    %cst_84 = arith.constant 2.740000e-01 : f32
    %114 = vector.broadcast %cst_84 : f32 to vector<16x16xf32>
    %115 = arith.mulf %114, %83 : vector<16x16xf32>
    %116 = arith.subf %113, %115 : vector<16x16xf32>
    %cst_85 = arith.constant 3.220000e-01 : f32
    %117 = vector.broadcast %cst_85 : f32 to vector<16x16xf32>
    %118 = arith.mulf %117, %85 : vector<16x16xf32>
    %119 = arith.subf %116, %118 : vector<16x16xf32>
    %cst_86 = arith.constant 2.550000e+02 : f32
    %120 = vector.broadcast %cst_86 : f32 to vector<16x16xf32>
    %121 = arith.mulf %120, %119 : vector<16x16xf32>
    %cst_87 = arith.constant 5.960000e-01 : f32
    %122 = vector.broadcast %cst_87 : f32 to vector<16x16xf32>
    %123 = arith.mulf %122, %87 : vector<16x16xf32>
    %cst_88 = arith.constant 2.740000e-01 : f32
    %124 = vector.broadcast %cst_88 : f32 to vector<16x16xf32>
    %125 = arith.mulf %124, %89 : vector<16x16xf32>
    %126 = arith.subf %123, %125 : vector<16x16xf32>
    %cst_89 = arith.constant 3.220000e-01 : f32
    %127 = vector.broadcast %cst_89 : f32 to vector<16x16xf32>
    %128 = arith.mulf %127, %91 : vector<16x16xf32>
    %129 = arith.subf %126, %128 : vector<16x16xf32>
    %cst_90 = arith.constant 2.550000e+02 : f32
    %130 = vector.broadcast %cst_90 : f32 to vector<16x16xf32>
    %131 = arith.mulf %130, %129 : vector<16x16xf32>
    %cst_91 = arith.constant 2.110000e-01 : f32
    %132 = vector.broadcast %cst_91 : f32 to vector<16x16xf32>
    %133 = arith.mulf %132, %81 : vector<16x16xf32>
    %cst_92 = arith.constant 5.230000e-01 : f32
    %134 = vector.broadcast %cst_92 : f32 to vector<16x16xf32>
    %135 = arith.mulf %134, %83 : vector<16x16xf32>
    %136 = arith.subf %133, %135 : vector<16x16xf32>
    %cst_93 = arith.constant 3.120000e-01 : f32
    %137 = vector.broadcast %cst_93 : f32 to vector<16x16xf32>
    %138 = arith.mulf %137, %85 : vector<16x16xf32>
    %139 = arith.addf %136, %138 : vector<16x16xf32>
    %cst_94 = arith.constant 2.550000e+02 : f32
    %140 = vector.broadcast %cst_94 : f32 to vector<16x16xf32>
    %141 = arith.mulf %140, %139 : vector<16x16xf32>
    %cst_95 = arith.constant 2.110000e-01 : f32
    %142 = vector.broadcast %cst_95 : f32 to vector<16x16xf32>
    %143 = arith.mulf %142, %87 : vector<16x16xf32>
    %cst_96 = arith.constant 5.230000e-01 : f32
    %144 = vector.broadcast %cst_96 : f32 to vector<16x16xf32>
    %145 = arith.mulf %144, %89 : vector<16x16xf32>
    %146 = arith.subf %143, %145 : vector<16x16xf32>
    %cst_97 = arith.constant 3.120000e-01 : f32
    %147 = vector.broadcast %cst_97 : f32 to vector<16x16xf32>
    %148 = arith.mulf %147, %91 : vector<16x16xf32>
    %149 = arith.addf %146, %148 : vector<16x16xf32>
    %cst_98 = arith.constant 2.550000e+02 : f32
    %150 = vector.broadcast %cst_98 : f32 to vector<16x16xf32>
    %151 = arith.mulf %150, %149 : vector<16x16xf32>
    %152 = tpu.iota {dimensions = array<i32: 0>} : vector<16x16xi32>
    %153 = tpu.iota {dimensions = array<i32: 1>} : vector<16x16xi32>
    %cst_99 = arith.constant 0.000000e+00 : f32
    %154 = vector.broadcast %cst_99 : f32 to vector<16x16xf32>
    %cst_100 = arith.constant 0.000000e+00 : f32
    %155 = vector.broadcast %cst_100 : f32 to vector<16x16xf32>
    %c1_i32 = arith.constant 1 : i32
    %156 = tpu.dynamic_rotate %101 by %c1_i32 dim 0 : vector<16x16xf32>, i32 -> vector<16x16xf32>
    %c1_i32_101 = arith.constant 1 : i32
    %157 = tpu.dynamic_rotate %156 by %c1_i32_101 dim 1 : vector<16x16xf32>, i32 -> vector<16x16xf32>
    %c0_i32 = arith.constant 0 : i32
    %158 = vector.broadcast %c0_i32 : i32 to vector<16x16xi32>
    %159 = arith.cmpi sgt, %152, %158 : vector<16x16xi32>
    %c0_i32_102 = arith.constant 0 : i32
    %160 = vector.broadcast %c0_i32_102 : i32 to vector<16x16xi32>
    %161 = arith.cmpi sgt, %153, %160 : vector<16x16xi32>
    %162 = arith.andi %159, %161 : vector<16x16xi1>
    %cst_103 = arith.constant 0.000000e+00 : f32
    %163 = vector.broadcast %cst_103 : f32 to vector<16x16xf32>
    %164 = arith.select %162, %157, %163 : vector<16x16xi1>, vector<16x16xf32>
    %cst_104 = arith.constant 1.875000e-01 : f32
    %165 = vector.broadcast %cst_104 : f32 to vector<16x16xf32>
    %166 = arith.mulf %165, %164 : vector<16x16xf32>
    %167 = arith.addf %154, %166 : vector<16x16xf32>
    %cst_105 = arith.constant 1.875000e-01 : f32
    %168 = vector.broadcast %cst_105 : f32 to vector<16x16xf32>
    %169 = arith.mulf %168, %164 : vector<16x16xf32>
    %170 = arith.addf %155, %169 : vector<16x16xf32>
    %c0_i32_106 = arith.constant 0 : i32
    %171 = vector.broadcast %c0_i32_106 : i32 to vector<16x16xi32>
    %172 = arith.cmpi sgt, %152, %171 : vector<16x16xi32>
    %cst_107 = arith.constant 0.000000e+00 : f32
    %173 = vector.broadcast %cst_107 : f32 to vector<16x16xf32>
    %174 = arith.select %172, %156, %173 : vector<16x16xi1>, vector<16x16xf32>
    %cst_108 = arith.constant 6.250000e-01 : f32
    %175 = vector.broadcast %cst_108 : f32 to vector<16x16xf32>
    %176 = arith.mulf %175, %174 : vector<16x16xf32>
    %177 = arith.addf %170, %176 : vector<16x16xf32>
    %c15_i32 = arith.constant 15 : i32
    %178 = tpu.dynamic_rotate %156 by %c15_i32 dim 1 : vector<16x16xf32>, i32 -> vector<16x16xf32>
    %c0_i32_109 = arith.constant 0 : i32
    %179 = vector.broadcast %c0_i32_109 : i32 to vector<16x16xi32>
    %180 = arith.cmpi sgt, %152, %179 : vector<16x16xi32>
    %c15_i32_110 = arith.constant 15 : i32
    %181 = vector.broadcast %c15_i32_110 : i32 to vector<16x16xi32>
    %182 = arith.cmpi slt, %153, %181 : vector<16x16xi32>
    %183 = arith.andi %180, %182 : vector<16x16xi1>
    %cst_111 = arith.constant 0.000000e+00 : f32
    %184 = vector.broadcast %cst_111 : f32 to vector<16x16xf32>
    %185 = arith.select %183, %178, %184 : vector<16x16xi1>, vector<16x16xf32>
    %cst_112 = arith.constant -1.875000e-01 : f32
    %186 = vector.broadcast %cst_112 : f32 to vector<16x16xf32>
    %187 = arith.mulf %186, %185 : vector<16x16xf32>
    %188 = arith.addf %167, %187 : vector<16x16xf32>
    %cst_113 = arith.constant 1.875000e-01 : f32
    %189 = vector.broadcast %cst_113 : f32 to vector<16x16xf32>
    %190 = arith.mulf %189, %185 : vector<16x16xf32>
    %191 = arith.addf %177, %190 : vector<16x16xf32>
    %c1_i32_114 = arith.constant 1 : i32
    %192 = tpu.dynamic_rotate %101 by %c1_i32_114 dim 1 : vector<16x16xf32>, i32 -> vector<16x16xf32>
    %c0_i32_115 = arith.constant 0 : i32
    %193 = vector.broadcast %c0_i32_115 : i32 to vector<16x16xi32>
    %194 = arith.cmpi sgt, %153, %193 : vector<16x16xi32>
    %cst_116 = arith.constant 0.000000e+00 : f32
    %195 = vector.broadcast %cst_116 : f32 to vector<16x16xf32>
    %196 = arith.select %194, %192, %195 : vector<16x16xi1>, vector<16x16xf32>
    %cst_117 = arith.constant 6.250000e-01 : f32
    %197 = vector.broadcast %cst_117 : f32 to vector<16x16xf32>
    %198 = arith.mulf %197, %196 : vector<16x16xf32>
    %199 = arith.addf %188, %198 : vector<16x16xf32>
    %c15_i32_118 = arith.constant 15 : i32
    %200 = tpu.dynamic_rotate %101 by %c15_i32_118 dim 1 : vector<16x16xf32>, i32 -> vector<16x16xf32>
    %c15_i32_119 = arith.constant 15 : i32
    %201 = vector.broadcast %c15_i32_119 : i32 to vector<16x16xi32>
    %202 = arith.cmpi slt, %153, %201 : vector<16x16xi32>
    %cst_120 = arith.constant 0.000000e+00 : f32
    %203 = vector.broadcast %cst_120 : f32 to vector<16x16xf32>
    %204 = arith.select %202, %200, %203 : vector<16x16xi1>, vector<16x16xf32>
    %cst_121 = arith.constant -6.250000e-01 : f32
    %205 = vector.broadcast %cst_121 : f32 to vector<16x16xf32>
    %206 = arith.mulf %205, %204 : vector<16x16xf32>
    %207 = arith.addf %199, %206 : vector<16x16xf32>
    %c15_i32_122 = arith.constant 15 : i32
    %208 = tpu.dynamic_rotate %101 by %c15_i32_122 dim 0 : vector<16x16xf32>, i32 -> vector<16x16xf32>
    %c1_i32_123 = arith.constant 1 : i32
    %209 = tpu.dynamic_rotate %208 by %c1_i32_123 dim 1 : vector<16x16xf32>, i32 -> vector<16x16xf32>
    %c15_i32_124 = arith.constant 15 : i32
    %210 = vector.broadcast %c15_i32_124 : i32 to vector<16x16xi32>
    %211 = arith.cmpi slt, %152, %210 : vector<16x16xi32>
    %c0_i32_125 = arith.constant 0 : i32
    %212 = vector.broadcast %c0_i32_125 : i32 to vector<16x16xi32>
    %213 = arith.cmpi sgt, %153, %212 : vector<16x16xi32>
    %214 = arith.andi %211, %213 : vector<16x16xi1>
    %cst_126 = arith.constant 0.000000e+00 : f32
    %215 = vector.broadcast %cst_126 : f32 to vector<16x16xf32>
    %216 = arith.select %214, %209, %215 : vector<16x16xi1>, vector<16x16xf32>
    %cst_127 = arith.constant 1.875000e-01 : f32
    %217 = vector.broadcast %cst_127 : f32 to vector<16x16xf32>
    %218 = arith.mulf %217, %216 : vector<16x16xf32>
    %219 = arith.addf %207, %218 : vector<16x16xf32>
    %cst_128 = arith.constant -1.875000e-01 : f32
    %220 = vector.broadcast %cst_128 : f32 to vector<16x16xf32>
    %221 = arith.mulf %220, %216 : vector<16x16xf32>
    %222 = arith.addf %191, %221 : vector<16x16xf32>
    %c15_i32_129 = arith.constant 15 : i32
    %223 = vector.broadcast %c15_i32_129 : i32 to vector<16x16xi32>
    %224 = arith.cmpi slt, %152, %223 : vector<16x16xi32>
    %cst_130 = arith.constant 0.000000e+00 : f32
    %225 = vector.broadcast %cst_130 : f32 to vector<16x16xf32>
    %226 = arith.select %224, %208, %225 : vector<16x16xi1>, vector<16x16xf32>
    %cst_131 = arith.constant -6.250000e-01 : f32
    %227 = vector.broadcast %cst_131 : f32 to vector<16x16xf32>
    %228 = arith.mulf %227, %226 : vector<16x16xf32>
    %229 = arith.addf %222, %228 : vector<16x16xf32>
    %c15_i32_132 = arith.constant 15 : i32
    %230 = tpu.dynamic_rotate %208 by %c15_i32_132 dim 1 : vector<16x16xf32>, i32 -> vector<16x16xf32>
    %c15_i32_133 = arith.constant 15 : i32
    %231 = vector.broadcast %c15_i32_133 : i32 to vector<16x16xi32>
    %232 = arith.cmpi slt, %152, %231 : vector<16x16xi32>
    %c15_i32_134 = arith.constant 15 : i32
    %233 = vector.broadcast %c15_i32_134 : i32 to vector<16x16xi32>
    %234 = arith.cmpi slt, %153, %233 : vector<16x16xi32>
    %235 = arith.andi %232, %234 : vector<16x16xi1>
    %cst_135 = arith.constant 0.000000e+00 : f32
    %236 = vector.broadcast %cst_135 : f32 to vector<16x16xf32>
    %237 = arith.select %235, %230, %236 : vector<16x16xi1>, vector<16x16xf32>
    %cst_136 = arith.constant -1.875000e-01 : f32
    %238 = vector.broadcast %cst_136 : f32 to vector<16x16xf32>
    %239 = arith.mulf %238, %237 : vector<16x16xf32>
    %240 = arith.addf %219, %239 : vector<16x16xf32>
    %cst_137 = arith.constant -1.875000e-01 : f32
    %241 = vector.broadcast %cst_137 : f32 to vector<16x16xf32>
    %242 = arith.mulf %241, %237 : vector<16x16xf32>
    %243 = arith.addf %229, %242 : vector<16x16xf32>
    %cst_138 = arith.constant 0.000000e+00 : f32
    %244 = vector.broadcast %cst_138 : f32 to vector<16x16xf32>
    %cst_139 = arith.constant 0.000000e+00 : f32
    %245 = vector.broadcast %cst_139 : f32 to vector<16x16xf32>
    %c1_i32_140 = arith.constant 1 : i32
    %246 = tpu.dynamic_rotate %111 by %c1_i32_140 dim 0 : vector<16x16xf32>, i32 -> vector<16x16xf32>
    %c1_i32_141 = arith.constant 1 : i32
    %247 = tpu.dynamic_rotate %246 by %c1_i32_141 dim 1 : vector<16x16xf32>, i32 -> vector<16x16xf32>
    %c0_i32_142 = arith.constant 0 : i32
    %248 = vector.broadcast %c0_i32_142 : i32 to vector<16x16xi32>
    %249 = arith.cmpi sgt, %152, %248 : vector<16x16xi32>
    %c0_i32_143 = arith.constant 0 : i32
    %250 = vector.broadcast %c0_i32_143 : i32 to vector<16x16xi32>
    %251 = arith.cmpi sgt, %153, %250 : vector<16x16xi32>
    %252 = arith.andi %249, %251 : vector<16x16xi1>
    %cst_144 = arith.constant 0.000000e+00 : f32
    %253 = vector.broadcast %cst_144 : f32 to vector<16x16xf32>
    %254 = arith.select %252, %247, %253 : vector<16x16xi1>, vector<16x16xf32>
    %cst_145 = arith.constant 1.875000e-01 : f32
    %255 = vector.broadcast %cst_145 : f32 to vector<16x16xf32>
    %256 = arith.mulf %255, %254 : vector<16x16xf32>
    %257 = arith.addf %244, %256 : vector<16x16xf32>
    %cst_146 = arith.constant 1.875000e-01 : f32
    %258 = vector.broadcast %cst_146 : f32 to vector<16x16xf32>
    %259 = arith.mulf %258, %254 : vector<16x16xf32>
    %260 = arith.addf %245, %259 : vector<16x16xf32>
    %c0_i32_147 = arith.constant 0 : i32
    %261 = vector.broadcast %c0_i32_147 : i32 to vector<16x16xi32>
    %262 = arith.cmpi sgt, %152, %261 : vector<16x16xi32>
    %cst_148 = arith.constant 0.000000e+00 : f32
    %263 = vector.broadcast %cst_148 : f32 to vector<16x16xf32>
    %264 = arith.select %262, %246, %263 : vector<16x16xi1>, vector<16x16xf32>
    %cst_149 = arith.constant 6.250000e-01 : f32
    %265 = vector.broadcast %cst_149 : f32 to vector<16x16xf32>
    %266 = arith.mulf %265, %264 : vector<16x16xf32>
    %267 = arith.addf %260, %266 : vector<16x16xf32>
    %c15_i32_150 = arith.constant 15 : i32
    %268 = tpu.dynamic_rotate %246 by %c15_i32_150 dim 1 : vector<16x16xf32>, i32 -> vector<16x16xf32>
    %c0_i32_151 = arith.constant 0 : i32
    %269 = vector.broadcast %c0_i32_151 : i32 to vector<16x16xi32>
    %270 = arith.cmpi sgt, %152, %269 : vector<16x16xi32>
    %c15_i32_152 = arith.constant 15 : i32
    %271 = vector.broadcast %c15_i32_152 : i32 to vector<16x16xi32>
    %272 = arith.cmpi slt, %153, %271 : vector<16x16xi32>
    %273 = arith.andi %270, %272 : vector<16x16xi1>
    %cst_153 = arith.constant 0.000000e+00 : f32
    %274 = vector.broadcast %cst_153 : f32 to vector<16x16xf32>
    %275 = arith.select %273, %268, %274 : vector<16x16xi1>, vector<16x16xf32>
    %cst_154 = arith.constant -1.875000e-01 : f32
    %276 = vector.broadcast %cst_154 : f32 to vector<16x16xf32>
    %277 = arith.mulf %276, %275 : vector<16x16xf32>
    %278 = arith.addf %257, %277 : vector<16x16xf32>
    %cst_155 = arith.constant 1.875000e-01 : f32
    %279 = vector.broadcast %cst_155 : f32 to vector<16x16xf32>
    %280 = arith.mulf %279, %275 : vector<16x16xf32>
    %281 = arith.addf %267, %280 : vector<16x16xf32>
    %c1_i32_156 = arith.constant 1 : i32
    %282 = tpu.dynamic_rotate %111 by %c1_i32_156 dim 1 : vector<16x16xf32>, i32 -> vector<16x16xf32>
    %c0_i32_157 = arith.constant 0 : i32
    %283 = vector.broadcast %c0_i32_157 : i32 to vector<16x16xi32>
    %284 = arith.cmpi sgt, %153, %283 : vector<16x16xi32>
    %cst_158 = arith.constant 0.000000e+00 : f32
    %285 = vector.broadcast %cst_158 : f32 to vector<16x16xf32>
    %286 = arith.select %284, %282, %285 : vector<16x16xi1>, vector<16x16xf32>
    %cst_159 = arith.constant 6.250000e-01 : f32
    %287 = vector.broadcast %cst_159 : f32 to vector<16x16xf32>
    %288 = arith.mulf %287, %286 : vector<16x16xf32>
    %289 = arith.addf %278, %288 : vector<16x16xf32>
    %c15_i32_160 = arith.constant 15 : i32
    %290 = tpu.dynamic_rotate %111 by %c15_i32_160 dim 1 : vector<16x16xf32>, i32 -> vector<16x16xf32>
    %c15_i32_161 = arith.constant 15 : i32
    %291 = vector.broadcast %c15_i32_161 : i32 to vector<16x16xi32>
    %292 = arith.cmpi slt, %153, %291 : vector<16x16xi32>
    %cst_162 = arith.constant 0.000000e+00 : f32
    %293 = vector.broadcast %cst_162 : f32 to vector<16x16xf32>
    %294 = arith.select %292, %290, %293 : vector<16x16xi1>, vector<16x16xf32>
    %cst_163 = arith.constant -6.250000e-01 : f32
    %295 = vector.broadcast %cst_163 : f32 to vector<16x16xf32>
    %296 = arith.mulf %295, %294 : vector<16x16xf32>
    %297 = arith.addf %289, %296 : vector<16x16xf32>
    %c15_i32_164 = arith.constant 15 : i32
    %298 = tpu.dynamic_rotate %111 by %c15_i32_164 dim 0 : vector<16x16xf32>, i32 -> vector<16x16xf32>
    %c1_i32_165 = arith.constant 1 : i32
    %299 = tpu.dynamic_rotate %298 by %c1_i32_165 dim 1 : vector<16x16xf32>, i32 -> vector<16x16xf32>
    %c15_i32_166 = arith.constant 15 : i32
    %300 = vector.broadcast %c15_i32_166 : i32 to vector<16x16xi32>
    %301 = arith.cmpi slt, %152, %300 : vector<16x16xi32>
    %c0_i32_167 = arith.constant 0 : i32
    %302 = vector.broadcast %c0_i32_167 : i32 to vector<16x16xi32>
    %303 = arith.cmpi sgt, %153, %302 : vector<16x16xi32>
    %304 = arith.andi %301, %303 : vector<16x16xi1>
    %cst_168 = arith.constant 0.000000e+00 : f32
    %305 = vector.broadcast %cst_168 : f32 to vector<16x16xf32>
    %306 = arith.select %304, %299, %305 : vector<16x16xi1>, vector<16x16xf32>
    %cst_169 = arith.constant 1.875000e-01 : f32
    %307 = vector.broadcast %cst_169 : f32 to vector<16x16xf32>
    %308 = arith.mulf %307, %306 : vector<16x16xf32>
    %309 = arith.addf %297, %308 : vector<16x16xf32>
    %cst_170 = arith.constant -1.875000e-01 : f32
    %310 = vector.broadcast %cst_170 : f32 to vector<16x16xf32>
    %311 = arith.mulf %310, %306 : vector<16x16xf32>
    %312 = arith.addf %281, %311 : vector<16x16xf32>
    %c15_i32_171 = arith.constant 15 : i32
    %313 = vector.broadcast %c15_i32_171 : i32 to vector<16x16xi32>
    %314 = arith.cmpi slt, %152, %313 : vector<16x16xi32>
    %cst_172 = arith.constant 0.000000e+00 : f32
    %315 = vector.broadcast %cst_172 : f32 to vector<16x16xf32>
    %316 = arith.select %314, %298, %315 : vector<16x16xi1>, vector<16x16xf32>
    %cst_173 = arith.constant -6.250000e-01 : f32
    %317 = vector.broadcast %cst_173 : f32 to vector<16x16xf32>
    %318 = arith.mulf %317, %316 : vector<16x16xf32>
    %319 = arith.addf %312, %318 : vector<16x16xf32>
    %c15_i32_174 = arith.constant 15 : i32
    %320 = tpu.dynamic_rotate %298 by %c15_i32_174 dim 1 : vector<16x16xf32>, i32 -> vector<16x16xf32>
    %c15_i32_175 = arith.constant 15 : i32
    %321 = vector.broadcast %c15_i32_175 : i32 to vector<16x16xi32>
    %322 = arith.cmpi slt, %152, %321 : vector<16x16xi32>
    %c15_i32_176 = arith.constant 15 : i32
    %323 = vector.broadcast %c15_i32_176 : i32 to vector<16x16xi32>
    %324 = arith.cmpi slt, %153, %323 : vector<16x16xi32>
    %325 = arith.andi %322, %324 : vector<16x16xi1>
    %cst_177 = arith.constant 0.000000e+00 : f32
    %326 = vector.broadcast %cst_177 : f32 to vector<16x16xf32>
    %327 = arith.select %325, %320, %326 : vector<16x16xi1>, vector<16x16xf32>
    %cst_178 = arith.constant -1.875000e-01 : f32
    %328 = vector.broadcast %cst_178 : f32 to vector<16x16xf32>
    %329 = arith.mulf %328, %327 : vector<16x16xf32>
    %330 = arith.addf %309, %329 : vector<16x16xf32>
    %cst_179 = arith.constant -1.875000e-01 : f32
    %331 = vector.broadcast %cst_179 : f32 to vector<16x16xf32>
    %332 = arith.mulf %331, %327 : vector<16x16xf32>
    %333 = arith.addf %319, %332 : vector<16x16xf32>
    %334 = arith.mulf %240, %240 : vector<16x16xf32>
    %335 = arith.mulf %243, %243 : vector<16x16xf32>
    %336 = arith.addf %334, %335 : vector<16x16xf32>
    %cst_180 = arith.constant 9.99999996E-13 : f32
    %337 = vector.broadcast %cst_180 : f32 to vector<16x16xf32>
    %338 = arith.addf %336, %337 : vector<16x16xf32>
    %339 = math.sqrt %338 : vector<16x16xf32>
    %340 = arith.mulf %330, %330 : vector<16x16xf32>
    %341 = arith.mulf %333, %333 : vector<16x16xf32>
    %342 = arith.addf %340, %341 : vector<16x16xf32>
    %cst_181 = arith.constant 9.99999996E-13 : f32
    %343 = vector.broadcast %cst_181 : f32 to vector<16x16xf32>
    %344 = arith.addf %342, %343 : vector<16x16xf32>
    %345 = math.sqrt %344 : vector<16x16xf32>
    %cst_182 = arith.constant 2.000000e+00 : f32
    %346 = vector.broadcast %cst_182 : f32 to vector<16x16xf32>
    %347 = arith.mulf %346, %76 : vector<16x16xf32>
    %348 = arith.mulf %347, %79 : vector<16x16xf32>
    %cst_183 = arith.constant 8.500000e-01 : f32
    %349 = vector.broadcast %cst_183 : f32 to vector<16x16xf32>
    %350 = arith.addf %348, %349 : vector<16x16xf32>
    %351 = arith.mulf %76, %76 : vector<16x16xf32>
    %352 = arith.mulf %79, %79 : vector<16x16xf32>
    %353 = arith.addf %351, %352 : vector<16x16xf32>
    %cst_184 = arith.constant 8.500000e-01 : f32
    %354 = vector.broadcast %cst_184 : f32 to vector<16x16xf32>
    %355 = arith.addf %353, %354 : vector<16x16xf32>
    %356 = arith.divf %350, %355 : vector<16x16xf32>
    %cst_185 = arith.constant 2.000000e+00 : f32
    %357 = vector.broadcast %cst_185 : f32 to vector<16x16xf32>
    %358 = arith.mulf %357, %339 : vector<16x16xf32>
    %359 = arith.mulf %358, %345 : vector<16x16xf32>
    %cst_186 = arith.constant 1.600000e+02 : f32
    %360 = vector.broadcast %cst_186 : f32 to vector<16x16xf32>
    %361 = arith.addf %359, %360 : vector<16x16xf32>
    %362 = arith.mulf %339, %339 : vector<16x16xf32>
    %363 = arith.mulf %345, %345 : vector<16x16xf32>
    %364 = arith.addf %362, %363 : vector<16x16xf32>
    %cst_187 = arith.constant 1.600000e+02 : f32
    %365 = vector.broadcast %cst_187 : f32 to vector<16x16xf32>
    %366 = arith.addf %364, %365 : vector<16x16xf32>
    %367 = arith.divf %361, %366 : vector<16x16xf32>
    %368 = arith.maximumf %76, %79 : vector<16x16xf32>
    %cst_188 = arith.constant 2.000000e+00 : f32
    %369 = vector.broadcast %cst_188 : f32 to vector<16x16xf32>
    %370 = arith.mulf %369, %121 : vector<16x16xf32>
    %371 = arith.mulf %370, %131 : vector<16x16xf32>
    %cst_189 = arith.constant 2.000000e+02 : f32
    %372 = vector.broadcast %cst_189 : f32 to vector<16x16xf32>
    %373 = arith.addf %371, %372 : vector<16x16xf32>
    %374 = arith.mulf %121, %121 : vector<16x16xf32>
    %375 = arith.mulf %131, %131 : vector<16x16xf32>
    %376 = arith.addf %374, %375 : vector<16x16xf32>
    %cst_190 = arith.constant 2.000000e+02 : f32
    %377 = vector.broadcast %cst_190 : f32 to vector<16x16xf32>
    %378 = arith.addf %376, %377 : vector<16x16xf32>
    %379 = arith.divf %373, %378 : vector<16x16xf32>
    %cst_191 = arith.constant 2.000000e+00 : f32
    %380 = vector.broadcast %cst_191 : f32 to vector<16x16xf32>
    %381 = arith.mulf %380, %141 : vector<16x16xf32>
    %382 = arith.mulf %381, %151 : vector<16x16xf32>
    %cst_192 = arith.constant 2.000000e+02 : f32
    %383 = vector.broadcast %cst_192 : f32 to vector<16x16xf32>
    %384 = arith.addf %382, %383 : vector<16x16xf32>
    %385 = arith.mulf %141, %141 : vector<16x16xf32>
    %386 = arith.mulf %151, %151 : vector<16x16xf32>
    %387 = arith.addf %385, %386 : vector<16x16xf32>
    %cst_193 = arith.constant 2.000000e+02 : f32
    %388 = vector.broadcast %cst_193 : f32 to vector<16x16xf32>
    %389 = arith.addf %387, %388 : vector<16x16xf32>
    %390 = arith.divf %384, %389 : vector<16x16xf32>
    %391 = arith.mulf %379, %390 : vector<16x16xf32>
    %392 = math.absf %391 : vector<16x16xf32>
    %cst_194 = arith.constant 9.99999996E-13 : f32
    %393 = vector.broadcast %cst_194 : f32 to vector<16x16xf32>
    %394 = arith.addf %392, %393 : vector<16x16xf32>
    %395 = math.log %394 : vector<16x16xf32>
    %cst_195 = arith.constant 3.000000e-02 : f32
    %396 = vector.broadcast %cst_195 : f32 to vector<16x16xf32>
    %397 = arith.mulf %396, %395 : vector<16x16xf32>
    %398 = math.exp %397 : vector<16x16xf32>
    %399 = arith.mulf %367, %356 : vector<16x16xf32>
    %400 = arith.mulf %399, %368 : vector<16x16xf32>
    %401 = arith.mulf %400, %398 : vector<16x16xf32>
    %402 = vector.shape_cast %401 : vector<16x16xf32> to vector<1x16x16xf32>
    %cst_196 = arith.constant dense<0.000000e+00> : vector<1xf32>
    %403 = vector.multi_reduction <add>, %402, %cst_196 [1, 2] : vector<1x16x16xf32> to vector<1xf32>
    %404 = vector.shape_cast %403 : vector<1xf32> to vector<1x1x1xf32>
    %405 = vector.extract %404[0, 0, 0] : f32 from vector<1x1x1xf32>
    %406 = vector.shape_cast %368 : vector<16x16xf32> to vector<1x16x16xf32>
    %cst_197 = arith.constant dense<0.000000e+00> : vector<1xf32>
    %407 = vector.multi_reduction <add>, %406, %cst_197 [1, 2] : vector<1x16x16xf32> to vector<1xf32>
    %408 = vector.shape_cast %407 : vector<1xf32> to vector<1x1x1xf32>
    %409 = vector.extract %408[0, 0, 0] : f32 from vector<1x1x1xf32>
    %410 = tpu.iota {dimensions = array<i32: 0>} : vector<2x128xi32>
    %c0_i32_198 = arith.constant 0 : i32
    %411 = vector.broadcast %c0_i32_198 : i32 to vector<2x128xi32>
    %412 = arith.cmpi eq, %410, %411 : vector<2x128xi32>
    %413 = vector.broadcast %405 : f32 to vector<2x128xf32>
    %414 = vector.broadcast %409 : f32 to vector<2x128xf32>
    %415 = arith.select %412, %413, %414 : vector<2x128xi1>, vector<2x128xf32>
    %c0_199 = arith.constant 0 : index
    %c0_200 = arith.constant 0 : index
    %c0_201 = arith.constant 0 : index
    %416 = vector.load %arg9[%c0_199, %c0_200, %c0_201] : memref<1x2x128xf32, #tpu.memory_space<vmem>>, vector<1x2x128xf32>
    %417 = vector.shape_cast %416 : vector<1x2x128xf32> to vector<2x128xf32>
    %418 = vector.shape_cast %415 : vector<2x128xf32> to vector<1x2x128xf32>
    tpu.vector_store %arg9[%c0_199, %c0_200, %c0_201], %418 {strides = array<i32>} : memref<1x2x128xf32, #tpu.memory_space<vmem>>, vector<1x2x128xf32>,
    return
  }
  func.func @transform_0(%arg0: i32) -> (i32, i32) {
    %c0_i32 = arith.constant 0 : i32
    %c0_i32_0 = arith.constant 0 : i32
    %c0_i32_1 = arith.constant 0 : i32
    return %c0_i32, %c0_i32_0 : i32, i32
  }
  func.func @transform_1(%arg0: i32) -> (i32, i32) {
    %c0_i32 = arith.constant 0 : i32
    %c0_i32_0 = arith.constant 0 : i32
    %c0_i32_1 = arith.constant 0 : i32
    return %c0_i32, %c0_i32_0 : i32, i32
  }
  func.func @transform_2(%arg0: i32) -> (i32, i32, i32, i32) {
    %c0_i32 = arith.constant 0 : i32
    %0 = arith.addi %arg0, %c0_i32 : i32
    %c0_i32_0 = arith.constant 0 : i32
    %c0_i32_1 = arith.constant 0 : i32
    %c0_i32_2 = arith.constant 0 : i32
    %c0_i32_3 = arith.constant 0 : i32
    return %0, %c0_i32_0, %c0_i32_1, %c0_i32_2 : i32, i32, i32, i32
  }
  func.func @transform_3(%arg0: i32) -> (i32, i32, i32, i32) {
    %c2_i32 = arith.constant 2 : i32
    %0 = arith.addi %arg0, %c2_i32 : i32
    %c0_i32 = arith.constant 0 : i32
    %c0_i32_0 = arith.constant 0 : i32
    %c0_i32_1 = arith.constant 0 : i32
    %c0_i32_2 = arith.constant 0 : i32
    return %0, %c0_i32, %c0_i32_0, %c0_i32_1 : i32, i32, i32, i32
  }
  func.func @transform_4(%arg0: i32) -> (i32, i32, i32) {
    %c0_i32 = arith.constant 0 : i32
    %0 = arith.addi %arg0, %c0_i32 : i32
    %c0_i32_0 = arith.constant 0 : i32
    %c0_i32_1 = arith.constant 0 : i32
    %c0_i32_2 = arith.constant 0 : i32
    return %0, %c0_i32_0, %c0_i32_1 : i32, i32, i32
  }
  func.func @transform_5(%arg0: i32) -> (i32, i32, i32) {
    %c2_i32 = arith.constant 2 : i32
    %0 = arith.addi %arg0, %c2_i32 : i32
    %c0_i32 = arith.constant 0 : i32
    %c0_i32_0 = arith.constant 0 : i32
    %c0_i32_1 = arith.constant 0 : i32
    return %0, %c0_i32, %c0_i32_0 : i32, i32, i32
  }
  func.func @transform_6(%arg0: i32) -> (i32, i32, i32, i32) {
    %c0_i32 = arith.constant 0 : i32
    %c0_i32_0 = arith.constant 0 : i32
    %c0_i32_1 = arith.constant 0 : i32
    %c0_i32_2 = arith.constant 0 : i32
    return %arg0, %c0_i32, %c0_i32_0, %c0_i32_1 : i32, i32, i32, i32
  }
  func.func @transform_7(%arg0: i32) -> (i32, i32, i32, i32) {
    %c0_i32 = arith.constant 0 : i32
    %c0_i32_0 = arith.constant 0 : i32
    %c0_i32_1 = arith.constant 0 : i32
    %c0_i32_2 = arith.constant 0 : i32
    return %arg0, %c0_i32, %c0_i32_0, %c0_i32_1 : i32, i32, i32, i32
  }
  func.func @transform_8(%arg0: i32) -> (i32, i32, i32) {
    %c0_i32 = arith.constant 0 : i32
    %c0_i32_0 = arith.constant 0 : i32
    %c0_i32_1 = arith.constant 0 : i32
    return %arg0, %c0_i32, %c0_i32_0 : i32, i32, i32
  }
}

</mosaic_0001>

<bundles_post_ra>
// kernel: fsim_loss.2
= control target key start
LH: loop header
LB: loop body
LE: loop exit
PB: predicated region body
PF: predicated region fallthrough
CT: control target
= control target key end

     0   :  { %s3722_s0 = inlined_call_operand.hbm [shape: f32[4,16,16], index: 0, kind: input, shape index: {}]   ;;  %s3723_s1 = inlined_call_operand.hbm [shape: f32[16,16], index: 1, kind: input, shape index: {}]   ;;  %s3724_s2 = inlined_call_operand.hbm [shape: f32[16,16], index: 2, kind: input, shape index: {}]   ;;  %s3725_s3 = inlined_call_operand.hbm [shape: bf16[32,32], index: 3, kind: input, shape index: {}]   ;;  %s3726_s4 = inlined_call_operand.hbm [shape: bf16[32,32], index: 4, kind: input, shape index: {}]   ;;  %s3727_s5 = inlined_call_operand.hbm [shape: bf16[16,16,16], index: 5, kind: input, shape index: {}]   ;;  %s3728_s6 = inlined_call_operand.hbm [shape: f32[4,4,16,16], index: 6, kind: output, shape index: {0}]   ;;  %s3729_s7 = inlined_call_operand.hbm [shape: f32[4,16,16], index: 7, kind: output, shape index: {1}]   ;;  %s3730_s8 = inlined_call_operand.hbm [shape: f32[4,4,16,16], index: 8, kind: output, shape index: {2}]  }
   0x1   :  { %3755 = sst [smem:[#allocation39_spill]] %s3722_s0 }
   0x2   :  { %3756 = sst [smem:[#allocation40_spill]] %s3723_s1 }
   0x3   :  { %3757 = sst [smem:[#allocation41_spill]] %s3724_s2 }
   0x4   :  { %3758 = sst [smem:[#allocation42_spill]] %s3725_s3 }
   0x5   :  { %3759 = sst [smem:[#allocation43_spill]] %s3726_s4 }
   0x6   :  { %3760 = sst [smem:[#allocation44_spill]] %s3727_s5 }
   0x7   :  { %3761 = sst [smem:[#allocation45_spill]] %s3728_s6 }
   0x8   :  { %3762 = sst [smem:[#allocation46_spill]] %s3729_s7 }
   0x9   :  { %3763 = sst [smem:[#allocation47_spill]] %s3730_s8 }
   0xa   :  { %14 = vsyncpa [#allocation8], 0 }
   0xb   :  { %16 = vsyncpa [#allocation8 + $0x1], 0 }
   0xc   :  { %17 = vsyncpa [#allocation11], 0 }
   0xd   :  { %18 = vsyncpa [#allocation14], 0 }
   0xe   :  { %19 = vsyncpa [#allocation17], 0 }
   0xf   :  { %20 = vsyncpa [#allocation9], 0 }
  0x10   :  { %22 = vsyncpa [#allocation9 + $0x1], 0 }
  0x11   :  { %23 = vsyncpa [#allocation20], 0 }
  0x12   :  { %25 = vsyncpa [#allocation20 + $0x1], 0  ;;  %s2899_s27 = smov 0   ;;  %s2901_s28 = smov 0  }
  0x13   :  { %s2903_s29 = smov 0   ;;  %s2905_s30 = smov 0  }
  0x14   :  { %s2907_s9 = smov 0   ;;  %s2909_s10 = smov 0  }
  0x15   :  { %s2911_s11 = smov 0   ;;  %s2913_s12 = smov 0  }
  0x16   :  { %s2915_s13 = smov 0   ;;  %s2917_s14 = smov 0  }
  0x17   :  { %s2919_s15 = smov 0  }
  0x18 LB: > { %3764 = sst [smem:[#allocation29_spill]] %s2803_s9  ;;  %s2955_s16 = sadd.s32 4294967295, %s2827_s15   ;;  %s2827_s15 = sphi %s2919_s15, %s31_s15   ;;  %s2823_s14 = sphi %s2917_s14, %s3822_s14   ;;  %s2819_s13 = sphi %s2915_s13, %s3821_s13   ;;  %s2815_s12 = sphi %s2913_s12, %s3820_s12   ;;  %s2811_s11 = sphi %s2911_s11, %s3819_s11   ;;  %s2807_s10 = sphi %s2909_s10, %s3818_s10   ;;  %s2803_s9 = sphi %s2907_s9, %s3817_s9   ;;  %s2799_s30 = sphi %s2905_s30, %s3816_s30   ;;  %s2795_s29 = sphi %s2903_s29, %s3825_s29   ;;  %s2791_s28 = sphi %s2901_s28, %s3824_s28   ;;  %s2787_s27 = sphi %s2899_s27, %s3823_s27  }
  0x19   : > { %3765 = sst [smem:[#allocation30_spill]] %s2807_s10  ;;  %p2003_p0 = scmp.ge.s32.totalorder %s2827_s15, 1 }
  0x1a   : > { %3766 = sst [smem:[#allocation31_spill]] %s2811_s11  ;;  %p3733_p1 = scmp.eq.s32.totalorder %s2955_s16, 0 }
  0x1b   : > { %3767 = sst [smem:[#allocation32_spill]] %s2815_s12  ;;  %p261_p2 = scmp.lt.s32.totalorder %s2827_s15, 17 }
  0x1c   : > { %3768 = sst [smem:[#allocation33_spill]] %s2819_s13  ;;  %s2829_s18 = smov [#allocation10]  }
  0x1d   : > { %3769 = sst [smem:[#allocation34_spill]] %s2823_s14  ;;  %p2960_p3 = pnand %p2003_p0, %p261_p2 }
  0x1e   : > { %s273_s19 = sshll.u32 %s2829_s18, 4  ;;  %s2830_s21 = smov [#allocation13]   ;;  %s274_s19 = int_to_ptr.vmem [resolvable:$true] %s273_s19 }
  0x1f   : > { %s3770_s17 = scalar_select %p2960_p3, 1, 0 }
  0x20   : > { %p2276_p4 = pneg %p2960_p3  ;;  %s299_s22 = sshll.u32 %s2830_s21, 4  ;;  %s2972_s22 = int_to_ptr.vmem [resolvable:$true] %s299_s22 }
  0x21   : > { %3771 = sst [smem:[#allocation35_spill]] %s3770_s17  ;;  %s3773_s1 = sld [smem:[#allocation40_spill]] }
  0x22   : > { %p2968_p5 = pnand %p2276_p4, %p3733_p1 }
  0x24   : > { %p2982_p7 = pneg %p2968_p5 }
  0x27   : > { %s2459_s25 = scalar_lea.hbm %s3773_s1, 256 }
  0x28   : > { %p2460_p6 = scmp.ne.s32.totalorder %s3773_s1, %s2459_s25  ;;  %p2466_p10 = scmp.lt.u32.totalorder %s2459_s25, %s3773_s1 }
  0x2a   : > { %p2462_p8 = pnand %p2982_p7, %p2460_p6 }
  0x2c   : > { %p2463_p9 = pneg %p2462_p8 }
  0x2e   : > { %p2468_p11 = pnand %p2466_p10, %p2463_p9 }
  0x30   : > { %2471 = shalt.err (!%p2468_p11)
}
  0x31   : > { %s2472_s23 = scalar_lea.vmem %s274_s19, 256  ;;  %p2480_p2 = scmp.lt.s32.totalorder %s274_s19, %s274_s19 }
  0x32   : > { %p2473_p12 = scmp.ne.s32.totalorder %s274_s19, %s2472_s23  ;;  %p2481_p4 = scmp.lt.s32.totalorder %s2472_s23, %s2472_s23 }
  0x34   : > { %p2475_p13 = pnand %p2473_p12, %p2982_p7  ;;  %p2482_p1 = por %p2481_p4, %p2480_p2 }
  0x36   : > { %p2476_p0 = pneg %p2475_p13 }
  0x38   : > { %p2483_p3 = pnand %p2482_p1, %p2476_p0 }
  0x3a   : > { %2486 = shalt.err (!%p2483_p3)
}
  0x3b   : > { %s3739_s6 = smov 128   ;;  %s3741_s24 = smov 8  }
  0x3c   : > { %2279 = dma.hbm_to_vmem [thread:$0]  (!%p2968_p5), %s3773_s1, 256, %s274_s19, [#allocation11], %s3739_s6, %s3739_s6, %s3741_s24  }
  0x3d   : > { %s3775_s3 = sld [smem:[#allocation42_spill]] }
  0x43   : > { %s2487_s7 = scalar_lea.hbm %s3775_s3, 256 }
  0x44   : > { %p2488_p1 = scmp.ne.s32.totalorder %s3775_s3, %s2487_s7  ;;  %p2494_p8 = scmp.lt.u32.totalorder %s2487_s7, %s3775_s3 }
  0x46   : > { %p2490_p3 = pnand %p2488_p1, %p2982_p7 }
  0x48   : > { %p2491_p6 = pneg %p2490_p3 }
  0x4a   : > { %p2496_p9 = pnand %p2494_p8, %p2491_p6 }
  0x4c   : > { %2499 = shalt.err (!%p2496_p9)
}
  0x4d   : > { %s2500_s19 = scalar_lea.vmem %s2972_s22, 256  ;;  %p2508_p13 = scmp.lt.s32.totalorder %s2972_s22, %s2972_s22 }
  0x4e   : > { %p2501_p10 = scmp.ne.s32.totalorder %s2972_s22, %s2500_s19  ;;  %p2509_p0 = scmp.lt.s32.totalorder %s2500_s19, %s2500_s19 }
  0x50   : > { %p2503_p11 = pnand %p2501_p10, %p2982_p7  ;;  %p2510_p2 = por %p2509_p0, %p2508_p13 }
  0x52   : > { %p2504_p12 = pneg %p2503_p11 }
  0x54   : > { %p2511_p4 = pnand %p2510_p2, %p2504_p12 }
  0x56   : > { %2514 = shalt.err (!%p2511_p4)
}
  0x57   : > { %s3743_s12 = smov 64   ;;  %s2834_s7 = smov 4  }
  0x58   : > { %2285 = dma.hbm_to_vmem [thread:$0]  (!%p2968_p5), %s3775_s3, 256, %s2972_s22, [#allocation14], %s3743_s12, %s3743_s12, %s2834_s7  }
  0x59   : > { %s2835_s8 = smov [#allocation12]   ;;  %s2836_s26 = smov [#allocation15]  }
  0x5a   : > { %s286_s25 = sshll.u32 %s2835_s8, 4  ;;  %s312_s21 = sshll.u32 %s2836_s26, 4  ;;  %s287_s25 = int_to_ptr.vmem [resolvable:$true] %s286_s25  ;;  %s3027_s21 = int_to_ptr.vmem [resolvable:$true] %s312_s21 }
  0x5b   : > { %s3776_s2 = sld [smem:[#allocation41_spill]] }
  0x61   : > { %s2515_s6 = scalar_lea.hbm %s3776_s2, 256 }
  0x62   : > { %p2516_p1 = scmp.ne.s32.totalorder %s3776_s2, %s2515_s6  ;;  %p2522_p8 = scmp.lt.u32.totalorder %s2515_s6, %s3776_s2 }
  0x64   : > { %p2518_p3 = pnand %p2516_p1, %p2982_p7 }
  0x66   : > { %p2519_p6 = pneg %p2518_p3 }
  0x68   : > { %p2524_p9 = pnand %p2522_p8, %p2519_p6 }
  0x6a   : > { %2527 = shalt.err (!%p2524_p9)
}
  0x6b   : > { %s2528_s17 = scalar_lea.vmem %s287_s25, 256  ;;  %p2536_p13 = scmp.lt.s32.totalorder %s287_s25, %s287_s25 }
  0x6c   : > { %p2529_p10 = scmp.ne.s32.totalorder %s287_s25, %s2528_s17  ;;  %p2537_p0 = scmp.lt.s32.totalorder %s2528_s17, %s2528_s17 }
  0x6e   : > { %p2531_p11 = pnand %p2529_p10, %p2982_p7  ;;  %p2538_p2 = por %p2537_p0, %p2536_p13 }
  0x70   : > { %p2532_p12 = pneg %p2531_p11 }
  0x72   : > { %p2539_p4 = pnand %p2538_p2, %p2532_p12 }
  0x74   : > { %2542 = shalt.err (!%p2539_p4)
}
  0x75   : > { %s3777_s1 = smov 8   ;;  %s3778_s24 = smov 128  }
  0x76   : > { %2282 = dma.hbm_to_vmem [thread:$0]  (!%p2968_p5), %s3776_s2, 256, %s287_s25, [#allocation11], %s3778_s24, %s3778_s24, %s3777_s1  }
  0x77   : > { %s3779_s4 = sld [smem:[#allocation43_spill]] }
  0x7d   : > { %s2543_s19 = scalar_lea.hbm %s3779_s4, 256 }
  0x7e   : > { %p2544_p1 = scmp.ne.s32.totalorder %s3779_s4, %s2543_s19  ;;  %p2550_p8 = scmp.lt.u32.totalorder %s2543_s19, %s3779_s4 }
  0x80   : > { %p2546_p3 = pnand %p2544_p1, %p2982_p7 }
  0x82   : > { %p2547_p6 = pneg %p2546_p3 }
  0x84   : > { %p2552_p9 = pnand %p2550_p8, %p2547_p6 }
  0x86   : > { %2555 = shalt.err (!%p2552_p9)
}
  0x87   : > { %s2556_s25 = scalar_lea.vmem %s3027_s21, 256  ;;  %p2564_p13 = scmp.lt.s32.totalorder %s3027_s21, %s3027_s21 }
  0x88   : > { %p2557_p10 = scmp.ne.s32.totalorder %s3027_s21, %s2556_s25  ;;  %p2565_p0 = scmp.lt.s32.totalorder %s2556_s25, %s2556_s25 }
  0x8a   : > { %p2559_p11 = pnand %p2557_p10, %p2982_p7  ;;  %p2566_p2 = por %p2565_p0, %p2564_p13 }
  0x8c   : > { %p2560_p12 = pneg %p2559_p11 }
  0x8e   : > { %p2567_p4 = pnand %p2566_p2, %p2560_p12 }
  0x90   : > { %2570 = shalt.err (!%p2567_p4)
}
  0x91   : > { %s3780_s12 = smov 64   ;;  %s2837_s26 = smov [#allocation16]  }
  0x92   : > { %2288 = dma.hbm_to_vmem [thread:$0]  (!%p2968_p5), %s3779_s4, 256, %s3027_s21, [#allocation14], %s3780_s12, %s3780_s12, %s2834_s7  }
  0x93   : > { %s325_s23 = sshll.u32 %s2837_s26, 4  ;;  %s3781_s5 = sld [smem:[#allocation44_spill]]  ;;  %s326_s23 = int_to_ptr.vmem [resolvable:$true] %s325_s23 }
  0x99   : > { %s2571_s22 = scalar_lea.hbm %s3781_s5, 2048 }
  0x9a   : > { %p2572_p1 = scmp.ne.s32.totalorder %s3781_s5, %s2571_s22  ;;  %p2578_p8 = scmp.lt.u32.totalorder %s2571_s22, %s3781_s5 }
  0x9c   : > { %p2574_p3 = pnand %p2572_p1, %p2982_p7 }
  0x9e   : > { %p2575_p6 = pneg %p2574_p3 }
  0xa0   : > { %p2580_p9 = pnand %p2578_p8, %p2575_p6 }
  0xa2   : > { %2583 = shalt.err (!%p2580_p9)
}
  0xa3   : > { %s2584_s21 = scalar_lea.vmem %s326_s23, 2048  ;;  %p2592_p13 = scmp.lt.s32.totalorder %s326_s23, %s326_s23 }
  0xa4   : > { %p2585_p10 = scmp.ne.s32.totalorder %s326_s23, %s2584_s21  ;;  %p2593_p0 = scmp.lt.s32.totalorder %s2584_s21, %s2584_s21 }
  0xa6   : > { %p2587_p11 = pnand %p2585_p10, %p2982_p7  ;;  %p2594_p2 = por %p2593_p0, %p2592_p13 }
  0xa8   : > { %p2588_p12 = pneg %p2587_p11 }
  0xaa   : > { %p2595_p4 = pnand %p2594_p2, %p2588_p12 }
  0xac   : > { %2598 = shalt.err (!%p2595_p4)
}
  0xad   : > { %2291 = dma.hbm_to_vmem [thread:$0]  (!%p2968_p5), %s3781_s5, 2048, %s326_s23, [#allocation17], %s3780_s12, %s3780_s12, %s2834_s7  }
  0xae   : > { %s3745_s20 = sadd.s32 4294967294, %s2827_s15   ;;  %s40_s18 = sadd.s32 1, %s2819_s13 }
  0xaf   : > { %s43_s8 = sadd.s32 1, %s2823_s14  ;;  %p41_p7 = scmp.ge.s32.totalorder %s40_s18, 4 }
  0xb0   : > { %s50_s6 = sadd.s32 1, %s2807_s10  ;;  %p57_p1 = scmp.ne.s32.totalorder %s2807_s10, %s2803_s9 }
  0xb1   : > { %p58_p3 = scmp.eq.s32.totalorder %s2827_s15, 0  ;;  %s3827_s18 = smov (%p41_p7, %s40_s18), 0 }
  0xb2   : > { %3782 = sst [smem:[#allocation36_spill]] %s3827_s18  ;;  %s3829_s8 = smov (!%p41_p7, %s43_s8), %s2823_s14 }
  0xb3   : > { %p3110_p5 = por %p58_p3, %p57_p1  ;;  %p63_p6 = scmp.ne.s32.totalorder %s2803_s9, %s2799_s30 }
  0xb4   : > { %p45_p8 = scmp.ge.s32.totalorder %s3829_s8, 4  ;;  %s179_s12 = ssub.s32 %s2819_s13, %s3827_s18 }
  0xb5   : > { %p3784_p9 = scmp.eq.s32.totalorder %s2955_s16, 0  ;;  %s183_s23 = sadd.s32 1, %s2795_s29 }
  0xb6   : > { %s3831_s8 = smov (%p45_p8, %s3829_s8), 0  ;;  %p193_p11 = scmp.ne.s32.totalorder %s2795_s29, %s2791_s28 }
  0xb7   : > { %p3123_p10 = por %p3784_p9, %p63_p6  ;;  %3786 = sst [smem:[#allocation37_spill]] %s3831_s8 }
  0xb8   : > { %p194_p12 = scmp.eq.s32.totalorder %s2955_s16, 15  ;;  %s47_s19 = ssub.s32 %s2823_s14, %s3831_s8 }
  0xb9   : > { %p199_p13 = scmp.ne.s32.totalorder %s2791_s28, %s2787_s27  ;;  %p48_p0 = scmp.eq.s32.totalorder %s47_s19, 0 }
  0xba   : > { %s180_s11 = sor.u32 %s179_s12, %s47_s19  ;;  %p3137_p4 = por %p194_p12, %p193_p11 }
  0xbb   : > { %p181_p2 = scmp.eq.s32.totalorder %s180_s11, 0  ;;  %p200_p7 = scmp.eq.s32.totalorder %s3745_s20, 15 }
  0xbc   : > { %s3787_s22 = scalar_select %p3137_p4, 1, 0 }
  0xbd   : > { %s3142_s17 = scalar_select %p48_p0, %s2807_s10, %s50_s6  }
  0xbe   : > { %s3145_s25 = scalar_select %p181_p2, %s2795_s29, %s183_s23  }
  0xbf   : > { %3788 = sst [smem:[#allocation38_spill]] %s3142_s17  ;;  %p3152_p3 = por %p194_p12, %p57_p1 }
  0xc0   : > { %p2311_p8 = scmp.lt.s32.totalorder %s2827_s15, 16  ;;  %s339_s2 = sand.u32 1, %s2807_s10  }
  0xc1   : > { %s3789_s21 = scalar_select %p3152_p3, 1, 0 }
  0xc2   : > { %p3158_p9 = por %p200_p7, %p199_p13  ;;  %p3165_p11 = por %p200_p7, %p63_p6 }
  0xc3   : > { %s2010_s6 = sshll.u32 %s339_s2, 4  ;;  %s2074_s23 = sshll.u32 %s2823_s14, 8 }
  0xc4   : > { %s3790_s3 = scalar_select %p3158_p9, 1, 0 }
  0xc5   : > { %s3791_s12 = scalar_select %p3165_p11, 1, 0 }
  0xc6   : > { %s3792_s0 = sld [smem:[#allocation39_spill]]  ;;  %s343_s4 = scalar_lea.vmem [#allocation7], %s2010_s6 }
  0xc7   : > { %s350_s5 = sshll.u32 %s343_s4, 4  ;;  %p3179_p1 = pnand %p2311_p8, %p3110_p5  ;;  %s3175_s5 = int_to_ptr.vmem [resolvable:$true] %s350_s5 }
  0xc8   : > { %s3183_s8 = scalar_lea.sflag [#allocation8], %s339_s2 }
  0xc9   : > { %p2601_p12 = pneg %p3179_p1 }
  0xcc   : > { %s3173_s20 = scalar_lea.hbm %s3792_s0, %s2074_s23  ;;  %s2604_s7 = scalar_lea.hbm %s3792_s0, 1024 }
  0xcd   : > { %s2599_s19 = scalar_lea.hbm %s3173_s20, 256  ;;  %p2605_p5 = scmp.lt.u32.totalorder %s3173_s20, %s3792_s0 }
  0xce   : > { %p2600_p6 = scmp.ne.s32.totalorder %s3173_s20, %s2599_s19  ;;  %p2606_p2 = scmp.lt.u32.totalorder %s2604_s7, %s2599_s19 }
  0xcf   : > { %p2608_p8 = scmp.lt.u32.totalorder %s2599_s19, %s3173_s20 }
  0xd0   : > { %p2602_p13 = pnand %p2601_p12, %p2600_p6  ;;  %p2607_p7 = por %p2606_p2, %p2605_p5 }
  0xd2   : > { %p2603_p0 = pneg %p2602_p13  ;;  %p2609_p11 = por %p2608_p8, %p2607_p7 }
  0xd4   : > { %p2610_p9 = pnand %p2609_p11, %p2603_p0 }
  0xd6   : > { %2613 = shalt.err (!%p2610_p9)
}
  0xd7   : > { %s2614_s2 = scalar_lea.vmem %s3175_s5, 256  ;;  %s2838_s4 = smov [#allocation7]  }
  0xd8   : > { %p2615_p6 = scmp.ne.s32.totalorder %s3175_s5, %s2614_s2  ;;  %s2619_s6 = sshll.u32 %s2838_s4, 4  ;;  %s2620_s6 = int_to_ptr.vmem [resolvable:$false] %s2619_s6 }
  0xd9   : > { %s2621_s23 = scalar_lea.vmem %s2620_s6, 512  ;;  %p2622_p3 = scmp.lt.s32.totalorder %s3175_s5, %s2620_s6 }
  0xda   : > { %p2617_p13 = pnand %p2615_p6, %p2601_p12  ;;  %p2623_p5 = scmp.lt.s32.totalorder %s2621_s23, %s2614_s2 }
  0xdc   : > { %p2618_p4 = pneg %p2617_p13  ;;  %p2624_p2 = por %p2623_p5, %p2622_p3 }
  0xde   : > { %p2625_p7 = pnand %p2624_p2, %p2618_p4 }
  0xe0   : > { %2628 = shalt.err (!%p2625_p7)
}
  0xe1   : > { %2295 = dma.hbm_to_vmem [thread:$0]  (!%p3179_p1), %s3173_s20, 256, %s3175_s5, %s3183_s8, %s3778_s24, %s3778_s24, %s3777_s1  }
  0xe2   : > { %s3794_s19 = sld [smem:[#allocation35_spill]] }
  0xe8   : > { %p3795_p9 = scmp.ne.s32.totalorder %s3794_s19, 0 }
  0xe9   : > { %s364_s7 = sand.u32 (!%p3795_p9), 1, %s2803_s9  }
  0xea   : > { %362 = sbr.rel (%p3795_p9) target bundleno = 2158 (0x86e), region = 44  ;;  %s2014_s11 = sshll.u32 (!%p3795_p9), %s364_s7, 4 }
  0xeb   : > { %s365_s2 = scalar_lea.sflag (!%p3795_p9), [#allocation8], %s364_s7  ;;  %s368_s4 = scalar_lea.vmem (!%p3795_p9), [#allocation7], %s2014_s11 }
  0xf1   : > { %2758 = dma.done.wait (%p3123_p10), %s365_s2, 256  }
  0xf2   : > { %2760 = vsyncadd (%p3123_p10), %s365_s2, 4294967040  ;;  %p3796_p4 = scmp.eq.s32.totalorder %s2955_s16, 0 }
  0xf4   : > { %2762 = dma.done.wait (%p3796_p4), [#allocation11], 512   ;;  %p3797_p3 = pmov %p3796_p4 }
  0xf6   : > { %2764 = vsyncadd (%p3797_p3), [#allocation11], 4294966784  ;;  %p3798_p11 = pmov %p3797_p3 }
  0xf7   : > { %p3799_p1 = pmov %p3797_p3 }
  0xf8   : > { %2766 = dma.done.wait (%p3798_p11), [#allocation14], 512  }
  0xf9   : > { %2768 = vsyncadd (%p3799_p1), [#allocation14], 4294966784  ;;  %p3800_p12 = pmov %p3799_p1 }
  0xfa   : > { %p3801_p0 = pmov %p3799_p1 }
  0xfb   : > { %2770 = dma.done.wait (%p3800_p12), [#allocation17], 2048  }
  0xfc   : > { %2772 = vsyncadd (%p3801_p0), [#allocation17], 4294965248  ;;  %s3749_s5 = sand.u32 1, %s2791_s28   ;;  %s3238_s20 = scalar_lea.vmem [#allocation19], %s2014_s11 }
  0xfd   : > { %s2020_s1 = sshll.u32 %s3749_s5, 4  ;;  %s3802_s26 = sld [smem:[#allocation31_spill]] }
  0xfe   : > { %s3236_s24 = scalar_lea.vmem [#allocation18], %s2020_s1  ;;  %s3240_s8 = scalar_lea.vmem [#allocation21], %s2020_s1 }
 0x103   : > { %p2023_p10 = scmp.ne.s32.totalorder %s3802_s26, 0 }
 0x104   : > { %v436_v0 = vld [vmem:[%s368_s4] sm:$0xff] (!%p2023_p10)  ;;  %v437_v1 = vld [vmem:[%s368_s4 + $0x8] sm:$0xff] (!%p2023_p10)  ;;  %vm442_vm0 = vcmask (!%p2023_p10), 130048   ;;  %v2839_v5 = vmov (!%p2023_p10), 0.0   ;;  %s2840_s30 = smov (!%p2023_p10), 16   ;;  %vm929_vm1 = vcmask (!%p2023_p10), 261248  }
 0x105   : > { %435 = sbr.rel (%p2023_p10) target bundleno = 826 (0x33a), region = 72  ;;  %v438_v2 = vld [vmem:[#allocation10] sm:$0xff] (!%p2023_p10)  ;;  %v2222_v3 = vpack.c.bf16 (!%p2023_p10), %v437_v1, %v436_v0  ;;  %v439_v4 = vld [vmem:[#allocation10 + $0x8] sm:$0xff] (!%p2023_p10)  ;;  %932 = vst.msk [vmem:[%s3238_s20] sm:$0xff] (!%p2023_p10), %vm442_vm0, %v2839_v5  ;;  %933 = vst.msk [vmem:[%s3238_s20 + $0x8] sm:$0xff] (!%p2023_p10), %vm442_vm0, %v2839_v5 }
 0x106   : > { %2144 = vmatprep.mubr.msk.f32.mxu1 (!%p2023_p10), %vm442_vm0, %v438_v2  ;;  %v2230_v6 = vpack.c.bf16 (!%p2023_p10), %v439_v4, %v438_v2  ;;  %v440_v7 = vld [vmem:[#allocation12] sm:$0xff] (!%p2023_p10)  ;;  %v441_v8 = vld [vmem:[#allocation12 + $0x8] sm:$0xff] (!%p2023_p10) }
 0x107   : > { %2223 = vmatprep.subr.bf16.mxu1 (!%p2023_p10), %v2222_v3  ;;  %v2234_v9 = vpack.c.bf16 (!%p2023_p10), %v441_v8, %v440_v7 }
 0x108   : > { %2225 = vmatpush3.bf16.msra.mxu1 (!%p2023_p10), %v2222_v3  ;;  %2231 = vmatprep.subr.bf16.mxu0 (!%p2023_p10), %v2230_v6 }
 0x109   : > { %2227 = vmatprep.subr.bf16.mxu1 (!%p2023_p10), %v2222_v3  ;;  %2233 = vmatpush3.bf16.msra.mxu0 (!%p2023_p10), %v2230_v6 }
 0x10a   : > { %2239 = vmatprep.subr.bf16.mxu0 (!%p2023_p10), %v2230_v6 }
 0x10b   : > { %2145 = vmatmul.mubr.msk.f32.vlgmr.msra.gmra.mrb[0].mxu1 (!%p2023_p10), %vm442_vm0, %v439_v4 }
 0x10c   : > { %2229 = vmatpush3.bf16.msra.mxu1 %v2222_v3  ;;  %2151 = vmatprep.mubr.msk.f32.mxu1 %vm442_vm0, %v440_v7 }
 0x10d   : > { %2235 = vmatprep.subr.bf16.mxu1 %v2234_v9 }
 0x10f   : > { %2152 = vmatmul.mubr.msk.f32.vlgmr.msra.gmra.mrb[2].mxu1 %vm442_vm0, %v441_v8 }
 0x110   : > { %2237 = vmatpush3.bf16.msra.mxu1 %v2234_v9 }
 0x1de   : > { %v2146_v10 = vpop.f32.mrb[0].mxu1 }
 0x1df   : > { %v515_v11 = vpop.f32.mrb[1].mxu1 }
 0x1e0   : > { %2158 = vmatprep.mubr.msk.f32.mxu0 %vm442_vm0, %v515_v11 }
 0x1e1   : > { %2159 = vmatmul.mubr.msk.f32.vlgmr.msra.gmra.mrb[0].mxu0 %vm442_vm0, %v2146_v10 }
 0x1e2   : > { %v2153_v12 = vpop.f32.mrb[2].mxu1  ;;  %2241 = vmatpush3.bf16.msra.mxu0 %v2230_v6 }
 0x1e3   : > { %v596_v13 = vpop.f32.mrb[3].mxu1  ;;  %2243 = vmatprep.subr.bf16.mxu0 %v2234_v9 }
 0x1e4   : > { %2165 = vmatprep.mubr.msk.f32.mxu1 %vm442_vm0, %v596_v13  ;;  %2172 = vmatprep.mubr.msk.f32.mxu0 %vm442_vm0, %v596_v13 }
 0x1e5   : > { %2166 = vmatmul.mubr.msk.f32.vlgmr.msra.gmra.mrb[4].mxu1 %vm442_vm0, %v2153_v12  ;;  %2173 = vmatmul.mubr.msk.f32.vlgmr.msra.gmra.mrb[2].mxu0 %vm442_vm0, %v2153_v12 }
 0x1e6   : > { %2245 = vmatpush3.bf16.msra.mxu0 %v2234_v9  ;;  %2179 = vmatprep.mubr.msk.f32.mxu0 %vm442_vm0, %v515_v11 }
 0x1ed   : > { %2180 = vmatmul.mubr.msk.f32.vlgmr.msra.gmra.mrb[2].mxu0 %vm442_vm0, %v2146_v10 }
 0x2b4   : > { %v2160_v14 = vpop.f32.mrb[0].mxu0 }
 0x2b5   : > { %v677_v15 = vpop.f32.mrb[1].mxu0 }
 0x2b8   : > { %v2167_v16 = vpop.f32.mrb[4].mxu1 }
 0x2b9   : > { %v768_v17 = vsub.f32 %v2160_v14, %v2167_v16  ;;  %v758_v18 = vpop.f32.mrb[5].mxu1 }
 0x2ba   : > { %v767_v19 = vsub.f32 %v677_v15, %v758_v18 }
 0x2bb   : > { %770 = vst.msk [vmem:[#allocation2 + $0x8] sm:$0xff] %vm442_vm0, %v768_v17 }
 0x2bc   : > { %769 = vst.msk [vmem:[#allocation2] sm:$0xff] %vm442_vm0, %v767_v19 }
 0x2c0   : > { %v2181_v20 = vpop.f32.mrb[2].mxu0 }
 0x2c1   : > { %v912_v21 = vpop.f32.mrb[3].mxu0 }
 0x2c2   : > { %923 = vrot.lane.b32.xlu0 %v912_v21, %s2840_s30 }
 0x2c6   : > { %925 = vrot.lane.b32.xlu0 %v2181_v20, %s2840_s30 }
 0x334   : > { %v924_v22 = vpop.permute.xlu0 %923 }
 0x335   : > { %930 = vst.msk [vmem:[#allocation2] sm:$0xff] %vm929_vm1, %v924_v22 }
 0x338   : > { %v926_v23 = vpop.permute.xlu0 %925 }
 0x339   : > { %931 = vst.msk [vmem:[#allocation2 + $0x8] sm:$0xff] %vm929_vm1, %v926_v23 }
 0x33a PF: > { %s3803_s6 = sld [smem:[#allocation31_spill]]  ;;  %s2841_s19 = smov 112   ;;  %vm947_vm2 = vcmask 130048   ;;  %vm976_vm3 = vcmask 261248   ;;  %v2427_v0 = vld [vmem:[#allocation13] sm:$0xff]   ;;  %vm1052_vm4 = vcmask 261120  }
 0x33b   : > { %s2842_s11 = smov 16   ;;  %s2843_s2 = smov 48   ;;  %vm1001_vm5 = vcmask 392448   ;;  %2186 = vmatprep.mubr.msk.bf16.mxu0 %vm1052_vm4, %v2427_v0  ;;  %vm1026_vm6 = vcmask 523648   ;;  %v2428_v9 = vld [vmem:[#allocation13 + $0x8] sm:$0xff]   ;;  %v2429_v10 = vld [vmem:[#allocation15] sm:$0xff]  }
 0x33c   : > { %v934_v24 = vld [vmem:[#allocation2] sm:$0xff]  ;;  %s2844_s4 = smov 32   ;;  %v2845_v12 = vmov 0.0   ;;  %vm1110_vm7 = vcmask 523264   ;;  %v2430_v17 = vld [vmem:[#allocation15 + $0x8] sm:$0xff]   ;;  %vm2846_vm8 = vmmov 0  }
 0x33d   : > { %951 = vrot.lane.b32.xlu0 %v934_v24, %s2841_s19  ;;  %2190 = vmatprep.subr.bf16.mxu1 %v2845_v12  ;;  %s2847_s1 = smov 96   ;;  %s2848_s26 = smov 80  }
 0x33e   : > { %2191 = vmatpush3.bf16.msra.mxu1 %v2429_v10  ;;  %2194 = vmatprep.mubr.msk.bf16.mxu1 %vm2846_vm8, %v2845_v12  ;;  %s3804_s30 = sld [smem:[#allocation32_spill]]  ;;  %s1754_s5 = sshll.u32 %s3236_s24, 4  ;;  %s3594_s5 = int_to_ptr.vmem [resolvable:$true] %s1754_s5 }
 0x33f   : > { %2192 = vmatprep.subr.bf16.mxu1 %v2845_v12  ;;  %s3809_s13 = sand.u32 1, %s2955_s16   ;;  %p3810_p6 = scmp.ne.s32.totalorder %s3789_s21, 0 }
 0x340   : > { %s2076_s23 = sshll.u32 %s3803_s6, 5  ;;  %v935_v25 = vld [vmem:[#allocation2 + $0x8] sm:$0xff]  ;;  %s3598_s17 = scalar_lea.sflag [#allocation20], %s3809_s13 }
 0x341   : > { %s939_s7 = scalar_lea.vmem [#allocation16], %s2076_s23  ;;  %953 = vrot.lane.b32.xlu0 %v935_v25, %s2841_s19  ;;  %s2064_s23 = sshll.u32 %s3803_s6, 1 }
 0x342   : > { %v2082_v26 = vld [vmem:[%s939_s7] sm:$0xff]   ;;  %v2098_v27 = vld [vmem:[%s939_s7 + $0x10] sm:$0xff]   ;;  %v2099_v28 = vld [vmem:[%s939_s7 + $0x18] sm:$0xff]   ;;  %2193 = vmatpush3.bf16.msra.mxu1 %v2430_v17 }
 0x343   : > { %v2083_v29 = vunpack.c.l.bf16 %v2082_v26  ;;  %v2091_v30 = vunpack.c.l.bf16 %v2098_v27  ;;  %v2095_v31 = vunpack.c.l.bf16 %v2099_v28  ;;  %v2097_v32 = vld [vmem:[%s939_s7 + $0x8] sm:$0xff]   ;;  %v2084_v33 = vunpack.c.h.bf16 %v2082_v26  ;;  %2206 = vmatprep.subr.bf16.mxu1 %v2845_v12  ;;  %s3806_s7 = sld [smem:[#allocation47_spill]] }
 0x344   : > { %v2087_v34 = vunpack.c.l.bf16 %v2097_v32  ;;  %v2088_v35 = vunpack.c.h.bf16 %v2097_v32  ;;  %v2092_v36 = vunpack.c.h.bf16 %v2098_v27  ;;  %v2096_v37 = vunpack.c.h.bf16 %v2099_v28 }
 0x345   : > { %v1019_v38 = vmul.f32 %v2095_v31, %v934_v24  ;;  %v994_v39 = vmul.f32 %v2091_v30, %v934_v24  ;;  %v945_v40 = vmul.f32 %v2084_v33, %v935_v25  ;;  %v944_v41 = vmul.f32 %v2083_v29, %v934_v24 }
 0x346   : > { %v969_v42 = vmul.f32 %v2087_v34, %v934_v24  ;;  %v970_v43 = vmul.f32 %v2088_v35, %v935_v25  ;;  %v1020_v44 = vmul.f32 %v2096_v37, %v935_v25  ;;  %v995_v45 = vmul.f32 %v2092_v36, %v935_v25 }
 0x347   : > { %v946_v46 = vpack.c.bf16 %v945_v40, %v944_v41 }
 0x348   : > { %v971_v47 = vpack.c.bf16 %v970_v43, %v969_v42  ;;  %v1021_v48 = vpack.c.bf16 %v1020_v44, %v1019_v38  ;;  %v996_v49 = vpack.c.bf16 %v995_v45, %v994_v39 }
 0x349   : > { %948 = vst.msk [vmem:[#allocation3] sm:$0xff] %vm947_vm2, %v946_v46 }
 0x34a   : > { %973 = vrot.lane.b32.xlu1 %v971_v47, %s2842_s11  ;;  %1023 = vrot.lane.b32.xlu0 %v1021_v48, %s2843_s2 }
 0x34e   : > { %998 = vrot.lane.b32.xlu1 %v996_v49, %s2844_s4 }
 0x3af   : > { %v952_v50 = vpop.permute.xlu0 %951 }
 0x3b0   : > { %v957_v51 = vmul.f32 %v2083_v29, %v952_v50  ;;  %v1003_v52 = vmul.f32 %v2091_v30, %v952_v50  ;;  %v978_v57 = vmul.f32 %v2087_v34, %v952_v50  ;;  %v1028_v62 = vmul.f32 %v2095_v31, %v952_v50 }
 0x3b3   : > { %v954_v53 = vpop.permute.xlu0 %953 }
 0x3b4   : > { %v958_v54 = vmul.f32 %v2084_v33, %v954_v53  ;;  %v979_v55 = vmul.f32 %v2088_v35, %v954_v53  ;;  %v1004_v56 = vmul.f32 %v2092_v36, %v954_v53  ;;  %v1029_v58 = vmul.f32 %v2096_v37, %v954_v53 }
 0x3b6   : > { %v1005_v59 = vpack.c.bf16 %v1004_v56, %v1003_v52  ;;  %v980_v60 = vpack.c.bf16 %v979_v55, %v978_v57  ;;  %v959_v61 = vpack.c.bf16 %v958_v54, %v957_v51  ;;  %v1030_v1 = vpack.c.bf16 %v1029_v58, %v1028_v62 }
 0x3b8   : > { %1007 = vrot.lane.b32.xlu0 %v1005_v59, %s2844_s4  ;;  %982 = vrot.lane.b32.xlu1 %v980_v60, %s2842_s11  ;;  %960 = vst.msk [vmem:[#allocation3 + $0x8] sm:$0xff] %vm947_vm2, %v959_v61 }
 0x3bc   : > { %v974_v63 = vpop.permute.xlu1 %973  ;;  %1032 = vrot.lane.b32.xlu1 %v1030_v1, %s2843_s2  ;;  %v1024_v3 = vpop.permute.xlu0 %1023  ;;  %s1770_s2 = sshll.u32 %s3238_s20, 4  ;;  %s3575_s2 = int_to_ptr.vmem [resolvable:$true] %s1770_s2 }
 0x3bd   : > { %977 = vst.msk [vmem:[#allocation3] sm:$0xff] %vm976_vm3, %v974_v63 }
 0x3c0   : > { %v999_v2 = vpop.permute.xlu1 %998 }
 0x3c1   : > { %1002 = vst.msk [vmem:[#allocation3] sm:$0xff] %vm1001_vm5, %v999_v2 }
 0x3c2   : > { %1027 = vst.msk [vmem:[#allocation3] sm:$0xff] %vm1026_vm6, %v1024_v3 }
 0x3c9   : > { %v1040_v4 = vld [vmem:[#allocation3] sm:$0xff] }
 0x3ca   : > { %2182 = vmatprep.subr.bf16.mxu0 %v1040_v4 }
 0x3cb   : > { %2183 = vmatpush3.bf16.msra.mxu0 %v1040_v4 }
 0x42a   : > { %v1008_v5 = vpop.permute.xlu0 %1007  ;;  %v983_v6 = vpop.permute.xlu1 %982 }
 0x42b   : > { %985 = vst.msk [vmem:[#allocation3 + $0x8] sm:$0xff] %vm976_vm3, %v983_v6 }
 0x42c   : > { %1010 = vst.msk [vmem:[#allocation3 + $0x8] sm:$0xff] %vm1001_vm5, %v1008_v5 }
 0x42e   : > { %v1033_v7 = vpop.permute.xlu1 %1032 }
 0x42f   : > { %1035 = vst.msk [vmem:[#allocation3 + $0x8] sm:$0xff] %vm1026_vm6, %v1033_v7 }
 0x436   : > { %v1041_v8 = vld [vmem:[#allocation3 + $0x8] sm:$0xff] }
 0x437   : > { %2184 = vmatprep.subr.bf16.mxu0 %v1041_v8 }
 0x438   : > { %2185 = vmatpush3.bf16.msra.mxu0 %v1041_v8 }
 0x439   : > { %2198 = vmatprep.subr.bf16.mxu0 %v2845_v12 }
 0x43b   : > { %2187 = vmatmul.mubr.msk.bf16.vlgmr.msra.gmra.mrb[0].mxu0 %vm1052_vm4, %v2428_v9 }
 0x43c   : > { %2199 = vmatpush3.bf16.msra.mxu0 %v2429_v10  ;;  %2202 = vmatprep.mubr.msk.bf16.mxu0 %vm2846_vm8, %v2845_v12 }
 0x43d   : > { %2200 = vmatprep.subr.bf16.mxu0 %v2845_v12 }
 0x440   : > { %2201 = vmatpush3.bf16.msra.mxu0 %v2430_v17 }
 0x441   : > { %2214 = vmatprep.subr.bf16.mxu0 %v2845_v12 }
 0x50e   : > { %v2188_v11 = vpop.f32.mrb[0].mxu0 }
 0x50f   : > { %v1093_v13 = vpop.f32.mrb[1].mxu0 }
 0x510   : > { %v2189_v14 = vpop.f32.mrb[2].mxu0 }
 0x511   : > { %v1109_v15 = vpack.c.bf16 %v2189_v14, %v2188_v11  ;;  %v1096_v16 = vpop.f32.mrb[3].mxu0 }
 0x512   : > { %v1108_v18 = vpack.c.bf16 %v1096_v16, %v1093_v13 }
 0x513   : > { %1112 = vst.msk [vmem:[#allocation4 + $0x8] sm:$0xff] %vm1110_vm7, %v1109_v15 }
 0x514   : > { %1111 = vst.msk [vmem:[#allocation4] sm:$0xff] %vm1110_vm7, %v1108_v18 }
 0x51a   : > { %v1119_v19 = vld [vmem:[#allocation4 + $0x8] sm:$0xff] }
 0x51b   : > { %1121 = vrot.lane.b32.xlu0 %v1119_v19, %s2842_s11  ;;  %v1222_v20 = vld [vmem:[#allocation4] sm:$0xff] }
 0x51c   : > { %1224 = vrot.lane.b32.xlu1 %v1222_v20, %s2841_s19  ;;  %1118 = vst.msk [vmem:[#allocation5] sm:$0xff] %vm947_vm2, %v1222_v20 }
 0x51f   : > { %1316 = vrot.lane.b32.xlu0 %v1222_v20, %s2847_s1 }
 0x520   : > { %1322 = vrot.lane.b32.xlu1 %v1119_v19, %s2841_s19 }
 0x523   : > { %1412 = vrot.lane.b32.xlu0 %v1222_v20, %s2848_s26 }
 0x524   : > { %1418 = vrot.lane.b32.xlu1 %v1119_v19, %s2847_s1  ;;  %s1788_s1 = sshll.u32 %s3240_s8, 4  ;;  %s3583_s1 = int_to_ptr.vmem [resolvable:$true] %s1788_s1 }
 0x58d   : > { %v1122_v21 = vpop.permute.xlu0 %1121 }
 0x58e   : > { %1124 = vst.msk [vmem:[#allocation5] sm:$0xff] %vm976_vm3, %v1122_v21  ;;  %v1225_v22 = vpop.permute.xlu1 %1224 }
 0x591   : > { %v1317_v24 = vpop.permute.xlu0 %1316 }
 0x592   : > { %v1323_v26 = vpop.permute.xlu1 %1322 }
 0x595   : > { %v1125_v23 = vld [vmem:[#allocation5] sm:$0xff]  ;;  %v1413_v27 = vpop.permute.xlu0 %1412 }
 0x596   : > { %1227 = vst.msk [vmem:[#allocation5] sm:$0xff] %vm947_vm2, %v1225_v22  ;;  %2195 = vmatmul.mubr.msk.bf16.vlgmr.msra.gmra.mrb[0].mxu1 %vm1052_vm4, %v1125_v23  ;;  %v1419_v29 = vpop.permute.xlu1 %1418 }
 0x597   : > { %1229 = vst.msk [vmem:[#allocation5] sm:$0xff] %vm976_vm3, %v1119_v19  ;;  %2207 = vmatpush3.bf16.msra.mxu1 %v2429_v10  ;;  %2210 = vmatprep.mubr.msk.bf16.mxu1 %vm2846_vm8, %v2845_v12 }
 0x598   : > { %2208 = vmatprep.subr.bf16.mxu1 %v2845_v12 }
 0x59b   : > { %2209 = vmatpush3.bf16.msra.mxu1 %v2430_v17 }
 0x59e   : > { %v1230_v25 = vld [vmem:[#allocation5] sm:$0xff] }
 0x59f   : > { %1319 = vst.msk [vmem:[#allocation5] sm:$0xff] %vm947_vm2, %v1317_v24  ;;  %2203 = vmatmul.mubr.msk.bf16.vlgmr.msra.gmra.mrb[4].mxu0 %vm1052_vm4, %v1230_v25 }
 0x5a0   : > { %1325 = vst.msk [vmem:[#allocation5] sm:$0xff] %vm976_vm3, %v1323_v26  ;;  %2215 = vmatpush3.bf16.msra.mxu0 %v2429_v10  ;;  %2218 = vmatprep.mubr.msk.bf16.mxu0 %vm2846_vm8, %v2845_v12 }
 0x5a1   : > { %2216 = vmatprep.subr.bf16.mxu0 %v2845_v12 }
 0x5a4   : > { %2217 = vmatpush3.bf16.msra.mxu0 %v2430_v17 }
 0x5a7   : > { %v1326_v28 = vld [vmem:[#allocation5] sm:$0xff] }
 0x5a8   : > { %1415 = vst.msk [vmem:[#allocation5] sm:$0xff] %vm947_vm2, %v1413_v27  ;;  %2211 = vmatmul.mubr.msk.bf16.vlgmr.msra.gmra.mrb[4].mxu1 %vm1052_vm4, %v1326_v28 }
 0x5a9   : > { %1421 = vst.msk [vmem:[#allocation5] sm:$0xff] %vm976_vm3, %v1419_v29 }
 0x5b0   : > { %v1422_v30 = vld [vmem:[#allocation5] sm:$0xff] }
 0x5b1   : > { %2219 = vmatmul.mubr.msk.bf16.vlgmr.msra.gmra.mrb[8].mxu0 %vm1052_vm4, %v1422_v30 }
 0x669   : > { %v3291_v31 = vpop.f32.mrb[0].mxu1 }
 0x66a   : > { %v2196_v32 = vpop.f32.mrb[1].mxu1  ;;  %v1186_v17 = vmul.f32 %v3291_v31, %v3291_v31 }
 0x66b   : > { %v3293_v33 = vpop.f32.mrb[2].mxu1 }
 0x66c   : > { %v1182_v34 = vpack.c.bf16 %v3293_v33, %v3291_v31  ;;  %v2197_v35 = vpop.f32.mrb[3].mxu1  ;;  %v1187_v18 = vmul.f32 %v3293_v33, %v3293_v33 }
 0x66e   : > { %1183 = vst.msk [vmem:[#allocation6] sm:$0xff] %vm1052_vm4, %v1182_v34 }
 0x672   : > { %v3298_v36 = vpop.f32.mrb[4].mxu0 }
 0x673   : > { %v1312_v37 = vadd.f32 %v3298_v36, %v3291_v31  ;;  %v2204_v38 = vpop.f32.mrb[5].mxu0  ;;  %v1280_v19 = vmul.f32 %v3298_v36, %v3298_v36 }
 0x674   : > { %v3302_v39 = vpop.f32.mrb[6].mxu0 }
 0x675   : > { %v1275_v40 = vpack.c.bf16 %v3302_v39, %v3298_v36  ;;  %v1313_v41 = vadd.f32 %v3302_v39, %v3293_v33  ;;  %v2205_v42 = vpop.f32.mrb[7].mxu0  ;;  %v1281_v20 = vmul.f32 %v3302_v39, %v3302_v39  ;;  %v1552_v26 = vld [vmem:[#allocation6] sm:$0xff] }
 0x676   : > { %v3359_v31 = vunpack.c.l.bf16 %v1552_v26  ;;  %v3367_v34 = vunpack.c.h.bf16 %v1552_v26 }
 0x677   : > { %1277 = vst.msk [vmem:[#allocation6 + $0x8] sm:$0xff] %vm1052_vm4, %v1275_v40 }
 0x67b   : > { %v1364_v43 = vpop.f32.mrb[4].mxu1 }
 0x67c   : > { %v1408_v44 = vadd.f32 %v1364_v43, %v1312_v37  ;;  %v2212_v45 = vpop.f32.mrb[5].mxu1  ;;  %v1376_v21 = vmul.f32 %v1364_v43, %v1364_v43 }
 0x67d   : > { %v1367_v46 = vpop.f32.mrb[6].mxu1 }
 0x67e   : > { %v1371_v47 = vpack.c.bf16 %v1367_v46, %v1364_v43  ;;  %v1409_v48 = vadd.f32 %v1367_v46, %v1313_v41  ;;  %v2213_v49 = vpop.f32.mrb[7].mxu1  ;;  %v1377_v22 = vmul.f32 %v1367_v46, %v1367_v46  ;;  %v1605_v39 = vld [vmem:[#allocation6 + $0x8] sm:$0xff] }
 0x67f   : > { %v3380_v45 = vunpack.c.l.bf16 %v1605_v39 }
 0x680   : > { %1373 = vst.msk [vmem:[#allocation6 + $0x10] sm:$0xff] %vm1052_vm4, %v1371_v47 }
 0x684   : > { %v3310_v50 = vpop.f32.mrb[8].mxu0 }
 0x685   : > { %v3313_v51 = vadd.f32 %v3310_v50, %v1408_v44  ;;  %v2220_v52 = vpop.f32.mrb[9].mxu0 }
 0x686   : > { %v3315_v53 = vpop.f32.mrb[10].mxu0  ;;  %v3385_v52 = vunpack.c.h.bf16 %v1605_v39 }
 0x687   : > { %v1467_v54 = vpack.c.bf16 %v3315_v53, %v3310_v50  ;;  %v1505_v55 = vadd.f32 %v3315_v53, %v1409_v48  ;;  %v2221_v56 = vpop.f32.mrb[11].mxu0  ;;  %v1506_v57 = vmul.f32 %v3313_v51, %v3313_v51 }
 0x689   : > { %1469 = vst.msk [vmem:[#allocation6 + $0x18] sm:$0xff] %vm1052_vm4, %v1467_v54  ;;  %1510 = vrot.lane.b32.xlu0 %v1506_v57, %s2841_s19  ;;  %v1507_v58 = vmul.f32 %v1505_v55, %v1505_v55 }
 0x68b   : > { %1512 = vrot.lane.b32.xlu1 %v1507_v58, %s2841_s19 }
 0x6fb   : > { %v1511_v59 = vpop.permute.xlu0 %1510 }
 0x6fc   : > { %v1516_v60 = vadd.f32 %v1511_v59, %v1506_v57 }
 0x6fd   : > { %v1513_v61 = vpop.permute.xlu1 %1512 }
 0x6fe   : > { %v1518_v62 = vadd.f32 1e-12, %v1516_v60  ;;  %v1517_v63 = vadd.f32 %v1513_v61, %v1507_v58 }
 0x700   : > { %2431 = vrsqrt.f32 %v1518_v62  ;;  %v1519_v0 = vadd.f32 1e-12, %v1517_v63  ;;  %vm1522_vm9 = vcmp.eq.f32.partialorder %v1518_v62, inf  ;;  %v1525_v4 = vand.u32 2147483648, %v1518_v62  ;;  %v1646_v63 = vld [vmem:[#allocation6 + $0x10] sm:$0xff] }
 0x701   : > { %vm1524_vm10 = vcmp.eq.f32.partialorder %v1518_v62, 0.0 }
 0x702   : > { %2433 = vrsqrt.f32 %v1519_v0  ;;  %vm1529_vm11 = vcmp.eq.f32.partialorder %v1519_v0, inf  ;;  %v1532_v8 = vand.u32 2147483648, %v1519_v0  ;;  %vm1531_vm12 = vcmp.eq.f32.partialorder %v1519_v0, 0.0 }
 0x70a   : > { %v2432_v1 = vpop.eup %2431 }
 0x70b   : > { %v1521_v2 = vmul.f32 %v2432_v1, %v1518_v62  ;;  %v3406_v1 = vmul.f32 %v3310_v50, %v3310_v50 }
 0x70c   : > { %v2434_v3 = vpop.eup %2433 }
 0x70d   : > { %v1523_v5 = vsel %vm1522_vm9, %v1518_v62, %v1521_v2  ;;  %v1528_v6 = vmul.f32 %v2434_v3, %v1519_v0 }
 0x70e   : > { %v1526_v7 = vsel %vm1524_vm10, %v1525_v4, %v1523_v5  ;;  %v3413_v4 = vmul.f32 %v3315_v53, %v3315_v53  ;;  %v1184_v5 = vld [vmem:[%s3238_s20] sm:$0xff] }
 0x70f   : > { %v1534_v9 = vadd.f32 0.0001, %v1526_v7  ;;  %v1530_v10 = vsel %vm1529_vm11, %v1519_v0, %v1528_v6  ;;  %v3418_v7 = vunpack.c.l.bf16 %v1646_v63 }
 0x710   : > { %v1533_v11 = vsel %vm1531_vm12, %v1532_v8, %v1530_v10  ;;  %v3422_v10 = vunpack.c.h.bf16 %v1646_v63 }
 0x711   : > { %1542 = vrot.lane.b32.xlu0 %v1534_v9, %s2842_s11  ;;  %2435 = vrcp.f32 %v1534_v9  ;;  %v1535_v12 = vadd.f32 0.0001, %v1533_v11 }
 0x713   : > { %1544 = vrot.lane.b32.xlu1 %v1535_v12, %s2842_s11  ;;  %2437 = vrcp.f32 %v1535_v12 }
 0x71b   : > { %v2436_v13 = vpop.eup %2435 }
 0x71c   : > { %v3328_v14 = vmul.f32 %v2436_v13, %v3313_v51 }
 0x71d   : > { %v2438_v15 = vpop.eup %2437 }
 0x71e   : > { %1581 = vrot.lane.b32.xlu0 %v3328_v14, %s2842_s11  ;;  %v3332_v16 = vmul.f32 %v2438_v15, %v1505_v55  ;;  %v1185_v15 = vld [vmem:[%s3238_s20 + $0x8] sm:$0xff] }
 0x720   : > { %1583 = vrot.lane.b32.xlu1 %v3332_v16, %s2842_s11  ;;  %s2080_s11 = sshll.u32 %s3804_s30, 8 }
 0x722   : > { %1190 = vrot.lane.b32.xlu0 %v1186_v17, %s2841_s19 }
 0x724   : > { %1192 = vrot.lane.b32.xlu1 %v1187_v18, %s2841_s19 }
 0x726   : > { %1284 = vrot.lane.b32.xlu0 %v1280_v19, %s2841_s19 }
 0x728   : > { %1286 = vrot.lane.b32.xlu1 %v1281_v20, %s2841_s19 }
 0x72a   : > { %1380 = vrot.lane.b32.xlu0 %v1376_v21, %s2841_s19 }
 0x72c   : > { %1382 = vrot.lane.b32.xlu1 %v1377_v22, %s2841_s19 }
 0x783   : > { %v1543_v23 = vpop.permute.xlu0 %1542 }
 0x784   : > { %2439 = vrcp.f32 %v1543_v23 }
 0x785   : > { %v1545_v24 = vpop.permute.xlu1 %1544 }
 0x786   : > { %2441 = vrcp.f32 %v1545_v24  ;;  %v1687_v24 = vld [vmem:[#allocation6 + $0x18] sm:$0xff] }
 0x787   : > { %v3454_v39 = vunpack.c.h.bf16 %v1687_v24 }
 0x78e   : > { %v2440_v25 = vpop.eup %2439 }
 0x78f   : > { %v3351_v27 = vmul.f32 %v2440_v25, %v3313_v51 }
 0x790   : > { %v2442_v28 = vpop.eup %2441  ;;  %v3353_v29 = vpop.permute.xlu0 %1581 }
 0x791   : > { %v3355_v30 = vmul.f32 %v2442_v28, %v1505_v55  ;;  %1571 = vrot.lane.b32.xlu0 %v3351_v27, %s2841_s19  ;;  %v1587_v33 = vmul.f32 %v3353_v29, %v3359_v31  ;;  %v1557_v42 = vmul.f32 %v3359_v31, %v3351_v27  ;;  %v1624_v51 = vmul.f32 %v3380_v45, %v3353_v29 }
 0x792   : > { %v3361_v32 = vpop.permute.xlu1 %1583  ;;  %v1610_v60 = vmul.f32 %v3380_v45, %v3351_v27  ;;  %v1665_v12 = vmul.f32 %v3418_v7, %v3353_v29  ;;  %v1651_v26 = vmul.f32 %v3418_v7, %v3351_v27 }
 0x793   : > { %1573 = vrot.lane.b32.xlu1 %v3355_v30, %s2841_s19  ;;  %v1588_v37 = vmul.f32 %v3361_v32, %v3367_v34  ;;  %v1558_v44 = vmul.f32 %v3367_v34, %v3355_v30  ;;  %v1625_v57 = vmul.f32 %v3385_v52, %v3361_v32  ;;  %v1611_v61 = vmul.f32 %v3385_v52, %v3355_v30 }
 0x794   : > { %v1191_v35 = vpop.permute.xlu0 %1190 }
 0x795   : > { %v1196_v36 = vadd.f32 %v1191_v35, %v1186_v17  ;;  %1591 = vrot.lane.b32.xlu0 %v1587_v33, %s2841_s19  ;;  %v1652_v33 = vmul.f32 %v3422_v10, %v3355_v30  ;;  %v3447_v35 = vunpack.c.l.bf16 %v1687_v24 }
 0x796   : > { %v1193_v38 = vpop.permute.xlu1 %1192 }
 0x797   : > { %v1198_v40 = vadd.f32 1e-12, %v1196_v36  ;;  %v1197_v41 = vadd.f32 %v1193_v38, %v1187_v18  ;;  %1593 = vrot.lane.b32.xlu1 %v1588_v37, %s2841_s19  ;;  %v1706_v38 = vmul.f32 %v3447_v35, %v3353_v29 }
 0x798   : > { %v1285_v43 = vpop.permute.xlu0 %1284 }
 0x799   : > { %2443 = vrsqrt.f32 %v1198_v40  ;;  %1220 = vst.msk [vmem:[%s3240_s8] sm:$0xff] %vm947_vm2, %v1198_v40  ;;  %1561 = vrot.lane.b32.xlu0 %v1557_v42, %s2841_s19  ;;  %v1199_v46 = vadd.f32 1e-12, %v1197_v41  ;;  %v1290_v47 = vadd.f32 %v1285_v43, %v1280_v19  ;;  %vm1202_vm13 = vcmp.eq.f32.partialorder %v1198_v40, inf }
 0x79a   : > { %v1287_v48 = vpop.permute.xlu1 %1286  ;;  %v1205_v6 = vand.u32 2147483648, %v1198_v40  ;;  %vm1204_vm14 = vcmp.eq.f32.partialorder %v1198_v40, 0.0 }
 0x79b   : > { %v1291_v49 = vadd.f32 %v1287_v48, %v1281_v20  ;;  %1563 = vrot.lane.b32.xlu1 %v1558_v44, %s2841_s19  ;;  %2445 = vrsqrt.f32 %v1199_v46  ;;  %1221 = vst.msk [vmem:[%s3240_s8 + $0x8] sm:$0xff] %vm947_vm2, %v1199_v46  ;;  %v3389_v55 = vadd.f32 1e-12, %v1290_v47  ;;  %vm1209_vm15 = vcmp.eq.f32.partialorder %v1199_v46, inf  ;;  %s2629_s8 = scalar_lea.vmem %s3575_s2, 256 }
 0x79c   : > { %v1381_v54 = vpop.permute.xlu0 %1380  ;;  %v1212_v17 = vand.u32 2147483648, %v1199_v46  ;;  %vm1211_vm0 = vcmp.eq.f32.partialorder %v1199_v46, 0.0  ;;  %v1666_v20 = vmul.f32 %v3422_v10, %v3361_v32  ;;  %v1707_v44 = vmul.f32 %v3454_v39, %v3361_v32  ;;  %p2630_p8 = scmp.ne.s32.totalorder %s3575_s2, %s2629_s8 }
 0x79d   : > { %v3391_v56 = vadd.f32 1e-12, %v1291_v49  ;;  %1628 = vrot.lane.b32.xlu0 %v1624_v51, %s2841_s19  ;;  %2447 = vrsqrt.f32 %v3389_v55  ;;  %v1386_v58 = vadd.f32 %v1381_v54, %v1376_v21  ;;  %vm1296_vm1 = vcmp.eq.f32.partialorder %v3389_v55, inf }
 0x79e   : > { %v1383_v59 = vpop.permute.xlu1 %1382  ;;  %v1299_v37 = vand.u32 2147483648, %v3389_v55  ;;  %vm1298_vm3 = vcmp.eq.f32.partialorder %v3389_v55, 0.0  ;;  %v1692_v47 = vmul.f32 %v3447_v35, %v3351_v27  ;;  %v1693_v32 = vmul.f32 %v3454_v39, %v3355_v30  ;;  %p2631_p13 = pnand %p2630_p8, %p3810_p6 }
 0x79f   : > { %1630 = vrot.lane.b32.xlu1 %v1625_v57, %s2841_s19  ;;  %2449 = vrsqrt.f32 %v3391_v56  ;;  %v1387_v62 = vadd.f32 %v1383_v59, %v1377_v22  ;;  %v3408_v2 = vadd.f32 1e-12, %v1386_v58  ;;  %vm1303_vm4 = vcmp.eq.f32.partialorder %v3391_v56, inf }
 0x7a0   : > { %vm1305_vm5 = vcmp.eq.f32.partialorder %v3391_v56, 0.0  ;;  %p2632_p5 = pneg %p2631_p13 }
 0x7a1   : > { %1614 = vrot.lane.b32.xlu0 %v1610_v60, %s2841_s19  ;;  %v3420_v9 = vadd.f32 1e-12, %v1387_v62  ;;  %2451 = vrsqrt.f32 %v3408_v2  ;;  %vm1392_vm6 = vcmp.eq.f32.partialorder %v3408_v2, inf  ;;  %v1395_v57 = vand.u32 2147483648, %v3408_v2 }
 0x7a2   : > { %vm1394_vm7 = vcmp.eq.f32.partialorder %v3408_v2, 0.0 }
 0x7a3   : > { %v2444_v0 = vpop.eup %2443  ;;  %1616 = vrot.lane.b32.xlu1 %v1611_v61, %s2841_s19  ;;  %2453 = vrsqrt.f32 %v3420_v9  ;;  %vm1399_vm8 = vcmp.eq.f32.partialorder %v3420_v9, inf  ;;  %v1402_v60 = vand.u32 2147483648, %v3420_v9  ;;  %vm1401_vm9 = vcmp.eq.f32.partialorder %v3420_v9, 0.0 }
 0x7a4   : > { %v1201_v3 = vmul.f32 %v2444_v0, %v1198_v40 }
 0x7a5   : > { %1476 = vrot.lane.b32.xlu0 %v3406_v1, %s2841_s19  ;;  %v2446_v50 = vpop.eup %2445 }
 0x7a6   : > { %v1203_v8 = vsel %vm1202_vm13, %v1198_v40, %v1201_v3  ;;  %v1208_v53 = vmul.f32 %v2446_v50, %v1199_v46 }
 0x7a7   : > { %v1206_v11 = vsel %vm1204_vm14, %v1205_v6, %v1203_v8  ;;  %1478 = vrot.lane.b32.xlu1 %v3413_v4, %s2841_s19  ;;  %v2448_v18 = vpop.eup %2447 }
 0x7a8   : > { %v1214_v13 = vadd.f32 %v1206_v11, %v1184_v5  ;;  %v1210_v19 = vsel %vm1209_vm15, %v1199_v46, %v1208_v53  ;;  %v1295_v23 = vmul.f32 %v2448_v18, %v3389_v55  ;;  %v1306_v46 = vand.u32 2147483648, %v3391_v56 }
 0x7a9   : > { %1669 = vrot.lane.b32.xlu0 %v1665_v12, %s2841_s19  ;;  %v2450_v21 = vpop.eup %2449  ;;  %v1213_v22 = vsel %vm1211_vm0, %v1212_v17, %v1210_v19  ;;  %v1555_v53 = vmul.f32 %v3359_v31, %v3328_v14  ;;  %v1556_v17 = vmul.f32 %v3367_v34, %v3332_v16 }
 0x7aa   : > { %1216 = vst.msk [vmem:[%s3238_s20] sm:$0xff] %vm947_vm2, %v1214_v13  ;;  %v1215_v25 = vadd.f32 %v1213_v22, %v1185_v15  ;;  %v1302_v28 = vmul.f32 %v2450_v21, %v3391_v56  ;;  %v1297_v36 = vsel %vm1296_vm1, %v3389_v55, %v1295_v23 }
 0x7ab   : > { %1671 = vrot.lane.b32.xlu1 %v1666_v20, %s2841_s19  ;;  %v2452_v40 = vpop.eup %2451  ;;  %v1300_v42 = vsel %vm1298_vm3, %v1299_v37, %v1297_v36 }
 0x7ac   : > { %1217 = vst.msk [vmem:[%s3238_s20 + $0x8] sm:$0xff] %vm947_vm2, %v1215_v25  ;;  %v1304_v43 = vsel %vm1303_vm4, %v3391_v56, %v1302_v28  ;;  %v1391_v54 = vmul.f32 %v2452_v40, %v3408_v2  ;;  %v1608_v28 = vmul.f32 %v3380_v45, %v3328_v14 }
 0x7ad   : > { %1655 = vrot.lane.b32.xlu0 %v1651_v26, %s2841_s19  ;;  %v2454_v48 = vpop.eup %2453  ;;  %v1307_v51 = vsel %vm1305_vm5, %v1306_v46, %v1304_v43 }
 0x7ae   : > { %v1398_v27 = vmul.f32 %v2454_v48, %v3420_v9  ;;  %v1393_v56 = vsel %vm1392_vm6, %v3408_v2, %v1391_v54 }
 0x7af   : > { %1657 = vrot.lane.b32.xlu1 %v1652_v33, %s2841_s19  ;;  %v1396_v30 = vsel %vm1394_vm7, %v1395_v57, %v1393_v56 }
 0x7b0   : > { %v1400_v58 = vsel %vm1399_vm8, %v3420_v9, %v1398_v27 }
 0x7b1   : > { %v1278_v41 = vld [vmem:[%s3238_s20] sm:$0xff]  ;;  %1710 = vrot.lane.b32.xlu0 %v1706_v38, %s2841_s19  ;;  %v1403_v62 = vsel %vm1401_vm9, %v1402_v60, %v1400_v58  ;;  %v1609_v38 = vmul.f32 %v3385_v52, %v3332_v16 }
 0x7b2   : > { %v1308_v29 = vadd.f32 %v1300_v42, %v1278_v41 }
 0x7b3   : > { %1712 = vrot.lane.b32.xlu1 %v1707_v44, %s2841_s19  ;;  %v1279_v49 = vld [vmem:[%s3238_s20 + $0x8] sm:$0xff] }
 0x7b4   : > { %1310 = vst.msk [vmem:[%s3238_s20] sm:$0xff] %vm947_vm2, %v1308_v29  ;;  %v1309_v55 = vadd.f32 %v1307_v51, %v1279_v49 }
 0x7b5   : > { %1696 = vrot.lane.b32.xlu0 %v1692_v47, %s2841_s19 }
 0x7b6   : > { %1311 = vst.msk [vmem:[%s3238_s20 + $0x8] sm:$0xff] %vm947_vm2, %v1309_v55 }
 0x7b7   : > { %1698 = vrot.lane.b32.xlu1 %v1693_v32, %s2841_s19  ;;  %s2065_s19 = sshll.u32 %s3804_s30, 3  ;;  %s3807_s30 = sld [smem:[#allocation45_spill]] }
 0x7b8   : > { %s3553_s6 = sadd.s32 %s2065_s19, %s2064_s23  ;;  %s3805_s23 = sld [smem:[#allocation46_spill]] }
 0x7b9   : > { %s2066_s4 = sshll.u32 %s3553_s6, 7  ;;  %s2849_s6 = smov [#allocation19]  }
 0x7ba   : > { %s3581_s0 = scalar_lea.hbm %s3806_s7, %s2066_s4  ;;  %s2633_s10 = sshll.u32 %s2849_s6, 4  ;;  %s2634_s10 = int_to_ptr.vmem [resolvable:$false] %s2633_s10 }
 0x7bb   : > { %v1374_v59 = vld [vmem:[%s3238_s20] sm:$0xff]  ;;  %s2635_s9 = scalar_lea.vmem %s2634_s10, 512  ;;  %p2636_p2 = scmp.lt.s32.totalorder %s3575_s2, %s2634_s10 }
 0x7bc   : > { %v1404_v61 = vadd.f32 %v1396_v30, %v1374_v59  ;;  %p2637_p7 = scmp.lt.s32.totalorder %s2635_s9, %s2629_s8 }
 0x7bd   : > { %v1375_v63 = vld [vmem:[%s3238_s20 + $0x8] sm:$0xff]  ;;  %s3808_s18 = smov %s3807_s30  ;;  %s3592_s14 = scalar_lea.hbm %s3807_s30, %s2066_s4 }
 0x7be   : > { %1406 = vst.msk [vmem:[%s3238_s20] sm:$0xff] %vm947_vm2, %v1404_v61  ;;  %v1405_v0 = vadd.f32 %v1403_v62, %v1375_v63  ;;  %v1650_v61 = vmul.f32 %v3422_v10, %v3332_v16  ;;  %s3572_s19 = scalar_lea.hbm %s3805_s23, %s2080_s11  ;;  %p2638_p9 = por %p2637_p7, %p2636_p2 }
 0x7c0   : > { %1407 = vst.msk [vmem:[%s3238_s20 + $0x8] sm:$0xff] %vm947_vm2, %v1405_v0  ;;  %p2639_p4 = pnand %p2638_p9, %p2632_p5 }
 0x803   : > { %v3493_v3 = vpop.permute.xlu0 %1571 }
 0x804   : > { %v1577_v5 = vmul.f32 %v3493_v3, %v3359_v31  ;;  %v1622_v22 = vmul.f32 %v3380_v45, %v3493_v3  ;;  %v1663_v32 = vmul.f32 %v3418_v7, %v3493_v3 }
 0x805   : > { %v3495_v2 = vpop.permute.xlu1 %1573 }
 0x806   : > { %v1578_v8 = vmul.f32 %v3495_v2, %v3367_v34  ;;  %v1623_v25 = vmul.f32 %v3385_v52, %v3495_v2  ;;  %v1664_v27 = vmul.f32 %v3422_v10, %v3495_v2 }
 0x807   : > { %v1592_v6 = vpop.permute.xlu0 %1591 }
 0x808   : > { %v1597_v50 = vsub.f32 %v1577_v5, %v1592_v6 }
 0x809   : > { %v1594_v9 = vpop.permute.xlu1 %1593 }
 0x80a   : > { %v1598_v11 = vsub.f32 %v1578_v8, %v1594_v9  ;;  %v1599_v13 = vand.u32 2147483647, %v1597_v50  ;;  %v1704_v9 = vmul.f32 %v3447_v35, %v3493_v3  ;;  %v1691_v3 = vmul.f32 %v3454_v39, %v3332_v16 }
 0x80b   : > { %v1562_v12 = vpop.permute.xlu0 %1561 }
 0x80c   : > { %v1567_v15 = vadd.f32 %v1562_v12, %v1555_v53  ;;  %v1600_v19 = vand.u32 2147483647, %v1598_v11 }
 0x80d   : > { %v1564_v18 = vpop.permute.xlu1 %1563 }
 0x80e   : > { %v1601_v20 = vsub.f32 %v1567_v15, %v1599_v13  ;;  %v1568_v21 = vadd.f32 %v1564_v18, %v1556_v17  ;;  %v1705_v15 = vmul.f32 %v3454_v39, %v3495_v2  ;;  %v1690_v17 = vmul.f32 %v3447_v35, %v3328_v14 }
 0x80f   : > { %v1629_v23 = vpop.permute.xlu0 %1628 }
 0x810   : > { %1603 = vst.msk [vmem:[%s3236_s24] sm:$0xff] %vm947_vm2, %v1601_v20  ;;  %v1602_v24 = vsub.f32 %v1568_v21, %v1600_v19  ;;  %v1634_v31 = vsub.f32 %v1622_v22, %v1629_v23 }
 0x811   : > { %v1631_v26 = vpop.permute.xlu1 %1630 }
 0x812   : > { %1604 = vst.msk [vmem:[%s3236_s24 + $0x8] sm:$0xff] %vm947_vm2, %v1602_v24  ;;  %v1635_v34 = vsub.f32 %v1623_v25, %v1631_v26  ;;  %v1636_v36 = vand.u32 2147483647, %v1634_v31  ;;  %v1470_v24 = vld [vmem:[%s3238_s20] sm:$0xff] }
 0x813   : > { %v1615_v33 = vpop.permute.xlu0 %1614 }
 0x814   : > { %v1620_v37 = vadd.f32 %v1615_v33, %v1608_v28  ;;  %v1637_v41 = vand.u32 2147483647, %v1635_v34 }
 0x815   : > { %v1617_v40 = vpop.permute.xlu1 %1616 }
 0x816   : > { %v1638_v42 = vsub.f32 %v1620_v37, %v1636_v36  ;;  %v1621_v43 = vadd.f32 %v1617_v40, %v1609_v38  ;;  %v1471_v37 = vld [vmem:[%s3238_s20 + $0x8] sm:$0xff] }
 0x817   : > { %v1640_v44 = vld [vmem:[%s3236_s24] sm:$0xff]  ;;  %v1477_v29 = vpop.permute.xlu0 %1476 }
 0x818   : > { %v1642_v46 = vadd.f32 %v1640_v44, %v1638_v42  ;;  %v1639_v47 = vsub.f32 %v1621_v43, %v1637_v41  ;;  %v1482_v48 = vadd.f32 %v1477_v29, %v3406_v1 }
 0x819   : > { %v1641_v49 = vld [vmem:[%s3236_s24 + $0x8] sm:$0xff]  ;;  %v1479_v45 = vpop.permute.xlu1 %1478 }
 0x81a   : > { %1644 = vst.msk [vmem:[%s3236_s24] sm:$0xff] %vm947_vm2, %v1642_v46  ;;  %v1643_v51 = vadd.f32 %v1641_v49, %v1639_v47  ;;  %v1484_v54 = vadd.f32 1e-12, %v1482_v48  ;;  %v1483_v55 = vadd.f32 %v1479_v45, %v3413_v4  ;;  %v1649_v4 = vmul.f32 %v3418_v7, %v3328_v14 }
 0x81b   : > { %v1670_v52 = vpop.permute.xlu0 %1669 }
 0x81c   : > { %1645 = vst.msk [vmem:[%s3236_s24 + $0x8] sm:$0xff] %vm947_vm2, %v1643_v51  ;;  %2455 = vrsqrt.f32 %v1484_v54  ;;  %v3529_v1 = vadd.f32 1e-12, %v1483_v55  ;;  %v1675_v56 = vsub.f32 %v1663_v32, %v1670_v52  ;;  %vm1488_vm10 = vcmp.eq.f32.partialorder %v1484_v54, inf }
 0x81d   : > { %v1672_v57 = vpop.permute.xlu1 %1671  ;;  %v1491_v20 = vand.u32 2147483648, %v1484_v54  ;;  %vm1490_vm11 = vcmp.eq.f32.partialorder %v1484_v54, 0.0 }
 0x81e   : > { %v1676_v30 = vsub.f32 %v1664_v27, %v1672_v57  ;;  %2457 = vrsqrt.f32 %v3529_v1  ;;  %v1677_v59 = vand.u32 2147483647, %v1675_v56  ;;  %vm1495_vm12 = vcmp.eq.f32.partialorder %v3529_v1, inf }
 0x81f   : > { %v1656_v58 = vpop.permute.xlu0 %1655  ;;  %v1498_v25 = vand.u32 2147483648, %v3529_v1  ;;  %vm1497_vm13 = vcmp.eq.f32.partialorder %v3529_v1, 0.0 }
 0x820   : > { %v1661_v60 = vadd.f32 %v1656_v58, %v1649_v4  ;;  %v1678_v63 = vand.u32 2147483647, %v1676_v30 }
 0x821   : > { %v1658_v62 = vpop.permute.xlu1 %1657  ;;  %v1681_v6 = vld [vmem:[%s3236_s24] sm:$0xff] }
 0x822   : > { %v1679_v0 = vsub.f32 %v1661_v60, %v1677_v59  ;;  %v1662_v5 = vadd.f32 %v1658_v62, %v1650_v61 }
 0x823   : > { %v1711_v50 = vpop.permute.xlu0 %1710  ;;  %v1682_v11 = vld [vmem:[%s3236_s24 + $0x8] sm:$0xff] }
 0x824   : > { %v1683_v8 = vadd.f32 %v1681_v6, %v1679_v0  ;;  %v1680_v7 = vsub.f32 %v1662_v5, %v1678_v63  ;;  %v1716_v13 = vsub.f32 %v1704_v9, %v1711_v50 }
 0x825   : > { %v1713_v53 = vpop.permute.xlu1 %1712 }
 0x826   : > { %v2456_v12 = vpop.eup %2455  ;;  %1685 = vst.msk [vmem:[%s3236_s24] sm:$0xff] %vm947_vm2, %v1683_v8  ;;  %v1684_v10 = vadd.f32 %v1682_v11, %v1680_v7  ;;  %v1717_v21 = vsub.f32 %v1705_v15, %v1713_v53  ;;  %v1718_v16 = vand.u32 2147483647, %v1716_v13 }
 0x827   : > { %v1487_v18 = vmul.f32 %v2456_v12, %v1484_v54  ;;  %v1697_v19 = vpop.permute.xlu0 %1696 }
 0x828   : > { %1686 = vst.msk [vmem:[%s3236_s24 + $0x8] sm:$0xff] %vm947_vm2, %v1684_v10  ;;  %v1702_v2 = vadd.f32 %v1697_v19, %v1690_v17  ;;  %v2458_v22 = vpop.eup %2457  ;;  %v1719_v28 = vand.u32 2147483647, %v1717_v21 }
 0x829   : > { %v1489_v23 = vsel %vm1488_vm10, %v1484_v54, %v1487_v18  ;;  %v1699_v14 = vpop.permute.xlu1 %1698  ;;  %v1494_v35 = vmul.f32 %v2458_v22, %v3529_v1 }
 0x82a   : > { %v1703_v39 = vadd.f32 %v1699_v14, %v1691_v3  ;;  %v1492_v31 = vsel %vm1490_vm11, %v1491_v20, %v1489_v23  ;;  %v1720_v33 = vsub.f32 %v1702_v2, %v1718_v16 }
 0x82b   : > { %v1500_v26 = vadd.f32 %v1492_v31, %v1470_v24  ;;  %v1496_v34 = vsel %vm1495_vm12, %v3529_v1, %v1494_v35 }
 0x82c   : > { %v1499_v38 = vsel %vm1497_vm13, %v1498_v25, %v1496_v34  ;;  %v1721_v41 = vsub.f32 %v1703_v39, %v1719_v28 }
 0x82d   : > { %v1722_v36 = vld [vmem:[%s3236_s24] sm:$0xff]  ;;  %1502 = vst.msk [vmem:[%s3238_s20] sm:$0xff] %vm947_vm2, %v1500_v26  ;;  %v1501_v42 = vadd.f32 %v1499_v38, %v1471_v37 }
 0x82e   : > { %v1724_v40 = vadd.f32 %v1722_v36, %v1720_v33 }
 0x82f   : > { %v1723_v43 = vld [vmem:[%s3236_s24 + $0x8] sm:$0xff]  ;;  %1503 = vst.msk [vmem:[%s3238_s20 + $0x8] sm:$0xff] %vm947_vm2, %v1501_v42 }
 0x830   : > { %1726 = vst.msk [vmem:[%s3236_s24] sm:$0xff] %vm947_vm2, %v1724_v40  ;;  %v1725_v44 = vadd.f32 %v1723_v43, %v1721_v41 }
 0x831   : > { %2642 = shalt.err (!%p2639_p4)
}
 0x832   : > { %s2643_s13 = scalar_lea.hbm %s3572_s19, 256  ;;  %s2647_s4 = scalar_lea.hbm %s3805_s23, 1024 }
 0x833   : > { %p2644_p3 = scmp.ne.s32.totalorder %s3572_s19, %s2643_s13  ;;  %p2648_p12 = scmp.lt.u32.totalorder %s3572_s19, %s3805_s23 }
 0x834   : > { %p2649_p0 = scmp.lt.u32.totalorder %s2647_s4, %s2643_s13  ;;  %p2651_p8 = scmp.lt.u32.totalorder %s2643_s13, %s3572_s19 }
 0x835   : > { %p2645_p11 = pnand %p2644_p3, %p3810_p6 }
 0x836   : > { %p2650_p10 = por %p2649_p0, %p2648_p12 }
 0x837   : > { %p2646_p1 = pneg %p2645_p11 }
 0x838   : > { %p2652_p13 = por %p2651_p8, %p2650_p10 }
 0x83a   : > { %p2653_p5 = pnand %p2652_p13, %p2646_p1 }
 0x83c   : > { %2656 = shalt.err (!%p2653_p5)
}
 0x83d   : > { %s2850_s9 = smov 128   ;;  %s2851_s26 = smov 8   ;;  %1727 = vst.msk [vmem:[%s3236_s24 + $0x8] sm:$0xff] %vm947_vm2, %v1725_v44 }
 0x83e   : > { %2271 = dma.vmem_to_hbm [thread:$0]  (%p3810_p6), %s3575_s2, 256, %s3572_s19, %s3598_s17, %s2850_s9, %s2850_s9, %s2851_s26  }
 0x83f   : > { %s2657_s30 = scalar_lea.vmem %s3583_s1, 256  ;;  %p3811_p7 = scmp.ne.s32.totalorder %s3787_s22, 0 }
 0x840   : > { %p2658_p2 = scmp.ne.s32.totalorder %s3583_s1, %s2657_s30  ;;  %s2852_s8 = smov [#allocation21]  }
 0x841   : > { %s2661_s6 = sshll.u32 %s2852_s8, 4  ;;  %s2662_s6 = int_to_ptr.vmem [resolvable:$false] %s2661_s6 }
 0x842   : > { %p2659_p9 = pnand %p2658_p2, %p3811_p7  ;;  %s2663_s13 = scalar_lea.vmem %s2662_s6, 512 }
 0x843   : > { %p2664_p3 = scmp.lt.s32.totalorder %s3583_s1, %s2662_s6  ;;  %p2665_p11 = scmp.lt.s32.totalorder %s2663_s13, %s2657_s30 }
 0x844   : > { %p2660_p4 = pneg %p2659_p9 }
 0x845   : > { %p2666_p1 = por %p2665_p11, %p2664_p3 }
 0x847   : > { %p2667_p12 = pnand %p2666_p1, %p2660_p4 }
 0x849   : > { %2670 = shalt.err (!%p2667_p12)
}
 0x84a   : > { %s2671_s21 = scalar_lea.hbm %s3581_s0, 256  ;;  %s2675_s19 = scalar_lea.hbm %s3806_s7, 4096 }
 0x84b   : > { %p2672_p6 = scmp.ne.s32.totalorder %s3581_s0, %s2671_s21  ;;  %p2676_p8 = scmp.lt.u32.totalorder %s3581_s0, %s3806_s7 }
 0x84c   : > { %p2677_p13 = scmp.lt.u32.totalorder %s2675_s19, %s2671_s21  ;;  %p2679_p2 = scmp.lt.u32.totalorder %s2671_s21, %s3581_s0 }
 0x84d   : > { %p2673_p0 = pnand %p2672_p6, %p3811_p7 }
 0x84e   : > { %p2678_p5 = por %p2677_p13, %p2676_p8 }
 0x84f   : > { %p2674_p10 = pneg %p2673_p0 }
 0x850   : > { %p2680_p9 = por %p2679_p2, %p2678_p5 }
 0x852   : > { %p2681_p4 = pnand %p2680_p9, %p2674_p10 }
 0x854   : > { %2684 = shalt.err (!%p2681_p4)
}
 0x855   : > { %2272 = dma.vmem_to_hbm [thread:$0]  (%p3811_p7), %s3583_s1, 256, %s3581_s0, %s3598_s17, %s2850_s9, %s2850_s9, %s2851_s26  }
 0x856   : > { %s3812_s4 = sand.u32 1, %s2791_s28   ;;  %s2685_s10 = scalar_lea.vmem %s3594_s5, 256 }
 0x857   : > { %s3654_s11 = scalar_lea.sflag [#allocation9], %s3812_s4  ;;  %p2686_p3 = scmp.ne.s32.totalorder %s3594_s5, %s2685_s10 }
 0x858   : > { %s2853_s30 = smov [#allocation18]  }
 0x859   : > { %p2687_p11 = pnand %p2686_p3, %p3811_p7  ;;  %s2689_s8 = sshll.u32 %s2853_s30, 4  ;;  %s2690_s8 = int_to_ptr.vmem [resolvable:$false] %s2689_s8 }
 0x85a   : > { %s2691_s6 = scalar_lea.vmem %s2690_s8, 512  ;;  %p2692_p12 = scmp.lt.s32.totalorder %s3594_s5, %s2690_s8 }
 0x85b   : > { %p2688_p1 = pneg %p2687_p11  ;;  %p2693_p6 = scmp.lt.s32.totalorder %s2691_s6, %s2685_s10 }
 0x85d   : > { %p2694_p0 = por %p2693_p6, %p2692_p12 }
 0x85f   : > { %p2695_p10 = pnand %p2694_p0, %p2688_p1 }
 0x861   : > { %2698 = shalt.err (!%p2695_p10)
}
 0x862   : > { %s2699_s0 = scalar_lea.hbm %s3592_s14, 256  ;;  %s2703_s13 = scalar_lea.hbm %s3808_s18, 4096 }
 0x863   : > { %p2700_p8 = scmp.ne.s32.totalorder %s3592_s14, %s2699_s0  ;;  %p2704_p2 = scmp.lt.u32.totalorder %s3592_s14, %s3808_s18 }
 0x864   : > { %p2705_p9 = scmp.lt.u32.totalorder %s2703_s13, %s2699_s0  ;;  %p2707_p3 = scmp.lt.u32.totalorder %s2699_s0, %s3592_s14 }
 0x865   : > { %p2701_p13 = pnand %p2700_p8, %p3811_p7 }
 0x866   : > { %p2706_p4 = por %p2705_p9, %p2704_p2 }
 0x867   : > { %p2702_p5 = pneg %p2701_p13 }
 0x868   : > { %p2708_p11 = por %p2707_p3, %p2706_p4 }
 0x86a   : > { %p2709_p1 = pnand %p2708_p11, %p2702_p5 }
 0x86c   : > { %2712 = shalt.err (!%p2709_p1)
}
 0x86d   : > { %2270 = dma.vmem_to_hbm [thread:$0]  (%p3811_p7), %s3594_s5, 256, %s3592_s14, %s3654_s11, %s2850_s9, %s2850_s9, %s2851_s26  }
 0x86e PF: > { %p2317_p12 = scmp.ge.s32.totalorder %s2827_s15, 2  ;;  %s1803_s2 = sand.u32 1, %s2787_s27  }
 0x86f   : > { %p3813_p6 = scmp.ne.s32.totalorder %s3790_s3, 0  ;;  %s1804_s19 = scalar_lea.sflag [#allocation9], %s1803_s2 }
 0x871   : > { %p2297_p0 = pnand %p2317_p12, %p3813_p6 }
 0x873   : > { %2774 = dma.done.wait (!%p2297_p0), %s1804_s19, 256  }
 0x874   : > { %2776 = vsyncadd (!%p2297_p0), %s1804_s19, 4294967040  ;;  %s3814_s22 = sadd.s32 4294967294, %s2827_s15   ;;  %p3815_p10 = scmp.ne.s32.totalorder %s3791_s12, 0 }
 0x875   : > { %s1812_s16 = sand.u32 1, %s3814_s22  }
 0x876   : > { %p2300_p8 = pnand %p2317_p12, %p3815_p10  ;;  %s1813_s20 = scalar_lea.sflag [#allocation20], %s1812_s16 }
 0x878   : > { %2778 = dma.done.wait (!%p2300_p8), %s1813_s20, 256  }
 0x879   : > { %2780 = vsyncadd (!%p2300_p8), %s1813_s20, 4294967040 }
 0x87a   : > { %2782 = dma.done.wait (!%p2297_p0), %s1813_s20, 256  }
 0x87b   : > { %2784 = vsyncadd (!%p2297_p0), %s1813_s20, 4294967040  ;;  %s31_s15 = sadd.s32 1, %s2827_s15   ;;  %s3816_s30 = sld [smem:[#allocation29_spill]] }
 0x87c   : > { %p28_p7 = scmp.ge.s32.totalorder %s31_s15, 18   ;;  %s3817_s9 = sld [smem:[#allocation30_spill]] }
 0x87d   : > { %s3818_s10 = sld [smem:[#allocation38_spill]]  ;;  %s3819_s11 = sld [smem:[#allocation33_spill]] }
 0x87e   : > { %s3820_s12 = sld [smem:[#allocation34_spill]]  ;;  %s3821_s13 = sld [smem:[#allocation36_spill]] }
 0x87f   : > { %s3822_s14 = sld [smem:[#allocation37_spill]]  ;;  %s3823_s27 = smov %s2791_s28 }
 0x880   : > { %s3824_s28 = smov %s2795_s29  ;;  %s3825_s29 = smov %s3145_s25 }
 0x881   :  { %30 = sbr.rel (!%p28_p7) target bundleno = 24 (0x18), region = 152 }
 0x888   :  { %1827 = vsyncpa [#allocation8], 1 }
 0x889   :  { %1829 = vsyncpa [#allocation8 + $0x1], 1 }
 0x88a   :  { %1830 = vsyncpa [#allocation11], 1 }
 0x88b   :  { %1831 = vsyncpa [#allocation14], 1 }
 0x88c   :  { %1832 = vsyncpa [#allocation17], 1 }
 0x88d   :  { %1833 = vsyncpa [#allocation9], 1 }
 0x88e   :  { %1835 = vsyncpa [#allocation9 + $0x1], 1 }
 0x88f   :  { %1836 = vsyncpa [#allocation20], 1 }
 0x890   :  { %1838 = vsyncpa [#allocation20 + $0x1], 1 }

// kernel: fsim_loss.3
= control target key start
LH: loop header
LB: loop body
LE: loop exit
PB: predicated region body
PF: predicated region fallthrough
CT: control target
= control target key end

     0   :  { %s2950_s0 = inlined_call_operand.hbm [shape: f32[2,4], index: 0, kind: input, shape index: {}]   ;;  %s2951_s1 = inlined_call_operand.hbm [shape: f32[2,4], index: 1, kind: input, shape index: {}]   ;;  %s2952_s2 = inlined_call_operand.hbm [shape: f32[4,4,16,16], index: 2, kind: input, shape index: {}, may-alias: {2,3}]   ;;  %s2953_s3 = inlined_call_operand.hbm [shape: f32[4,4,16,16], index: 3, kind: input, shape index: {}, may-alias: {2,3}]   ;;  %s2954_s4 = inlined_call_operand.hbm [shape: f32[4,16,16], index: 4, kind: input, shape index: {}, may-alias: {4,5}]   ;;  %s2955_s5 = inlined_call_operand.hbm [shape: f32[4,16,16], index: 5, kind: input, shape index: {}, may-alias: {4,5}]   ;;  %s2956_s6 = inlined_call_operand.hbm [shape: f32[2,3,16,16], index: 6, kind: input, shape index: {}]   ;;  %s2957_s7 = inlined_call_operand.hbm [shape: f32[2,3,16,16], index: 7, kind: input, shape index: {}]   ;;  %s2958_s8 = inlined_call_operand.hbm [shape: f32[2,2,128], index: 8, kind: output, shape index: {}]  }
   0x1   :  { %2982 = sst [smem:[#allocation34_spill]] %s2950_s0 }
   0x2   :  { %2983 = sst [smem:[#allocation35_spill]] %s2951_s1 }
   0x3   :  { %2984 = sst [smem:[#allocation36_spill]] %s2953_s3 }
   0x4   :  { %2985 = sst [smem:[#allocation37_spill]] %s2954_s4 }
   0x5   :  { %2986 = sst [smem:[#allocation38_spill]] %s2955_s5 }
   0x6   :  { %2987 = sst [smem:[#allocation39_spill]] %s2957_s7 }
   0x7   :  { %2988 = sst [smem:[#allocation40_spill]] %s2958_s8 }
   0x8   :  { %13 = vsyncpa [#allocation5], 0 }
   0x9   :  { %14 = vsyncpa [#allocation7], 0 }
   0xa   :  { %15 = vsyncpa [#allocation3], 0 }
   0xb   :  { %17 = vsyncpa [#allocation3 + $0x1], 0 }
   0xc   :  { %18 = vsyncpa [#allocation10], 0 }
   0xd   :  { %20 = vsyncpa [#allocation10 + $0x1], 0 }
   0xe   :  { %21 = vsyncpa [#allocation13], 0 }
   0xf   :  { %23 = vsyncpa [#allocation13 + $0x1], 0 }
  0x10   :  { %24 = vsyncpa [#allocation16], 0 }
  0x11   :  { %26 = vsyncpa [#allocation16 + $0x1], 0 }
  0x12   :  { %27 = vsyncpa [#allocation4], 0 }
  0x13   :  { %29 = vsyncpa [#allocation4 + $0x1], 0  ;;  %s2045_s27 = smov 0   ;;  %s2047_s28 = smov 0  }
  0x14   :  { %s2049_s29 = smov 0   ;;  %s2051_s30 = smov 0  }
  0x15   :  { %s2053_s9 = smov 0   ;;  %s2055_s10 = smov 0  }
  0x16   :  { %s2057_s11 = smov 0  }
  0x17 LB: > { %2989 = sst [smem:[#allocation27_spill]] %s1968_s29  ;;  %s2081_s12 = sadd.s32 1, %s1984_s11   ;;  %s1984_s11 = sphi %s2057_s11, %s3044_s11   ;;  %s1980_s10 = sphi %s2055_s10, %s3048_s10   ;;  %s1976_s9 = sphi %s2053_s9, %s3052_s9   ;;  %s1972_s30 = sphi %s2051_s30, %s3051_s30   ;;  %s1968_s29 = sphi %s2049_s29, %s3046_s29   ;;  %s1964_s28 = sphi %s2047_s28, %s3050_s28   ;;  %s1960_s27 = sphi %s2045_s27, %s3049_s27  }
  0x18   : > { %2990 = sst [smem:[#allocation28_spill]] %s1972_s30  ;;  %p2966_p0 = scmp.eq.s32.totalorder %s1984_s11, 0 }
  0x19   : > { %2991 = sst [smem:[#allocation29_spill]] %s1980_s10  ;;  %s81_s13 = ssub.s32 %s1984_s11, %s2081_s12 }
  0x1a   : > { %2992 = sst [smem:[#allocation30_spill]] %s2081_s12  ;;  %s107_s14 = sadd.s32 2, %s1984_s11 }
  0x1b   : > { %p2087_p1 = scmp.eq.s32.totalorder %s81_s13, 0  ;;  %s108_s16 = sadd.s32 2, %s2081_s12 }
  0x1c   : > { %s109_s17 = ssub.s32 %s107_s14, %s108_s16  ;;  %s112_s18 = sadd.s32 1, %s1968_s29 }
  0x1d   : > { %p110_p2 = scmp.eq.s32.totalorder %s109_s17, 0  ;;  %p119_p3 = scmp.ne.s32.totalorder %s1968_s29, %s1964_s28 }
  0x1e   : > { %p2965_p5 = scmp.lt.s32.totalorder %s1984_s11, 2  ;;  %s2959_s20 = sshll.u32 %s1984_s11, 10 }
  0x1f   : > { %s2098_s19 = scalar_select %p110_p2, %s1968_s29, %s112_s18  }
  0x20   : > { %p121_p6 = por %p119_p3, %p2966_p0  ;;  %s2967_s21 = sand.u32 1, %s1984_s11  }
  0x21   : > { %2994 = sst [smem:[#allocation31_spill]] %s2098_s19  ;;  %s2960_s22 = sand.u32 1, %s1968_s29  }
  0x22   : > { %s1444_s23 = sshll.u32 %s2960_s22, 6  ;;  %s2995_s3 = sld [smem:[#allocation36_spill]] }
  0x23   : > { %s324_s14 = scalar_lea.vmem [#allocation9], %s1444_s23  ;;  %p2118_p7 = pnand %p2965_p5, %p121_p6 }
  0x24   : > { %s332_s16 = sshll.u32 %s324_s14, 4  ;;  %s1487_s18 = sshll.u32 %s1984_s11, 8  ;;  %s2114_s16 = int_to_ptr.vmem [resolvable:$true] %s332_s16 }
  0x25   : > { %s2997_s4 = sld [smem:[#allocation37_spill]]  ;;  %s2132_s23 = scalar_lea.sflag [#allocation10], %s2967_s21 }
  0x26   : > { %p1660_p9 = pneg %p2118_p7 }
  0x28   : > { %s1279_s26 = scalar_lea.hbm %s2995_s3, %s2959_s20  ;;  %s1663_s12 = scalar_lea.hbm %s2995_s3, 4096 }
  0x29   : > { %s2112_s13 = scalar_lea.hbm %s1279_s26, 2048  ;;  %s1688_s14 = scalar_lea.hbm %s1279_s26, 3072 }
  0x2a   : > { %p1659_p8 = scmp.ne.s32.totalorder %s2112_s13, %s1688_s14  ;;  %p1664_p12 = scmp.lt.u32.totalorder %s2112_s13, %s2995_s3 }
  0x2b   : > { %s2128_s20 = scalar_lea.hbm %s2997_s4, %s1487_s18  ;;  %p1665_p13 = scmp.lt.u32.totalorder %s1663_s12, %s1688_s14 }
  0x2c   : > { %p1661_p10 = pnand %p1660_p9, %p1659_p8  ;;  %p1667_p3 = scmp.lt.u32.totalorder %s1688_s14, %s2112_s13 }
  0x2d   : > { %p1666_p2 = por %p1665_p13, %p1664_p12 }
  0x2e   : > { %p1662_p11 = pneg %p1661_p10 }
  0x2f   : > { %p1668_p6 = por %p1667_p3, %p1666_p2 }
  0x31   : > { %p1669_p4 = pnand %p1668_p6, %p1662_p11 }
  0x33   : > { %1672 = shalt.err (!%p1669_p4)
}
  0x34   : > { %s1673_s26 = scalar_lea.vmem %s2114_s16, 1024  ;;  %s1986_s19 = smov [#allocation9]  }
  0x35   : > { %p1674_p8 = scmp.ne.s32.totalorder %s2114_s16, %s1673_s26  ;;  %s1678_s22 = sshll.u32 %s1986_s19, 4  ;;  %s1679_s22 = int_to_ptr.vmem [resolvable:$false] %s1678_s22 }
  0x36   : > { %s1680_s7 = scalar_lea.vmem %s1679_s22, 2048  ;;  %p1681_p0 = scmp.lt.s32.totalorder %s2114_s16, %s1679_s22 }
  0x37   : > { %p1676_p10 = pnand %p1674_p8, %p1660_p9  ;;  %p1682_p12 = scmp.lt.s32.totalorder %s1680_s7, %s1673_s26 }
  0x39   : > { %p1677_p5 = pneg %p1676_p10  ;;  %p1683_p13 = por %p1682_p12, %p1681_p0 }
  0x3b   : > { %p1684_p2 = pnand %p1683_p13, %p1677_p5 }
  0x3d   : > { %1687 = shalt.err (!%p1684_p2)
}
  0x3e   : > { %s2969_s8 = smov 128   ;;  %s2971_s12 = smov 8  }
  0x3f   : > { %1532 = dma.hbm_to_vmem [thread:$0]  (!%p2118_p7), %s2112_s13, 1024, %s2114_s16, %s2132_s23, %s2969_s8, %s2969_s8, %s2971_s12  }
  0x40   : > { %s2998_s24 = sand.u32 1, %s1968_s29   ;;  %s2999_s5 = sld [smem:[#allocation38_spill]] }
  0x41   : > { %s1449_s25 = sshll.u32 %s2998_s24, 4  ;;  %s3000_s3 = sand.u32 1, %s1984_s11  }
  0x42   : > { %s367_s7 = scalar_lea.vmem [#allocation12], %s1449_s25  ;;  %s2175_s4 = scalar_lea.sflag [#allocation13], %s3000_s3 }
  0x43   : > { %s375_s21 = sshll.u32 %s367_s7, 4  ;;  %s2171_s21 = int_to_ptr.vmem [resolvable:$true] %s375_s21 }
  0x46   : > { %s1290_s19 = scalar_lea.hbm %s2999_s5, %s1487_s18  ;;  %s1694_s24 = scalar_lea.hbm %s2999_s5, 1024 }
  0x47   : > { %s2169_s22 = scalar_lea.hbm %s1290_s19, 512  ;;  %s1719_s13 = scalar_lea.hbm %s1290_s19, 768 }
  0x48   : > { %p1690_p0 = scmp.ne.s32.totalorder %s2169_s22, %s1719_s13  ;;  %p1695_p11 = scmp.lt.u32.totalorder %s2169_s22, %s2999_s5 }
  0x49   : > { %p1696_p3 = scmp.lt.u32.totalorder %s1694_s24, %s1719_s13  ;;  %p1698_p8 = scmp.lt.u32.totalorder %s1719_s13, %s2169_s22 }
  0x4a   : > { %p1692_p4 = pnand %p1690_p0, %p1660_p9 }
  0x4b   : > { %p1697_p6 = por %p1696_p3, %p1695_p11 }
  0x4c   : > { %p1693_p5 = pneg %p1692_p4 }
  0x4d   : > { %p1699_p10 = por %p1698_p8, %p1697_p6 }
  0x4f   : > { %p1700_p12 = pnand %p1699_p10, %p1693_p5 }
  0x51   : > { %1703 = shalt.err (!%p1700_p12)
}
  0x52   : > { %s1704_s3 = scalar_lea.vmem %s2171_s21, 256  ;;  %s1989_s25 = smov [#allocation12]  }
  0x53   : > { %p1705_p13 = scmp.ne.s32.totalorder %s2171_s21, %s1704_s3  ;;  %s1709_s19 = sshll.u32 %s1989_s25, 4  ;;  %s1710_s19 = int_to_ptr.vmem [resolvable:$false] %s1709_s19 }
  0x54   : > { %s1711_s7 = scalar_lea.vmem %s1710_s19, 512  ;;  %p1712_p4 = scmp.lt.s32.totalorder %s2171_s21, %s1710_s19 }
  0x55   : > { %p1707_p2 = pnand %p1705_p13, %p1660_p9  ;;  %p1713_p11 = scmp.lt.s32.totalorder %s1711_s7, %s1704_s3 }
  0x57   : > { %p1708_p0 = pneg %p1707_p2  ;;  %p1714_p3 = por %p1713_p11, %p1712_p4 }
  0x59   : > { %p1715_p6 = pnand %p1714_p3, %p1708_p0 }
  0x5b   : > { %1718 = shalt.err (!%p1715_p6)
}
  0x5c   : > { %1538 = dma.hbm_to_vmem [thread:$0]  (!%p2118_p7), %s2169_s22, 256, %s2171_s21, %s2175_s4, %s2969_s8, %s2969_s8, %s2971_s12  }
  0x5d   : > { %s2204_s17 = sadd.s32 4294967295, %s1984_s11   ;;  %s1436_s13 = sadd.s32 4294967294, %s1984_s11  }
  0x5e   : > { %s84_s16 = sadd.s32 1, %s1980_s10  ;;  %p91_p9 = scmp.ne.s32.totalorder %s1980_s10, %s1976_s9 }
  0x5f   : > { %s2213_s18 = scalar_select %p2087_p1, %s1980_s10, %s84_s16  }
  0x60   : > { %p3002_p5 = scmp.eq.s32.totalorder %s1984_s11, 0  ;;  %p97_p7 = scmp.ne.s32.totalorder %s1976_s9, %s1972_s30 }
  0x61   : > { %3001 = sst [smem:[#allocation32_spill]] %s2213_s18  ;;  %p2977_p10 = scmp.eq.s32.totalorder %s2204_s17, 0 }
  0x62   : > { %p2217_p8 = por %p3002_p5, %p91_p9  ;;  %p125_p12 = scmp.ne.s32.totalorder %s1964_s28, %s1960_s27 }
  0x63   : > { %p255_p13 = scmp.eq.s32.totalorder %s2204_s17, 1  ;;  %p261_p2 = scmp.eq.s32.totalorder %s1436_s13, 1 }
  0x64   : > { %p2229_p0 = por %p2977_p10, %p97_p7  ;;  %p2235_p1 = por %p125_p12, %p2977_p10 }
  0x65   : > { %p2239_p4 = por %p255_p13, %p91_p9  ;;  %p2243_p11 = por %p261_p2, %p97_p7 }
  0x66   : > { %s3004_s21 = scalar_select %p2229_p0, 1, 0 }
  0x67   : > { %s3005_s15 = scalar_select %p2235_p1, 1, 0 }
  0x68   : > { %s3006_s22 = scalar_select %p2239_p4, 1, 0 }
  0x69   : > { %s3007_s14 = scalar_select %p2243_p11, 1, 0 }
  0x6a   : > { %p1437_p3 = scmp.ge.s32.totalorder %s1984_s11, 1  ;;  %p268_p6 = scmp.lt.s32.totalorder %s1984_s11, 3 }
  0x6b   : > { %3008 = sst [smem:[#allocation33_spill]] %s3007_s14  ;;  %s2254_s26 = sand.u32 1, %s1980_s10  }
  0x6c   : > { %p2249_p5 = pnand %p1437_p3, %p268_p6  ;;  %s3010_s3 = sshll.u32 %s1984_s11, 10 }
  0x6d   : > { %s2261_s7 = scalar_lea.hbm %s2952_s2, %s3010_s3  ;;  %s1441_s13 = sshll.u32 %s2254_s26, 6 }
  0x6e   : > { %s3009_s27 = scalar_select %p2249_p5, 1, 0 }
  0x6f   : > { %p1519_p9 = pneg %p2249_p5  ;;  %p3011_p7 = scmp.lt.s32.totalorder %s1984_s11, 2 }
  0x70   : > { %s303_s12 = scalar_lea.vmem [#allocation8], %s1441_s13  ;;  %s3014_s0 = sld [smem:[#allocation34_spill]] }
  0x71   : > { %p2270_p12 = pnand %p3011_p7, %p2217_p8  ;;  %p2276_p13 = pnand %p1519_p9, %p2977_p10 }
  0x72   : > { %s310_s25 = sshll.u32 %s303_s12, 4  ;;  %s2280_s25 = int_to_ptr.vmem [resolvable:$true] %s310_s25 }
  0x73   : > { %p1722_p2 = pneg %p2276_p13 }
  0x76   : > { %s1720_s5 = scalar_lea.hbm %s3014_s0, 32 }
  0x77   : > { %p1721_p8 = scmp.ne.s32.totalorder %s3014_s0, %s1720_s5  ;;  %p1727_p9 = scmp.lt.u32.totalorder %s1720_s5, %s3014_s0 }
  0x79   : > { %p1723_p3 = pnand %p1722_p2, %p1721_p8 }
  0x7b   : > { %p1724_p6 = pneg %p1723_p3 }
  0x7d   : > { %p1729_p7 = pnand %p1727_p9, %p1724_p6 }
  0x7f   : > { %1732 = shalt.err (!%p1729_p7)
}
  0x80   : > { %s1990_s12 = smov [#allocation2]   ;;  %s3015_s1 = sld [smem:[#allocation35_spill]] }
  0x81   : > { %1522 = dma.hbm_to_smem (!%p2276_p13), %s3014_s0, 32, %s1990_s12, [#allocation5]  }
  0x86   : > { %s1733_s24 = scalar_lea.hbm %s3015_s1, 32 }
  0x87   : > { %p1734_p8 = scmp.ne.s32.totalorder %s3015_s1, %s1733_s24  ;;  %p1740_p6 = scmp.lt.u32.totalorder %s1733_s24, %s3015_s1 }
  0x89   : > { %p1736_p3 = pnand %p1734_p8, %p1722_p2 }
  0x8b   : > { %p1737_p10 = pneg %p1736_p3 }
  0x8d   : > { %p1742_p9 = pnand %p1740_p6, %p1737_p10 }
  0x8f   : > { %1745 = shalt.err (!%p1742_p9)
}
  0x90   : > { %s1991_s10 = smov [#allocation6]   ;;  %s300_s30 = scalar_lea.sflag [#allocation3], %s2254_s26 }
  0x91   : > { %1525 = dma.hbm_to_smem (!%p2276_p13), %s3015_s1, 32, %s1991_s10, [#allocation7]  }
  0x92   : > { %s1746_s14 = scalar_lea.hbm %s2261_s7, 1024  ;;  %p2317_p7 = pneg %p2270_p12 }
  0x93   : > { %p1747_p2 = scmp.ne.s32.totalorder %s2261_s7, %s1746_s14  ;;  %s1751_s18 = scalar_lea.hbm %s2952_s2, 4096 }
  0x94   : > { %p1752_p13 = scmp.lt.u32.totalorder %s2261_s7, %s2952_s2  ;;  %p1753_p3 = scmp.lt.u32.totalorder %s1751_s18, %s1746_s14 }
  0x95   : > { %p1749_p10 = pnand %p2317_p7, %p1747_p2  ;;  %p1755_p9 = scmp.lt.u32.totalorder %s1746_s14, %s2261_s7 }
  0x96   : > { %p1754_p6 = por %p1753_p3, %p1752_p13 }
  0x97   : > { %p1750_p8 = pneg %p1749_p10 }
  0x98   : > { %p1756_p11 = por %p1755_p9, %p1754_p6 }
  0x9a   : > { %p1757_p4 = pnand %p1756_p11, %p1750_p8 }
  0x9c   : > { %1760 = shalt.err (!%p1757_p4)
}
  0x9d   : > { %s1761_s29 = scalar_lea.vmem %s2280_s25, 1024  ;;  %s1992_s10 = smov [#allocation8]  }
  0x9e   : > { %p1762_p2 = scmp.ne.s32.totalorder %s2280_s25, %s1761_s29  ;;  %s1766_s12 = sshll.u32 %s1992_s10, 4  ;;  %s1767_s12 = int_to_ptr.vmem [resolvable:$false] %s1766_s12 }
  0x9f   : > { %s1768_s13 = scalar_lea.vmem %s1767_s12, 2048  ;;  %p1769_p0 = scmp.lt.s32.totalorder %s2280_s25, %s1767_s12 }
  0xa0   : > { %p1764_p10 = pnand %p1762_p2, %p2317_p7  ;;  %p1770_p5 = scmp.lt.s32.totalorder %s1768_s13, %s1761_s29 }
  0xa2   : > { %p1765_p1 = pneg %p1764_p10  ;;  %p1771_p13 = por %p1770_p5, %p1769_p0 }
  0xa4   : > { %p1772_p3 = pnand %p1771_p13, %p1765_p1 }
  0xa6   : > { %1775 = shalt.err (!%p1772_p3)
}
  0xa7   : > { %s3017_s14 = smov 8   ;;  %s3018_s8 = smov 128  }
  0xa8   : > { %1529 = dma.hbm_to_vmem [thread:$0]  (!%p2270_p12), %s2261_s7, 1024, %s2280_s25, %s300_s30, %s3018_s8, %s3018_s8, %s3017_s14  }
  0xa9   : > { %s1446_s19 = sshll.u32 %s2254_s26, 4  ;;  %s1489_s24 = smul.u32 768, %s1984_s11 }
  0xaa   : > { %s346_s5 = scalar_lea.vmem [#allocation11], %s1446_s19  ;;  %s1776_s0 = scalar_lea.hbm %s2128_s20, 256 }
  0xab   : > { %s353_s29 = sshll.u32 %s346_s5, 4  ;;  %s2355_s13 = scalar_lea.hbm %s2956_s6, %s1489_s24  ;;  %s2348_s29 = int_to_ptr.vmem [resolvable:$true] %s353_s29 }
  0xac   : > { %p1777_p0 = scmp.ne.s32.totalorder %s2128_s20, %s1776_s0  ;;  %s3019_s30 = sld [smem:[#allocation37_spill]] }
  0xad   : > { %p1785_p6 = scmp.lt.u32.totalorder %s1776_s0, %s2128_s20 }
  0xae   : > { %p1779_p1 = pnand %p1777_p0, %p2317_p7 }
  0xb0   : > { %p1780_p4 = pneg %p1779_p1 }
  0xb2   : > { %s1781_s18 = scalar_lea.hbm %s3019_s30, 1024  ;;  %p1782_p11 = scmp.lt.u32.totalorder %s2128_s20, %s3019_s30 }
  0xb3   : > { %p1783_p5 = scmp.lt.u32.totalorder %s1781_s18, %s1776_s0 }
  0xb5   : > { %p1784_p8 = por %p1783_p5, %p1782_p11 }
  0xb7   : > { %p1786_p9 = por %p1785_p6, %p1784_p8 }
  0xb9   : > { %p1787_p2 = pnand %p1786_p9, %p1780_p4 }
  0xbb   : > { %1790 = shalt.err (!%p1787_p2)
}
  0xbc   : > { %s1791_s5 = scalar_lea.vmem %s2348_s29, 256  ;;  %s1993_s10 = smov [#allocation11]  }
  0xbd   : > { %p1792_p10 = scmp.ne.s32.totalorder %s2348_s29, %s1791_s5  ;;  %s1796_s12 = sshll.u32 %s1993_s10, 4  ;;  %s1797_s12 = int_to_ptr.vmem [resolvable:$false] %s1796_s12 }
  0xbe   : > { %s1798_s1 = scalar_lea.vmem %s1797_s12, 512  ;;  %p1799_p0 = scmp.lt.s32.totalorder %s2348_s29, %s1797_s12 }
  0xbf   : > { %p1794_p13 = pnand %p1792_p10, %p2317_p7  ;;  %p1800_p1 = scmp.lt.s32.totalorder %s1798_s1, %s1791_s5 }
  0xc1   : > { %p1795_p3 = pneg %p1794_p13  ;;  %p1801_p11 = por %p1800_p1, %p1799_p0 }
  0xc3   : > { %p1802_p5 = pnand %p1801_p11, %p1795_p3 }
  0xc5   : > { %1805 = shalt.err (!%p1802_p5)
}
  0xc6   : > { %1535 = dma.hbm_to_vmem [thread:$0]  (!%p2270_p12), %s2128_s20, 256, %s2348_s29, %s2132_s23, %s3018_s8, %s3018_s8, %s3017_s14  }
  0xc7   : > { %s3020_s0 = smul.u32 48, %s2254_s26  ;;  %s1806_s25 = scalar_lea.hbm %s2355_s13, 768 }
  0xc8   : > { %p1807_p4 = scmp.ne.s32.totalorder %s2355_s13, %s1806_s25  ;;  %s1811_s5 = scalar_lea.hbm %s2956_s6, 1536 }
  0xc9   : > { %s389_s18 = scalar_lea.vmem [#allocation14], %s3020_s0  ;;  %p1812_p9 = scmp.lt.u32.totalorder %s2355_s13, %s2956_s6 }
  0xca   : > { %s396_s7 = sshll.u32 %s389_s18, 4  ;;  %p1809_p8 = pnand %p1807_p4, %p2317_p7  ;;  %s2384_s7 = int_to_ptr.vmem [resolvable:$true] %s396_s7 }
  0xcb   : > { %p1813_p2 = scmp.lt.u32.totalorder %s1811_s5, %s1806_s25  ;;  %p1815_p13 = scmp.lt.u32.totalorder %s1806_s25, %s2355_s13 }
  0xcc   : > { %p1810_p6 = pneg %p1809_p8 }
  0xcd   : > { %p1814_p10 = por %p1813_p2, %p1812_p9 }
  0xcf   : > { %p1816_p3 = por %p1815_p13, %p1814_p10 }
  0xd1   : > { %p1817_p0 = pnand %p1816_p3, %p1810_p6 }
  0xd3   : > { %1820 = shalt.err (!%p1817_p0)
}
  0xd4   : > { %s1821_s20 = scalar_lea.vmem %s2384_s7, 768  ;;  %s1994_s23 = smov [#allocation14]  }
  0xd5   : > { %p1822_p1 = scmp.ne.s32.totalorder %s2384_s7, %s1821_s20  ;;  %s1826_s29 = sshll.u32 %s1994_s23, 4  ;;  %s1827_s29 = int_to_ptr.vmem [resolvable:$false] %s1826_s29 }
  0xd6   : > { %s1828_s1 = scalar_lea.vmem %s1827_s29, 1536  ;;  %p1829_p4 = scmp.lt.s32.totalorder %s2384_s7, %s1827_s29 }
  0xd7   : > { %p1824_p11 = pnand %p1822_p1, %p2317_p7  ;;  %p1830_p8 = scmp.lt.s32.totalorder %s1828_s1, %s1821_s20 }
  0xd9   : > { %p1825_p5 = pneg %p1824_p11  ;;  %p1831_p9 = por %p1830_p8, %p1829_p4 }
  0xdb   : > { %p1832_p2 = pnand %p1831_p9, %p1825_p5 }
  0xdd   : > { %1835 = shalt.err (!%p1832_p2)
}
  0xde   : > { %1541 = dma.hbm_to_vmem [thread:$0]  (!%p2270_p12), %s2355_s13, 768, %s2384_s7, %s2175_s4, %s3018_s8, %s3018_s8, %s3017_s14  }
  0xdf   : > { %s3021_s25 = sld [smem:[#allocation39_spill]]  ;;  %s3022_s19 = smul.u32 48, %s2254_s26 }
  0xe0   : > { %s407_s12 = scalar_lea.sflag [#allocation16], %s2254_s26 }
  0xe1   : > { %s410_s5 = scalar_lea.vmem [#allocation15], %s3022_s19 }
  0xe2   : > { %s417_s10 = sshll.u32 %s410_s5, 4  ;;  %s2420_s10 = int_to_ptr.vmem [resolvable:$true] %s417_s10 }
  0xe5   : > { %s2416_s30 = scalar_lea.hbm %s3021_s25, %s1489_s24  ;;  %s1841_s24 = scalar_lea.hbm %s3021_s25, 1536 }
  0xe6   : > { %s1836_s20 = scalar_lea.hbm %s2416_s30, 768  ;;  %p1842_p3 = scmp.lt.u32.totalorder %s2416_s30, %s3021_s25 }
  0xe7   : > { %p1837_p6 = scmp.ne.s32.totalorder %s2416_s30, %s1836_s20  ;;  %p1843_p0 = scmp.lt.u32.totalorder %s1841_s24, %s1836_s20 }
  0xe8   : > { %p1845_p11 = scmp.lt.u32.totalorder %s1836_s20, %s2416_s30 }
  0xe9   : > { %p1839_p10 = pnand %p1837_p6, %p2317_p7  ;;  %p1844_p1 = por %p1843_p0, %p1842_p3 }
  0xeb   : > { %p1840_p13 = pneg %p1839_p10  ;;  %p1846_p5 = por %p1845_p11, %p1844_p1 }
  0xed   : > { %p1847_p4 = pnand %p1846_p5, %p1840_p13 }
  0xef   : > { %1850 = shalt.err (!%p1847_p4)
}
  0xf0   : > { %s1851_s29 = scalar_lea.vmem %s2420_s10, 768  ;;  %s1995_s1 = smov [#allocation15]  }
  0xf1   : > { %p1852_p8 = scmp.ne.s32.totalorder %s2420_s10, %s1851_s29  ;;  %s1856_s0 = sshll.u32 %s1995_s1, 4  ;;  %s1857_s0 = int_to_ptr.vmem [resolvable:$false] %s1856_s0 }
  0xf2   : > { %s1858_s18 = scalar_lea.vmem %s1857_s0, 1536  ;;  %p1859_p6 = scmp.lt.s32.totalorder %s2420_s10, %s1857_s0 }
  0xf3   : > { %p1854_p9 = pnand %p1852_p8, %p2317_p7  ;;  %p1860_p10 = scmp.lt.s32.totalorder %s1858_s18, %s1851_s29 }
  0xf5   : > { %p1855_p2 = pneg %p1854_p9  ;;  %p1861_p3 = por %p1860_p10, %p1859_p6 }
  0xf7   : > { %p1862_p0 = pnand %p1861_p3, %p1855_p2 }
  0xf9   : > { %1865 = shalt.err (!%p1862_p0)
}
  0xfa   : > { %1544 = dma.hbm_to_vmem [thread:$0]  (!%p2270_p12), %s2416_s30, 768, %s2420_s10, %s407_s12, %s3018_s8, %s3018_s8, %s3017_s14  }
  0xfb   : > { %p3023_p7 = scmp.ne.s32.totalorder %s3009_s27, 0 }
  0xfc   : > { %p3024_p13 = scmp.eq.s32.totalorder (!%p3023_p7), %s2204_s17, 0 }
  0xfd   : > { %429 = sbr.rel (%p3023_p7) target bundleno = 974 (0x3ce), region = 52 }
 0x104   : > { %1923 = dma.done.wait (%p3024_p13), [#allocation5], 32   ;;  %p3025_p1 = pmov %p3024_p13 }
 0x106   : > { %1925 = vsyncadd (%p3025_p1), [#allocation5], 4294967264  ;;  %p3026_p11 = pmov %p3025_p1 }
 0x107   : > { %p3027_p5 = pmov %p3025_p1 }
 0x108   : > { %1927 = dma.done.wait (%p3026_p11), [#allocation7], 32  }
 0x109   : > { %1929 = vsyncadd (%p3027_p5), [#allocation7], 4294967264  ;;  %s2460_s26 = sand.u32 1, %s1976_s9   ;;  %p3028_p12 = scmp.ne.s32.totalorder %s3004_s21, 0 }
 0x10a   : > { %s1456_s27 = sshll.u32 %s2460_s26, 6  ;;  %s440_s16 = scalar_lea.sflag [#allocation3], %s2460_s26 }
 0x10b   : > { %s2464_s3 = scalar_lea.vmem [#allocation8], %s1456_s27 }
 0x10c   : > { %1931 = dma.done.wait (%p3028_p12), %s440_s16, 1024  }
 0x10d   : > { %1933 = vsyncadd (%p3028_p12), %s440_s16, 4294966272  ;;  %s448_s14 = sand.u32 1, %s2204_s17   ;;  %s450_s8 = sand.u32 1, %s1964_s28  }
 0x10e   : > { %s1457_s30 = sshll.u32 %s450_s8, 6  ;;  %s449_s19 = scalar_lea.sflag [#allocation10], %s448_s14 }
 0x10f   : > { %s2472_s5 = scalar_lea.vmem [#allocation9], %s1457_s30  ;;  %p3029_p4 = scmp.ne.s32.totalorder %s3005_s15, 0 }
 0x111   : > { %1935 = dma.done.wait (%p3029_p4), %s449_s19, 1024  }
 0x112   : > { %1937 = vsyncadd (%p3029_p4), %s449_s19, 4294966272  ;;  %s1458_s10 = sshll.u32 %s2460_s26, 4 }
 0x113   : > { %s2479_s12 = scalar_lea.vmem [#allocation11], %s1458_s10 }
 0x114   : > { %1939 = dma.done.wait (%p3028_p12), %s449_s19, 256  }
 0x115   : > { %1941 = vsyncadd (%p3028_p12), %s449_s19, 4294967040  ;;  %s2485_s20 = sshll.u32 %s450_s8, 4  ;;  %s467_s4 = scalar_lea.sflag [#allocation13], %s448_s14 }
 0x116   : > { %s470_s13 = scalar_lea.vmem [#allocation12], %s2485_s20 }
 0x117   : > { %1943 = dma.done.wait (%p3029_p4), %s467_s4, 256  }
 0x118   : > { %1945 = vsyncadd (%p3029_p4), %s467_s4, 4294967040  ;;  %s1492_s24 = smul.u32 48, %s2460_s26 }
 0x11a   : > { %s479_s7 = scalar_lea.vmem [#allocation14], %s1492_s24 }
 0x11b   : > { %1947 = dma.done.wait (%p3028_p12), %s467_s4, 768  }
 0x11c   : > { %1949 = vsyncadd (%p3028_p12), %s467_s4, 4294966528  ;;  %s485_s23 = scalar_lea.sflag [#allocation16], %s2460_s26  ;;  %s2498_s29 = scalar_lea.vmem [#allocation15], %s1492_s24 }
 0x11d   : > { %1951 = dma.done.wait (%p3028_p12), %s485_s23, 768  }
 0x11e   : > { %1953 = vsyncadd (%p3028_p12), %s485_s23, 4294966528 }
 0x11f   : > { %493 = sfence }
 0x120   : > { %v652_v0 = vld [vmem:[%s479_s7 + $0x8] sm:$0xff]  ;;  %v1475_v1 = vld [vmem:[%s479_s7 + $0x18] sm:$0xff]  ;;  %v651_v14 = vld [vmem:[%s479_s7] sm:$0xff]  ;;  %v739_v17 = vlaneseq  ;;  %s1996_s21 = smov 16   ;;  %vm749_vm2 = vcmask 1047680   ;;  %s1997_s15 = smov 113  }
 0x121   : > { %v1477_v2 = vld [vmem:[%s479_s7 + $0x28] sm:$0xff]  ;;  %v668_v3 = vmul.f32 0.299, %v652_v0  ;;  %v670_v4 = vmul.f32 0.587, %v1475_v1  ;;  %v1474_v15 = vld [vmem:[%s479_s7 + $0x10] sm:$0xff] }
 0x122   : > { %v674_v5 = vmul.f32 0.114, %v1477_v2  ;;  %v692_v6 = vmul.f32 0.596, %v652_v0  ;;  %v694_v7 = vmul.f32 0.274, %v1475_v1 }
 0x123   : > { %v698_v8 = vmul.f32 0.322, %v1477_v2  ;;  %v672_v9 = vadd.f32 %v670_v4, %v668_v3  ;;  %v716_v10 = vmul.f32 0.211, %v652_v0  ;;  %v718_v11 = vmul.f32 0.523, %v1475_v1 }
 0x124   : > { %v722_v12 = vmul.f32 0.312, %v1477_v2  ;;  %v696_v13 = vsub.f32 %v692_v6, %v694_v7  ;;  %v1476_v16 = vld [vmem:[%s479_s7 + $0x20] sm:$0xff]  ;;  %v667_v20 = vmul.f32 0.299, %v651_v14  ;;  %v660_v22 = vld [vmem:[%s2498_s29 + $0x8] sm:$0xff] }
 0x125   : > { %v676_v18 = vadd.f32 %v674_v5, %v672_v9  ;;  %v720_v19 = vsub.f32 %v716_v10, %v718_v11  ;;  %v669_v21 = vmul.f32 0.587, %v1474_v15  ;;  %v673_v24 = vmul.f32 0.114, %v1476_v16  ;;  %v1479_v35 = vld [vmem:[%s2498_s29 + $0x18] sm:$0xff]  ;;  %v1481_v38 = vld [vmem:[%s2498_s29 + $0x28] sm:$0xff] }
 0x126   : > { %v700_v23 = vsub.f32 %v696_v13, %v698_v8  ;;  %v691_v25 = vmul.f32 0.596, %v651_v14  ;;  %v693_v26 = vmul.f32 0.274, %v1474_v15  ;;  %v697_v30 = vmul.f32 0.322, %v1476_v16 }
 0x127   : > { %v2505_v27 = vmul.f32 255.0, %v676_v18  ;;  %v724_v28 = vadd.f32 %v722_v12, %v720_v19  ;;  %v671_v29 = vadd.f32 %v669_v21, %v667_v20  ;;  %v715_v33 = vmul.f32 0.211, %v651_v14  ;;  %v659_v51 = vld [vmem:[%s2498_s29] sm:$0xff]  ;;  %v1478_v52 = vld [vmem:[%s2498_s29 + $0x10] sm:$0xff]  ;;  %s1998_s1 = smov 127  }
 0x128   : > { %v702_v31 = vmul.f32 255.0, %v700_v23  ;;  %v695_v32 = vsub.f32 %v691_v25, %v693_v26  ;;  %v717_v34 = vmul.f32 0.523, %v1474_v15  ;;  %v721_v37 = vmul.f32 0.312, %v1476_v16  ;;  %v1480_v61 = vld [vmem:[%s2498_s29 + $0x20] sm:$0xff] }
 0x129   : > { %809 = vrot.lane.b32.xlu1 %v2505_v27, %s1996_s21  ;;  %v675_v36 = vadd.f32 %v673_v24, %v671_v29  ;;  %v680_v39 = vmul.f32 0.299, %v660_v22  ;;  %v726_v40 = vmul.f32 255.0, %v724_v28  ;;  %v682_v45 = vmul.f32 0.587, %v1479_v35  ;;  %s2681_s0 = sshll.u32 %s2204_s17, 7 }
 0x12a   : > { %v699_v41 = vsub.f32 %v695_v32, %v697_v30  ;;  %v719_v42 = vsub.f32 %v715_v33, %v717_v34  ;;  %v1132_v43 = vmul.f32 2.0, %v702_v31  ;;  %v2514_v46 = vshrl.u32 %v739_v17, 7  ;;  %s573_s18 = sadd.s32 1, %s2681_s0  ;;  %s2685_s27 = sld [smem:[#allocation2 + %s2681_s0]] }
 0x12b   : > { %v2511_v44 = vmul.f32 255.0, %v675_v36  ;;  %v1138_v47 = vmul.f32 %v702_v31, %v702_v31  ;;  %v686_v49 = vmul.f32 0.114, %v1481_v38  ;;  %v704_v50 = vmul.f32 0.596, %v660_v22  ;;  %s2688_s16 = sld [smem:[#allocation6 + %s2681_s0]] }
 0x12c   : > { %v723_v48 = vadd.f32 %v721_v37, %v719_v42  ;;  %v684_v53 = vadd.f32 %v682_v45, %v680_v39  ;;  %v706_v54 = vmul.f32 0.274, %v1479_v35  ;;  %v710_v55 = vmul.f32 0.322, %v1481_v38  ;;  %s2692_s14 = sld [smem:[#allocation2 + %s573_s18]]  ;;  %s596_s30 = sadd.s32 2, %s2681_s0 }
 0x12d   : > { %806 = vrot.lane.b32.xlu0 %v2511_v44, %s1996_s21  ;;  %v728_v56 = vmul.f32 0.211, %v660_v22  ;;  %v1150_v57 = vmul.f32 2.0, %v726_v40  ;;  %v1156_v58 = vmul.f32 %v726_v40, %v726_v40  ;;  %v701_v59 = vmul.f32 255.0, %v699_v41  ;;  %s2694_s8 = sld [smem:[#allocation6 + %s573_s18]]  ;;  %s619_s10 = sadd.s32 3, %s2681_s0 }
 0x12e   : > { %v730_v60 = vmul.f32 0.523, %v1479_v35  ;;  %v688_v62 = vadd.f32 %v686_v49, %v684_v53  ;;  %v708_v63 = vsub.f32 %v704_v50, %v706_v54  ;;  %v734_v0 = vmul.f32 0.312, %v1481_v38  ;;  %s2699_s19 = sld [smem:[#allocation2 + %s596_s30]]  ;;  %p3039_p9 = scmp.ne.s32.totalorder %s3006_s22, 0 }
 0x12f   : > { %v679_v1 = vmul.f32 0.299, %v659_v51  ;;  %v725_v2 = vmul.f32 255.0, %v723_v48  ;;  %v1131_v3 = vmul.f32 2.0, %v701_v59  ;;  %v681_v5 = vmul.f32 0.587, %v1478_v52 }
 0x130   : > { %v732_v4 = vsub.f32 %v728_v56, %v730_v60  ;;  %v2521_v6 = vmul.f32 255.0, %v688_v62  ;;  %v712_v7 = vsub.f32 %v708_v63, %v710_v55  ;;  %v685_v8 = vmul.f32 0.114, %v1480_v61  ;;  %s2705_s4 = sld [smem:[#allocation6 + %s596_s30]]  ;;  %s1999_s18 = smov [#allocation17]  }
 0x131   : > { %v703_v9 = vmul.f32 0.596, %v659_v51  ;;  %v683_v11 = vadd.f32 %v681_v5, %v679_v1  ;;  %v705_v12 = vmul.f32 0.274, %v1478_v52  ;;  %v709_v13 = vmul.f32 0.322, %v1480_v61 }
 0x132   : > { %v736_v10 = vadd.f32 %v734_v0, %v732_v4  ;;  %v714_v14 = vmul.f32 255.0, %v712_v7  ;;  %960 = vrot.lane.b32.xlu1 %v2521_v6, %s1996_s21  ;;  %v727_v15 = vmul.f32 0.211, %v659_v51  ;;  %v729_v16 = vmul.f32 0.523, %v1478_v52  ;;  %s2711_s24 = sld [smem:[#allocation2 + %s619_s10]] }
 0x133   : > { %v744_v18 = vrot.slane %v2511_v44, 7  ;;  %v687_v20 = vadd.f32 %v685_v8, %v683_v11  ;;  %v707_v21 = vsub.f32 %v703_v9, %v705_v12  ;;  %v733_v22 = vmul.f32 0.312, %v1480_v61  ;;  %s2721_s7 = sld [smem:[#allocation6 + %s619_s10]] }
 0x134   : > { %v738_v19 = vmul.f32 255.0, %v736_v10  ;;  %v2526_v23 = vmul.f32 %v1132_v43, %v714_v14  ;;  %v1140_v24 = vmul.f32 %v714_v14, %v714_v14  ;;  %v731_v25 = vsub.f32 %v727_v15, %v729_v16 }
 0x135   : > { %v745_v26 = vrot.slane %v2505_v27, 7  ;;  %v2531_v30 = vmul.f32 255.0, %v687_v20  ;;  %v711_v31 = vsub.f32 %v707_v21, %v709_v13  ;;  %v1149_v32 = vmul.f32 2.0, %v725_v2 }
 0x136   : > { %v2529_v28 = vmul.f32 %v1150_v57, %v738_v19  ;;  %v1158_v29 = vmul.f32 %v738_v19, %v738_v19  ;;  %v2533_v33 = vadd.f32 %v1140_v24, %v1138_v47  ;;  %v735_v34 = vadd.f32 %v733_v22, %v731_v25 }
 0x137   : > { %vm746_vm0 = vcmp.lt.s32.totalorder %v2514_v46, 1  ;;  %v1137_v35 = vmul.f32 %v701_v59, %v701_v59  ;;  %v713_v37 = vmul.f32 255.0, %v711_v31  ;;  %957 = vrot.lane.b32.xlu0 %v2531_v30, %s1996_s21  ;;  %v1155_v38 = vmul.f32 %v725_v2, %v725_v2 }
 0x138   : > { %v2536_v36 = vadd.f32 %v1158_v29, %v1156_v58  ;;  %v737_v39 = vmul.f32 255.0, %v735_v34  ;;  %v2542_v40 = vsel %vm746_vm0, %v745_v26, %v744_v18  ;;  %v905_v41 = vrot.slane %v2531_v30, 7 }
 0x139   : > { %v2545_v42 = vmul.f32 %v1131_v3, %v713_v37  ;;  %v1139_v43 = vmul.f32 %v713_v37, %v713_v37  ;;  %v906_v45 = vrot.slane %v2521_v6, 7  ;;  %v2562_v52 = vsel %vm746_vm0, %v744_v18, %v745_v26 }
 0x13a   : > { %v2548_v47 = vmul.f32 %v1149_v32, %v737_v39  ;;  %v1157_v48 = vmul.f32 %v737_v39, %v737_v39  ;;  %v844_v53 = vrot.slane %v2511_v44, 1  ;;  %v845_v54 = vrot.slane %v2505_v27, 1 }
 0x13b   : > { %v2550_v49 = vadd.f32 %v1139_v43, %v1137_v35  ;;  %750 = vrot.lane.b32.xlu0 %v2542_v40, %s1996_s21  ;;  %v2556_v50 = vsel %vm746_vm0, %v906_v45, %v905_v41  ;;  %v2570_v55 = vsel %vm746_vm0, %v905_v41, %v906_v45  ;;  %vm846_vm1 = vcmp.lt.s32.totalorder %v2514_v46, 7 }
 0x13c   : > { %v2558_v51 = vadd.f32 %v1157_v48, %v1155_v38  ;;  %909 = vrot.lane.b32.xlu1 %v2556_v50, %s1996_s21  ;;  %v2577_v56 = vsel %vm846_vm1, %v844_v53, %v845_v54  ;;  %v995_v57 = vrot.slane %v2531_v30, 1  ;;  %v996_v58 = vrot.slane %v2521_v6, 1 }
 0x13d   : > { %v2581_v59 = vsel %vm846_vm1, %v845_v54, %v844_v53  ;;  %vm1189_vm3 = vcmask 130048   ;;  %vm762_vm4 = vcmp.gt.s32.totalorder %v2514_v46, 0 }
 0x13e   : > { %v2587_v60 = vsel %vm846_vm1, %v995_v57, %v996_v58  ;;  %v2589_v61 = vsel %vm846_vm1, %v996_v58, %v995_v57  ;;  %v1144_v57 = vadd.f32 200.0, %v2533_v33  ;;  %v1143_v58 = vadd.f32 200.0, %v2550_v49 }
 0x13f   : > { %753 = vrot.lane.b32.xlu0 %v2562_v52, %s1996_s21  ;;  %v1136_v49 = vadd.f32 200.0, %v2526_v23 }
 0x140   : > { %912 = vrot.lane.b32.xlu1 %v2570_v55, %s1996_s21  ;;  %1618 = vrcp.f32 %v1144_v57 }
 0x141   : > { %1620 = vrcp.f32 %v1143_v58 }
 0x143   : > { %849 = vrot.lane.b32.xlu0 %v2577_v56, %s1996_s21 }
 0x144   : > { %852 = vrot.lane.b32.xlu1 %v2581_v59, %s1996_s21 }
 0x147   : > { %999 = vrot.lane.b32.xlu0 %v2587_v60, %s1996_s21 }
 0x148   : > { %1002 = vrot.lane.b32.xlu1 %v2589_v61, %s1996_s21 }
 0x19b   : > { %v810_v62 = vpop.permute.xlu1 %809 }
 0x19c   : > { %v811_v63 = vsel %vm749_vm2, %v810_v62, %v2505_v27  ;;  %v1162_v62 = vadd.f32 200.0, %v2536_v36  ;;  %v1619_v36 = vpop.eup %1618 }
 0x19d   : > { %814 = vrot.lane.b32.xlu1 %v811_v63, %s1996_s21 }
 0x19e   : > { %1622 = vrcp.f32 %v1162_v62 }
 0x19f   : > { %v807_v0 = vpop.permute.xlu0 %806 }
 0x1a0   : > { %v808_v1 = vsel %vm749_vm2, %v807_v0, %v2511_v44 }
 0x1a1   : > { %812 = vrot.lane.b32.xlu0 %v808_v1, %s1996_s21  ;;  %v1161_v1 = vadd.f32 200.0, %v2558_v51  ;;  %v1135_v51 = vadd.f32 200.0, %v2545_v42  ;;  %v1148_v42 = vmul.f32 %v1619_v36, %v1136_v49 }
 0x1a3   : > { %1624 = vrcp.f32 %v1161_v1 }
 0x1a4   : > { %v961_v2 = vpop.permute.xlu1 %960 }
 0x1a5   : > { %v962_v3 = vsel %vm749_vm2, %v961_v2, %v2521_v6 }
 0x1a6   : > { %965 = vrot.lane.b32.xlu1 %v962_v3, %s1996_s21  ;;  %v1621_v3 = vpop.eup %1620 }
 0x1a7   : > { %v1146_v23 = vmul.f32 %v1621_v3, %v1135_v51  ;;  %v1472_v3 = vld [vmem:[%s2472_s5 + $0x30] sm:$0xff] }
 0x1a9   : > { %v958_v4 = vpop.permute.xlu0 %957 }
 0x1aa   : > { %v959_v5 = vsel %vm749_vm2, %v958_v4, %v2531_v30  ;;  %v1623_v4 = vpop.eup %1622 }
 0x1ab   : > { %963 = vrot.lane.b32.xlu0 %v959_v5, %s1996_s21  ;;  %v1154_v5 = vadd.f32 200.0, %v2529_v28  ;;  %v560_v28 = vld [vmem:[%s2472_s5] sm:$0xff] }
 0x1ad   : > { %v751_v7 = vpop.permute.xlu0 %750 }
 0x1ae   : > { %v752_v8 = vsel %vm749_vm2, %v751_v7, %v2542_v40  ;;  %v910_v9 = vpop.permute.xlu1 %909  ;;  %v1153_v7 = vadd.f32 200.0, %v2548_v47  ;;  %v563_v47 = vstv %s2688_s16 }
 0x1af   : > { %756 = vrot.lane.b32.xlu0 %v752_v8, %s1996_s21  ;;  %v911_v10 = vsel %vm749_vm2, %v910_v9, %v2556_v50  ;;  %v1625_v8 = vpop.eup %1624  ;;  %v549_v9 = vld [vmem:[%s2464_s3] sm:$0xff] }
 0x1b1   : > { %v754_v11 = vpop.permute.xlu0 %753 }
 0x1b2   : > { %v755_v12 = vsel %vm749_vm2, %v754_v11, %v2562_v52  ;;  %v913_v13 = vpop.permute.xlu1 %912  ;;  %v553_v11 = vstv %s2685_s27  ;;  %s1870_s27 = sshll.u32 %s1999_s18, 4  ;;  %s1871_s27 = int_to_ptr.vmem [resolvable:$false] %s1870_s27 }
 0x1b3   : > { %758 = vrot.lane.b32.xlu1 %v755_v12, %s1996_s21  ;;  %915 = vrot.lane.b32.xlu0 %v911_v10, %s1996_s21  ;;  %v914_v14 = vsel %vm749_vm2, %v913_v13, %v2570_v55  ;;  %v550_v10 = vld [vmem:[%s2464_s3 + $0x8] sm:$0xff]  ;;  %v1462_v12 = vld [vmem:[%s2464_s3 + $0x10] sm:$0xff]  ;;  %s1872_s16 = scalar_lea.vmem %s1871_s27, 64 }
 0x1b4   : > { %v1463_v13 = vld [vmem:[%s2464_s3 + $0x18] sm:$0xff] }
 0x1b5   : > { %v850_v15 = vpop.permute.xlu0 %849 }
 0x1b6   : > { %v853_v16 = vpop.permute.xlu1 %852  ;;  %v851_v18 = vsel %vm749_vm2, %v850_v15, %v2577_v56  ;;  %v1164_v15 = vmul.f32 %v1625_v8, %v1153_v7  ;;  %v1473_v8 = vld [vmem:[%s2472_s5 + $0x38] sm:$0xff] }
 0x1b7   : > { %917 = vrot.lane.b32.xlu1 %v914_v14, %s1996_s21  ;;  %855 = vrot.lane.b32.xlu0 %v851_v18, %s1996_s21  ;;  %v854_v19 = vsel %vm749_vm2, %v853_v16, %v2581_v59  ;;  %v575_v14 = vstv %s2692_s14  ;;  %v1166_v16 = vmul.f32 %v1623_v4, %v1154_v5  ;;  %v561_v18 = vld [vmem:[%s2472_s5 + $0x8] sm:$0xff] }
 0x1b8   : > { %v632_v4 = vstv %s2721_s7  ;;  %v640_v5 = vld [vmem:[%s2479_s12 + $0x8] sm:$0xff] }
 0x1b9   : > { %v1000_v20 = vpop.permute.xlu0 %999 }
 0x1ba   : > { %v1003_v21 = vpop.permute.xlu1 %1002  ;;  %v1001_v22 = vsel %vm749_vm2, %v1000_v20, %v2587_v60  ;;  %v1465_v20 = vld [vmem:[%s2472_s5 + $0x18] sm:$0xff] }
 0x1bb   : > { %857 = vrot.lane.b32.xlu1 %v854_v19, %s1996_s21  ;;  %1005 = vrot.lane.b32.xlu0 %v1001_v22, %s1996_s21  ;;  %v1004_v24 = vsel %vm749_vm2, %v1003_v21, %v2589_v61  ;;  %v1464_v19 = vld [vmem:[%s2472_s5 + $0x10] sm:$0xff]  ;;  %v586_v21 = vstv %s2694_s8  ;;  %v554_v22 = vsub.f32 %v549_v9, %v553_v11 }
 0x1bc   : > { %v645_v9 = vld [vmem:[%s470_s13] sm:$0xff] }
 0x1bf   : > { %1007 = vrot.lane.b32.xlu1 %v1004_v24, %s1996_s21  ;;  %v576_v24 = vsub.f32 %v1462_v12, %v575_v14 }
 0x20f   : > { %v815_v25 = vpop.permute.xlu1 %814 }
 0x210   : > { %v817_v26 = vsel %vm749_vm2, %v815_v25, %v2505_v27  ;;  %v555_v25 = vsub.f32 %v550_v10, %v553_v11  ;;  %v2739_v10 = vmul.f32 %v1164_v15, %v1146_v23  ;;  %v2741_v11 = vmul.f32 %v1166_v16, %v1148_v42 }
 0x211   : > { %822 = vrot.lane.b32.xlu1 %v817_v26, %s1997_s15 }
 0x213   : > { %v813_v29 = vpop.permute.xlu0 %812 }
 0x214   : > { %v816_v31 = vsel %vm749_vm2, %v813_v29, %v2511_v44  ;;  %v577_v29 = vsub.f32 %v1463_v13, %v575_v14  ;;  %v646_v14 = vld [vmem:[%s470_s13 + $0x8] sm:$0xff] }
 0x215   : > { %820 = vrot.lane.b32.xlu0 %v816_v31, %s1997_s15 }
 0x218   : > { %v966_v32 = vpop.permute.xlu1 %965 }
 0x219   : > { %v968_v34 = vsel %vm749_vm2, %v966_v32, %v2521_v6  ;;  %v598_v32 = vstv %s2699_s19 }
 0x21a   : > { %973 = vrot.lane.b32.xlu1 %v968_v34, %s1997_s15 }
 0x21d   : > { %v964_v35 = vpop.permute.xlu0 %963 }
 0x21e   : > { %v967_v37 = vsel %vm749_vm2, %v964_v35, %v2531_v30  ;;  %834 = vrot.lane.b32.xlu1 %v817_v26, %s1998_s1  ;;  %v564_v26 = vsub.f32 %v560_v28, %v563_v47  ;;  %v587_v35 = vsub.f32 %v1464_v19, %v586_v21 }
 0x21f   : > { %971 = vrot.lane.b32.xlu0 %v967_v37, %s1997_s15 }
 0x220   : > { %v589_v58 = vmax.f32 %v587_v35, 0.0 }
 0x221   : > { %v757_v6 = vpop.permute.xlu0 %756 }
 0x222   : > { %985 = vrot.lane.b32.xlu1 %v968_v34, %s1998_s1  ;;  %v760_v30 = vsel %vm749_vm2, %v757_v6, %v2542_v40  ;;  %v565_v34 = vsub.f32 %v561_v18, %v563_v47  ;;  %v578_v6 = vmax.f32 %v576_v24, 0.0  ;;  %v634_v24 = vsub.f32 %v1473_v8, %v632_v4 }
 0x223   : > { %832 = vrot.lane.b32.xlu0 %v816_v31, %s1998_s1  ;;  %v1466_v31 = vld [vmem:[%s2464_s3 + $0x20] sm:$0xff] }
 0x224   : > { %v567_v57 = vmax.f32 %v565_v34, 0.0 }
 0x225   : > { %v759_v27 = vpop.permute.xlu1 %758  ;;  %v916_v41 = vpop.permute.xlu0 %915 }
 0x226   : > { %v761_v44 = vsel %vm749_vm2, %v759_v27, %v2562_v52  ;;  %v919_v45 = vsel %vm749_vm2, %v916_v41, %v2556_v50  ;;  %v1467_v27 = vld [vmem:[%s2464_s3 + $0x28] sm:$0xff]  ;;  %v609_v41 = vstv %s2705_s4 }
 0x227   : > { %983 = vrot.lane.b32.xlu0 %v967_v37, %s1998_s1  ;;  %771 = vrot.lane.b32.xlu1 %v761_v44, %s1997_s15  ;;  %v588_v37 = vsub.f32 %v1465_v20, %v586_v21  ;;  %v633_v20 = vsub.f32 %v1472_v3, %v632_v4 }
 0x229   : > { %v918_v38 = vpop.permute.xlu1 %917  ;;  %v856_v48 = vpop.permute.xlu0 %855  ;;  %v590_v62 = vmax.f32 %v588_v37, 0.0  ;;  %v635_v42 = vmax.f32 %v633_v20, 0.0 }
 0x22a   : > { %v920_v39 = vsel %vm749_vm2, %v918_v38, %v2570_v55  ;;  %v859_v63 = vsel %vm749_vm2, %v856_v48, %v2577_v56  ;;  %v599_v38 = vsub.f32 %v1466_v31, %v598_v32  ;;  %v579_v48 = vmax.f32 %v577_v29, 0.0 }
 0x22b   : > { %769 = vrot.lane.b32.xlu0 %v760_v30, %s1997_s15  ;;  %792 = vrot.lane.b32.xlu1 %v761_v44, %s1998_s1  ;;  %v556_v44 = vmax.f32 %v554_v22, 0.0  ;;  %v592_v28 = vadd.f32 %v590_v62, %v567_v57  ;;  %v636_v29 = vmax.f32 %v634_v24, 0.0  ;;  %v2763_v24 = vand.u32 127, %v739_v17 }
 0x22c   : > { %v601_v49 = vmax.f32 %v599_v38, 0.0 }
 0x22d   : > { %v858_v43 = vpop.permute.xlu1 %857  ;;  %v1006_v2 = vpop.permute.xlu0 %1005  ;;  %v580_v36 = vadd.f32 %v578_v6, %v556_v44  ;;  %vm764_vm6 = vcmp.gt.s32.totalorder %v2763_v24, 0  ;;  %vm787_vm7 = vcmp.lt.s32.totalorder %v2763_v24, 15 }
 0x22e   : > { %v860_v53 = vsel %vm749_vm2, %v858_v43, %v2581_v59  ;;  %v1009_v33 = vsel %vm749_vm2, %v1006_v2, %v2587_v60  ;;  %v557_v43 = vmax.f32 %v555_v25, 0.0  ;;  %vm2788_vm8 = vmand %vm762_vm4, %vm787_vm7 }
 0x22f   : > { %790 = vrot.lane.b32.xlu0 %v760_v30, %s1998_s1  ;;  %925 = vrot.lane.b32.xlu1 %v920_v39, %s1997_s15  ;;  %v1468_v30 = vld [vmem:[%s2472_s5 + $0x20] sm:$0xff]  ;;  %v603_v21 = vadd.f32 %v601_v49, %v580_v36  ;;  %vm2801_vm9 = vmand %vm762_vm4, %vm764_vm6 }
 0x230   : > { %v610_v1 = vsub.f32 %v1468_v30, %v609_v41  ;;  %v581_v7 = vadd.f32 %v579_v48, %v557_v43 }
 0x231   : > { %v1008_v54 = vpop.permute.xlu1 %1007 }
 0x232   : > { %v1010_v0 = vsel %vm749_vm2, %v1008_v54, %v2589_v61  ;;  %v621_v54 = vstv %s2711_s24  ;;  %v612_v18 = vmax.f32 %v610_v1, 0.0 }
 0x233   : > { %923 = vrot.lane.b32.xlu0 %v919_v45, %s1997_s15  ;;  %943 = vrot.lane.b32.xlu1 %v920_v39, %s1998_s1  ;;  %v1469_v39 = vld [vmem:[%s2472_s5 + $0x28] sm:$0xff]  ;;  %s1483_s5 = sshll.u32 %s2204_s17, 5  ;;  %s1220_s17 = scalar_lea.sflag [#allocation4], %s2460_s26 }
 0x234   : > { %v611_v2 = vsub.f32 %v1469_v39, %v609_v41 }
 0x236   : > { %v613_v19 = vmax.f32 %v611_v2, 0.0 }
 0x237   : > { %941 = vrot.lane.b32.xlu0 %v919_v45, %s1998_s1  ;;  %869 = vrot.lane.b32.xlu1 %v860_v53, %s1997_s15  ;;  %v566_v45 = vmax.f32 %v564_v26, 0.0 }
 0x238   : > { %v615_v16 = vadd.f32 %v613_v19, %v592_v28 }
 0x239   : > { %v591_v12 = vadd.f32 %v589_v58, %v566_v45 }
 0x23a   : > { %v638_v35 = vadd.f32 %v636_v29, %v615_v16 }
 0x23b   : > { %867 = vrot.lane.b32.xlu0 %v859_v63, %s1997_s15  ;;  %1015 = vrot.lane.b32.xlu1 %v1010_v0, %s1997_s15  ;;  %v614_v15 = vadd.f32 %v612_v18, %v591_v12 }
 0x23d   : > { %v637_v34 = vadd.f32 %v635_v42, %v614_v15  ;;  %v781_v15 = vsel %vm762_vm4, %v2542_v40, 0.0  ;;  %v935_v42 = vsel %vm762_vm4, %v2556_v50, 0.0  ;;  %v784_v40 = vmul.f32 0.625, %v2562_v52 }
 0x23f   : > { %1013 = vrot.lane.b32.xlu0 %v1009_v33, %s1997_s15  ;;  %893 = vrot.lane.b32.xlu1 %v860_v53, %s1998_s1  ;;  %v1470_v53 = vld [vmem:[%s2464_s3 + $0x30] sm:$0xff]  ;;  %s3038_s15 = sld [smem:[#allocation40_spill]] }
 0x240   : > { %v622_v51 = vsub.f32 %v1470_v53, %v621_v54 }
 0x242   : > { %v624_v22 = vmax.f32 %v622_v51, 0.0 }
 0x243   : > { %891 = vrot.lane.b32.xlu0 %v859_v63, %s1998_s1  ;;  %1037 = vrot.lane.b32.xlu1 %v1010_v0, %s1998_s1  ;;  %v600_v63 = vsub.f32 %v1467_v27, %v598_v32  ;;  %v639_v0 = vld [vmem:[%s2479_s12] sm:$0xff] }
 0x244   : > { %1626 = vrcp.f32 %v639_v0  ;;  %v626_v26 = vadd.f32 %v624_v22, %v603_v21  ;;  %v2760_v22 = vadd.s32 8, %v2514_v46 }
 0x245   : > { %v602_v47 = vmax.f32 %v600_v63, 0.0  ;;  %1628 = vrcp.f32 %v640_v5 }
 0x246   : > { %1630 = vrcp.f32 %v645_v9  ;;  %vm862_vm5 = vcmp.lt.s32.totalorder %v2760_v22, 15 }
 0x247   : > { %1035 = vrot.lane.b32.xlu0 %v1009_v33, %s1998_s1  ;;  %v1471_v33 = vld [vmem:[%s2464_s3 + $0x38] sm:$0xff]  ;;  %1632 = vrcp.f32 %v646_v14  ;;  %v604_v25 = vadd.f32 %v602_v47, %v581_v7  ;;  %v884_v17 = vsel %vm862_vm5, %v2581_v59, 0.0  ;;  %v1030_v16 = vsel %vm862_vm5, %v2589_v61, 0.0  ;;  %vm2840_vm10 = vmand %vm862_vm5, %vm764_vm6  ;;  %s1460_s3 = sshll.u32 %s2460_s26, 1  ;;  %s2897_s1 = scalar_lea.hbm %s3038_s15, %s1483_s5 }
 0x248   : > { %v623_v13 = vsub.f32 %v1471_v33, %v621_v54  ;;  %vm2863_vm11 = vmand %vm862_vm5, %vm787_vm7  ;;  %s546_s12 = scalar_lea.vmem [#allocation17], %s1460_s3 }
 0x249   : > { %s1233_s20 = sshll.u32 %s546_s12, 4  ;;  %s2899_s20 = int_to_ptr.vmem [resolvable:$true] %s1233_s20 }
 0x24a   : > { %v625_v23 = vmax.f32 %v623_v13, 0.0  ;;  %s1866_s0 = scalar_lea.vmem %s2899_s20, 32  ;;  %p1873_p10 = scmp.lt.s32.totalorder %s2899_s20, %s1871_s27 }
 0x24b   : > { %p1867_p8 = scmp.ne.s32.totalorder %s2899_s20, %s1866_s0  ;;  %p1874_p3 = scmp.lt.s32.totalorder %s1872_s16, %s1866_s0 }
 0x24c   : > { %v627_v31 = vadd.f32 %v625_v23, %v604_v25 }
 0x24d   : > { %p1868_p2 = pnand %p1867_p8, %p3039_p9  ;;  %p1875_p0 = por %p1874_p3, %p1873_p10 }
 0x24e   : > { %v1627_v32 = vpop.eup %1626 }
 0x24f   : > { %v642_v37 = vmul.f32 %v1627_v32, %v626_v26  ;;  %v1629_v27 = vpop.eup %1628  ;;  %v783_v26 = vmul.f32 0.625, %v781_v15  ;;  %p1869_p6 = pneg %p1868_p2 }
 0x250   : > { %v1631_v44 = vpop.eup %1630  ;;  %v644_v6 = vmul.f32 %v1629_v27, %v627_v31  ;;  %v938_v31 = vmul.f32 0.625, %v2570_v55  ;;  %v2812_v27 = vmul.f32 -0.625, %v2577_v56 }
 0x251   : > { %v1093_v38 = vmul.f32 2.0, %v642_v37  ;;  %v1633_v30 = vpop.eup %1632  ;;  %v648_v39 = vmul.f32 %v1631_v44, %v637_v34  ;;  %v1099_v41 = vmul.f32 %v642_v37, %v642_v37  ;;  %v2814_v44 = vmul.f32 -0.625, %v1030_v16  ;;  %p1876_p7 = pnand %p1875_p0, %p1869_p6 }
 0x252   : > { %v650_v43 = vmul.f32 %v1633_v30, %v638_v35  ;;  %v1094_v45 = vmul.f32 2.0, %v644_v6  ;;  %v1100_v48 = vmul.f32 %v644_v6, %v644_v6  ;;  %v2805_v35 = vmul.f32 0.625, %v935_v42 }
 0x253   : > { %v1101_v53 = vmul.f32 %v648_v39, %v648_v39  ;;  %v2745_v54 = vmax.f32 %v642_v37, %v648_v39  ;;  %v1095_v57 = vmul.f32 %v1093_v38, %v648_v39  ;;  %v2807_v37 = vmul.f32 -0.625, %v884_v17 }
 0x254   : > { %v1102_v58 = vmul.f32 %v650_v43, %v650_v43  ;;  %v2747_v62 = vmax.f32 %v644_v6, %v650_v43  ;;  %v1096_v63 = vmul.f32 %v1094_v45, %v650_v43  ;;  %v2817_v6 = vmul.f32 -0.625, %v2587_v60 }
 0x255   : > { %v1202_v0 = vsel %vm1189_vm3, %v2745_v54, 0.0  ;;  %v1103_v1 = vadd.f32 %v1101_v53, %v1099_v41  ;;  %v1097_v3 = vadd.f32 0.85, %v1095_v57  ;;  %v1170_v60 = vand.u32 2147483647, %v2741_v11 }
 0x256   : > { %v1104_v2 = vadd.f32 %v1102_v58, %v1100_v48  ;;  %v1203_v33 = vsel %vm1189_vm3, %v2747_v62, 0.0  ;;  %v1098_v4 = vadd.f32 0.85, %v1096_v63 }
 0x257   : > { %v1204_v36 = vadd.f32 %v1203_v33, %v1202_v0  ;;  %v1105_v49 = vadd.f32 0.85, %v1103_v1 }
 0x258   : > { %v1106_v51 = vadd.f32 0.85, %v1104_v2 }
 0x259   : > { %1634 = vrcp.f32 %v1105_v49 }
 0x25a   : > { %1636 = vrcp.f32 %v1106_v51 }
 0x263   : > { %v1635_v5 = vpop.eup %1634 }
 0x264   : > { %v1637_v7 = vpop.eup %1636  ;;  %v2753_v8 = vmul.f32 %v1635_v5, %v1097_v3 }
 0x265   : > { %v2755_v9 = vmul.f32 %v1637_v7, %v1098_v4 }
 0x267   : > { %1205 = vadd.xlane.f32.xlu1 %v1204_v36 }
 0x283   : > { %v823_v12 = vpop.permute.xlu1 %822 }
 0x284   : > { %v827_v61 = vsel %vm764_vm6, %v823_v12, 0.0 }
 0x285   : > { %v829_v43 = vmul.f32 0.625, %v827_v61 }
 0x287   : > { %v821_v28 = vpop.permute.xlu0 %820 }
 0x288   : > { %v826_v52 = vsel %vm764_vm6, %v821_v28, 0.0 }
 0x289   : > { %v828_v45 = vmul.f32 0.625, %v826_v52 }
 0x28c   : > { %v974_v47 = vpop.permute.xlu1 %973 }
 0x28d   : > { %v978_v38 = vsel %vm764_vm6, %v974_v47, 0.0 }
 0x28e   : > { %v980_v1 = vmul.f32 0.625, %v978_v38 }
 0x290   : > { %v835_v13 = vpop.permute.xlu1 %834 }
 0x291   : > { %v972_v14 = vpop.permute.xlu0 %971  ;;  %v839_v30 = vsel %vm787_vm7, %v835_v13, 0.0 }
 0x292   : > { %v977_v57 = vsel %vm764_vm6, %v972_v14, 0.0  ;;  %v841_v2 = vmul.f32 -0.625, %v839_v30 }
 0x293   : > { %v979_v7 = vmul.f32 0.625, %v977_v57 }
 0x294   : > { %v986_v18 = vpop.permute.xlu1 %985 }
 0x295   : > { %v833_v19 = vpop.permute.xlu0 %832  ;;  %v990_v58 = vsel %vm787_vm7, %v986_v18, 0.0 }
 0x296   : > { %v838_v51 = vsel %vm787_vm7, %v833_v19, 0.0  ;;  %v992_v12 = vmul.f32 -0.625, %v990_v58 }
 0x297   : > { %v840_v19 = vmul.f32 -0.625, %v838_v51 }
 0x299   : > { %v2757_v20 = vpop.permute.xlu0 %983  ;;  %v772_v21 = vpop.permute.xlu1 %771 }
 0x29a   : > { %v776_v55 = vsel %vm764_vm6, %v772_v21, 0.0  ;;  %v989_v15 = vsel %vm787_vm7, %v2757_v20, 0.0 }
 0x29b   : > { %v778_v63 = vmul.f32 0.1875, %v776_v55 }
 0x29d   : > { %v770_v25 = vpop.permute.xlu0 %769  ;;  %v793_v23 = vpop.permute.xlu1 %792  ;;  %v786_v42 = vadd.f32 %v784_v40, %v778_v63 }
 0x29e   : > { %v797_v29 = vsel %vm787_vm7, %v793_v23, 0.0  ;;  %v775_v56 = vsel %vm2801_vm9, %v770_v25, 0.0 }
 0x29f   : > { %v799_v39 = vmul.f32 -0.1875, %v797_v29  ;;  %v777_v3 = vmul.f32 0.1875, %v775_v56  ;;  %v803_v28 = vmul.f32 0.1875, %v797_v29 }
 0x2a1   : > { %v791_v59 = vpop.permute.xlu0 %790  ;;  %v926_v32 = vpop.permute.xlu1 %925  ;;  %v801_v4 = vadd.f32 %v799_v39, %v778_v63  ;;  %v785_v16 = vadd.f32 %v783_v26, %v777_v3  ;;  %v805_v61 = vadd.f32 %v803_v28, %v786_v42 }
 0x2a2   : > { %v796_v41 = vsel %vm2788_vm8, %v791_v59, 0.0  ;;  %v930_v36 = vsel %vm764_vm6, %v926_v32, 0.0 }
 0x2a3   : > { %v798_v33 = vmul.f32 -0.1875, %v796_v41  ;;  %v802_v47 = vmul.f32 0.1875, %v796_v41  ;;  %v932_v18 = vmul.f32 0.1875, %v930_v36  ;;  %v831_v29 = vadd.f32 %v829_v43, %v801_v4 }
 0x2a5   : > { %v924_v48 = vpop.permute.xlu0 %923  ;;  %v944_v53 = vpop.permute.xlu1 %943  ;;  %v800_v17 = vadd.f32 %v798_v33, %v777_v3  ;;  %v804_v30 = vadd.f32 %v802_v47, %v785_v16  ;;  %v940_v39 = vadd.f32 %v938_v31, %v932_v18  ;;  %v843_v57 = vadd.f32 %v841_v2, %v831_v29 }
 0x2a6   : > { %v948_v0 = vsel %vm787_vm7, %v944_v53, 0.0  ;;  %v929_v21 = vsel %vm2801_vm9, %v924_v48, 0.0 }
 0x2a7   : > { %v950_v5 = vmul.f32 -0.1875, %v948_v0  ;;  %v931_v52 = vmul.f32 0.1875, %v929_v21  ;;  %v954_v34 = vmul.f32 0.1875, %v948_v0  ;;  %v830_v40 = vadd.f32 %v828_v45, %v800_v17 }
 0x2a9   : > { %v942_v13 = vpop.permute.xlu0 %941  ;;  %v870_v14 = vpop.permute.xlu1 %869  ;;  %v952_v59 = vadd.f32 %v950_v5, %v932_v18  ;;  %v939_v63 = vadd.f32 %v2805_v35, %v931_v52  ;;  %v956_v0 = vadd.f32 %v954_v34, %v940_v39 }
 0x2aa   : > { %v947_v25 = vsel %vm2788_vm8, %v942_v13, 0.0  ;;  %v874_v23 = vsel %vm2840_vm10, %v870_v14, 0.0 }
 0x2ab   : > { %v880_v32 = vmul.f32 -0.1875, %v874_v23  ;;  %v949_v55 = vmul.f32 -0.1875, %v947_v25  ;;  %v876_v56 = vmul.f32 0.1875, %v874_v23  ;;  %v982_v53 = vadd.f32 %v980_v1, %v952_v59 }
 0x2ac   : > { %v953_v31 = vmul.f32 0.1875, %v947_v25  ;;  %v842_v1 = vadd.f32 %v840_v19, %v830_v40 }
 0x2ad   : > { %v868_v50 = vpop.permute.xlu0 %867  ;;  %v1016_v38 = vpop.permute.xlu1 %1015  ;;  %v882_v26 = vadd.f32 %v880_v32, %v805_v61  ;;  %v951_v33 = vadd.f32 %v949_v55, %v931_v52  ;;  %v878_v5 = vadd.f32 %v876_v56, %v843_v57  ;;  %v994_v35 = vadd.f32 %v992_v12, %v982_v53 }
 0x2ae   : > { %v873_v41 = vsel %vm764_vm6, %v868_v50, 0.0  ;;  %v1020_v20 = vsel %vm2840_vm10, %v1016_v38, 0.0  ;;  %v955_v47 = vadd.f32 %v953_v31, %v939_v63  ;;  %v991_v52 = vmul.f32 -0.625, %v989_v15 }
 0x2af   : > { %v879_v43 = vmul.f32 -0.1875, %v873_v41  ;;  %v1026_v58 = vmul.f32 -0.1875, %v1020_v20  ;;  %v875_v45 = vmul.f32 0.1875, %v873_v41  ;;  %v1022_v3 = vmul.f32 0.1875, %v1020_v20 }
 0x2b0   : > { %v888_v2 = vadd.f32 %v2807_v37, %v882_v26  ;;  %v981_v18 = vadd.f32 %v979_v7, %v951_v33  ;;  %v1172_v56 = vadd.f32 1e-12, %v1170_v60  ;;  %v1169_v63 = vand.u32 2147483647, %v2739_v10 }
 0x2b1   : > { %v1014_v36 = vpop.permute.xlu0 %1013  ;;  %v894_v49 = vpop.permute.xlu1 %893  ;;  %v881_v51 = vadd.f32 %v879_v43, %v804_v30  ;;  %v1028_v13 = vadd.f32 %v1026_v58, %v956_v0  ;;  %v877_v21 = vadd.f32 %v875_v45, %v842_v1  ;;  %v1024_v16 = vadd.f32 %v1022_v3, %v994_v35 }
 0x2b2   : > { %v1019_v22 = vsel %vm764_vm6, %v1014_v36, 0.0  ;;  %v898_v4 = vsel %vm2863_vm11, %v894_v49, 0.0  ;;  %v993_v41 = vadd.f32 %v991_v52, %v981_v18  ;;  %v1171_v49 = vadd.f32 1e-12, %v1169_v63 }
 0x2b3   : > { %v900_v28 = vmul.f32 -0.1875, %v898_v4  ;;  %v1025_v14 = vmul.f32 -0.1875, %v1019_v22  ;;  %v887_v29 = vadd.f32 %v2812_v27, %v881_v51  ;;  %v1021_v7 = vmul.f32 0.1875, %v1019_v22 }
 0x2b4   : > { %v1034_v55 = vadd.f32 %v2814_v44, %v1028_v13 }
 0x2b5   : > { %v902_v25 = vadd.f32 %v900_v28, %v878_v5  ;;  %v904_v23 = vadd.f32 %v900_v28, %v888_v2  ;;  %v892_v42 = vpop.permute.xlu0 %891  ;;  %v1038_v17 = vpop.permute.xlu1 %1037  ;;  %v1027_v34 = vadd.f32 %v1025_v14, %v955_v47  ;;  %v1023_v53 = vadd.f32 %v1021_v7, %v993_v41 }
 0x2b6   : > { %v897_v59 = vsel %vm787_vm7, %v892_v42, 0.0  ;;  %v1042_v37 = vsel %vm2863_vm11, %v1038_v17, 0.0 }
 0x2b7   : > { %v1050_v19 = vmul.f32 %v902_v25, %v902_v25  ;;  %v1052_v32 = vmul.f32 %v904_v23, %v904_v23  ;;  %v899_v12 = vmul.f32 -0.1875, %v897_v59  ;;  %v1044_v61 = vmul.f32 -0.1875, %v1042_v37 }
 0x2b8   : > { %v1033_v44 = vadd.f32 %v2817_v6, %v1027_v34 }
 0x2b9   : > { %v1054_v50 = vadd.f32 %v1052_v32, %v1050_v19  ;;  %v901_v38 = vadd.f32 %v899_v12, %v877_v21  ;;  %v903_v30 = vadd.f32 %v899_v12, %v887_v29  ;;  %v1046_v39 = vadd.f32 %v1044_v61, %v1024_v16  ;;  %v1036_v27 = vpop.permute.xlu0 %1035 }
 0x2ba   : > { %v1048_v20 = vadd.f32 %v1044_v61, %v1034_v55  ;;  %v1041_v40 = vsel %vm787_vm7, %v1036_v27, 0.0 }
 0x2bb   : > { %v1056_v26 = vadd.f32 1e-12, %v1054_v50  ;;  %v1049_v43 = vmul.f32 %v901_v38, %v901_v38  ;;  %v1051_v15 = vmul.f32 %v903_v30, %v903_v30  ;;  %v1072_v48 = vmul.f32 %v1046_v39, %v1046_v39 }
 0x2bc   : > { %v1074_v31 = vmul.f32 %v1048_v20, %v1048_v20  ;;  %v1043_v57 = vmul.f32 -0.1875, %v1041_v40 }
 0x2bd   : > { %1638 = vrsqrt.f32 %v1056_v26  ;;  %v1053_v58 = vadd.f32 %v1051_v15, %v1049_v43  ;;  %vm1066_vm12 = vcmp.eq.f32.partialorder %v1056_v26, inf  ;;  %v1069_v28 = vand.u32 2147483648, %v1056_v26 }
 0x2be   : > { %v1076_v0 = vadd.f32 %v1074_v31, %v1072_v48  ;;  %v1045_v33 = vadd.f32 %v1043_v57, %v1023_v53  ;;  %v1047_v24 = vadd.f32 %v1043_v57, %v1033_v44  ;;  %1640 = vlog2.f32 %v1172_v56 }
 0x2bf   : > { %v1055_v45 = vadd.f32 1e-12, %v1053_v58  ;;  %vm1068_vm13 = vcmp.eq.f32.partialorder %v1056_v26, 0.0 }
 0x2c0   : > { %v1078_v36 = vadd.f32 1e-12, %v1076_v0  ;;  %v1071_v11 = vmul.f32 %v1045_v33, %v1045_v33  ;;  %v1073_v60 = vmul.f32 %v1047_v24, %v1047_v24 }
 0x2c1   : > { %1642 = vrsqrt.f32 %v1055_v45  ;;  %vm1059_vm14 = vcmp.eq.f32.partialorder %v1055_v45, inf  ;;  %v1062_v42 = vand.u32 2147483648, %v1055_v45  ;;  %vm1061_vm1 = vcmp.eq.f32.partialorder %v1055_v45, 0.0 }
 0x2c2   : > { %1644 = vrsqrt.f32 %v1078_v36  ;;  %v1075_v51 = vadd.f32 %v1073_v60, %v1071_v11  ;;  %vm1088_vm15 = vcmp.eq.f32.partialorder %v1078_v36, inf  ;;  %v1091_v14 = vand.u32 2147483648, %v1078_v36 }
 0x2c3   : > { %1646 = vlog2.f32 %v1171_v49  ;;  %vm1090_vm0 = vcmp.eq.f32.partialorder %v1078_v36, 0.0 }
 0x2c4   : > { %v1077_v3 = vadd.f32 1e-12, %v1075_v51 }
 0x2c6   : > { %1648 = vrsqrt.f32 %v1077_v3  ;;  %vm1081_vm2 = vcmp.eq.f32.partialorder %v1077_v3, inf  ;;  %v1084_v19 = vand.u32 2147483648, %v1077_v3  ;;  %vm1083_vm4 = vcmp.eq.f32.partialorder %v1077_v3, 0.0 }
 0x2c7   : > { %v1639_v6 = vpop.eup %1638 }
 0x2c8   : > { %v1065_v22 = vmul.f32 %v1639_v6, %v1056_v26  ;;  %v1641_v4 = vpop.eup %1640 }
 0x2c9   : > { %v1176_v35 = vmul.f32 0.6931472, %v1641_v4 }
 0x2ca   : > { %v1067_v5 = vsel %vm1066_vm12, %v1056_v26, %v1065_v22 }
 0x2cb   : > { %v1643_v10 = vpop.eup %1642  ;;  %v1070_v13 = vsel %vm1068_vm13, %v1069_v28, %v1067_v5  ;;  %v1178_v32 = vmul.f32 0.03, %v1176_v35 }
 0x2cc   : > { %v1645_v1 = vpop.eup %1644  ;;  %v1058_v2 = vmul.f32 %v1643_v10, %v1055_v45  ;;  %v1118_v29 = vmul.f32 %v1070_v13, %v1070_v13  ;;  %v1112_v41 = vmul.f32 2.0, %v1070_v13 }
 0x2cd   : > { %v1087_v47 = vmul.f32 %v1645_v1, %v1078_v36  ;;  %v1647_v18 = vpop.eup %1646  ;;  %v1181_v38 = vmul.f32 1.442695, %v1178_v32 }
 0x2ce   : > { %v1060_v21 = vsel %vm1059_vm14, %v1055_v45, %v1058_v2  ;;  %v1174_v52 = vmul.f32 0.6931472, %v1647_v18 }
 0x2cf   : > { %v1089_v25 = vsel %vm1088_vm15, %v1078_v36, %v1087_v47  ;;  %v1063_v37 = vsel %vm1061_vm1, %v1062_v42, %v1060_v21 }
 0x2d0   : > { %v1649_v23 = vpop.eup %1648  ;;  %v1092_v17 = vsel %vm1090_vm0, %v1091_v14, %v1089_v25  ;;  %v1117_v34 = vmul.f32 %v1063_v37, %v1063_v37  ;;  %v1177_v39 = vmul.f32 0.03, %v1174_v52  ;;  %v1111_v56 = vmul.f32 2.0, %v1063_v37 }
 0x2d1   : > { %v1080_v16 = vmul.f32 %v1649_v23, %v1077_v3  ;;  %v1120_v59 = vmul.f32 %v1092_v17, %v1092_v17  ;;  %v1114_v40 = vmul.f32 %v1112_v41, %v1092_v17 }
 0x2d2   : > { %v1179_v20 = vmul.f32 1.442695, %v1177_v39 }
 0x2d3   : > { %v1082_v12 = vsel %vm1081_vm2, %v1077_v3, %v1080_v16  ;;  %v1122_v61 = vadd.f32 %v1120_v59, %v1118_v29  ;;  %v1116_v43 = vadd.f32 160.0, %v1114_v40 }
 0x2d4   : > { %v1085_v7 = vsel %vm1083_vm4, %v1084_v19, %v1082_v12 }
 0x2d5   : > { %v1119_v55 = vmul.f32 %v1085_v7, %v1085_v7  ;;  %v1124_v50 = vadd.f32 160.0, %v1122_v61  ;;  %v1113_v26 = vmul.f32 %v1111_v56, %v1085_v7 }
 0x2d7   : > { %v1121_v30 = vadd.f32 %v1119_v55, %v1117_v34  ;;  %1650 = vrcp.f32 %v1124_v50  ;;  %v1115_v31 = vadd.f32 160.0, %v1113_v26 }
 0x2d8   : > { %1652 = vpow2.f32 %v1181_v38 }
 0x2d9   : > { %v1123_v27 = vadd.f32 160.0, %v1121_v30 }
 0x2db   : > { %1654 = vrcp.f32 %v1123_v27 }
 0x2dc   : > { %1656 = vpow2.f32 %v1179_v20 }
 0x2e1   : > { %v1651_v15 = vpop.eup %1650 }
 0x2e2   : > { %v1128_v48 = vmul.f32 %v1651_v15, %v1116_v43  ;;  %v1653_v53 = vpop.eup %1652 }
 0x2e4   : > { %v1184_v44 = vmul.f32 %v1128_v48, %v2755_v9 }
 0x2e5   : > { %v1655_v57 = vpop.eup %1654 }
 0x2e6   : > { %v1126_v58 = vmul.f32 %v1655_v57, %v1115_v31  ;;  %v1186_v63 = vmul.f32 %v1184_v44, %v2747_v62  ;;  %v1657_v24 = vpop.eup %1656 }
 0x2e8   : > { %v1183_v0 = vmul.f32 %v1126_v58, %v2753_v8  ;;  %v1188_v33 = vmul.f32 %v1653_v53, %v1186_v63 }
 0x2ea   : > { %v1185_v45 = vmul.f32 %v1183_v0, %v2745_v54  ;;  %v1191_v11 = vsel %vm1189_vm3, %v1188_v33, 0.0 }
 0x2ec   : > { %v1187_v36 = vmul.f32 %v1657_v24, %v1185_v45 }
 0x2ee   : > { %v1190_v60 = vsel %vm1189_vm3, %v1187_v36, 0.0  ;;  %vm1214_vm3 = vcmp.eq.s32.totalorder %v2514_v46, 0 }
 0x2ef   : > { %v1192_v49 = vadd.f32 %v1191_v11, %v1190_v60 }
 0x2f1   : > { %1193 = vadd.xlane.f32.xlu0 %v1192_v49 }
 0x2f4   : > { %v1206_v51 = vpop.xlane.xlu1 %1205 }
 0x2f5   : > { %v1207_v9 = vrot.slane %v1206_v51, 4 }
 0x2f7   : > { %v1208_v3 = vadd.f32 %v1207_v9, %v1206_v51 }
 0x2f9   : > { %v1209_v6 = vrot.slane %v1208_v3, 2 }
 0x2fb   : > { %v1210_v4 = vadd.f32 %v1209_v6, %v1208_v3 }
 0x2fd   : > { %v1211_v54 = vrot.slane %v1210_v4, 1 }
 0x2ff   : > { %v1212_v28 = vadd.f32 %v1211_v54, %v1210_v4 }
 0x37e   : > { %v1194_v62 = vpop.xlane.xlu0 %1193 }
 0x37f   : > { %v1195_v22 = vrot.slane %v1194_v62, 4 }
 0x381   : > { %v1196_v8 = vadd.f32 %v1195_v22, %v1194_v62 }
 0x383   : > { %v1197_v10 = vrot.slane %v1196_v8, 2 }
 0x385   : > { %v1198_v5 = vadd.f32 %v1197_v10, %v1196_v8 }
 0x387   : > { %v1199_v1 = vrot.slane %v1198_v5, 1 }
 0x389   : > { %v1200_v2 = vadd.f32 %v1199_v1, %v1198_v5 }
 0x38b   : > { %1493 = vpush %v1200_v2 }
 0x38c   : > { %1495 = vpush %v1212_v28 }
 0x3bc   : > { %s1494_s13 = spop %1493 }
 0x3bd   : > { %v1215_v47 = vstv %s1494_s13  ;;  %s1496_s23 = spop %1495 }
 0x3be   : > { %v1216_v35 = vstv %s1496_s23 }
 0x3bf   : > { %v1217_v13 = vsel %vm1214_vm3, %v1215_v47, %v1216_v35 }
 0x3c0   : > { %1218 = vst [vmem:[%s546_s12] sm:$0x3] %v1217_v13 }
 0x3c1   : > { %1879 = shalt.err (!%p1876_p7)
}
 0x3c2   : > { %s1880_s26 = scalar_lea.hbm %s2897_s1, 32  ;;  %s1884_s30 = scalar_lea.hbm %s3038_s15, 64 }
 0x3c3   : > { %p1881_p13 = scmp.ne.s32.totalorder %s2897_s1, %s1880_s26  ;;  %p1885_p5 = scmp.lt.u32.totalorder %s2897_s1, %s3038_s15 }
 0x3c4   : > { %p1886_p12 = scmp.lt.u32.totalorder %s1884_s30, %s1880_s26  ;;  %p1888_p8 = scmp.lt.u32.totalorder %s1880_s26, %s2897_s1 }
 0x3c5   : > { %p1882_p1 = pnand %p1881_p13, %p3039_p9 }
 0x3c6   : > { %p1887_p4 = por %p1886_p12, %p1885_p5 }
 0x3c7   : > { %p1883_p11 = pneg %p1882_p1 }
 0x3c8   : > { %p1889_p2 = por %p1888_p8, %p1887_p4 }
 0x3ca   : > { %p1890_p6 = pnand %p1889_p2, %p1883_p11 }
 0x3cc   : > { %1893 = shalt.err (!%p1890_p6)
}
 0x3cd   : > { %1517 = dma.vmem_to_hbm [thread:$0]  (%p3039_p9), %s2899_s20, 32, %s2897_s1, %s1220_s17  }
 0x3ce PF: > { %s3040_s4 = sld [smem:[#allocation28_spill]]  ;;  %s3041_s24 = sld [smem:[#allocation33_spill]] }
 0x3cf   : > { %p3043_p3 = scmp.ge.s32.totalorder %s1984_s11, 2 }
 0x3d4   : > { %s1245_s7 = sand.u32 1, %s3040_s4   ;;  %p3042_p10 = scmp.ne.s32.totalorder %s3041_s24, 0 }
 0x3d5   : > { %s1246_s3 = scalar_lea.sflag [#allocation4], %s1245_s7 }
 0x3d6   : > { %p1546_p0 = pnand %p3043_p3, %p3042_p10 }
 0x3d8   : > { %1955 = dma.done.wait (!%p1546_p0), %s1246_s3, 32  }
 0x3d9   : > { %1957 = vsyncadd (!%p1546_p0), %s1246_s3, 4294967264  ;;  %s3044_s11 = sld [smem:[#allocation30_spill]]  ;;  %s3045_s5 = sld [smem:[#allocation27_spill]] }
 0x3da   : > { %s3046_s29 = sld [smem:[#allocation31_spill]]  ;;  %s3047_s22 = sld [smem:[#allocation29_spill]] }
 0x3db   : > { %s3048_s10 = sld [smem:[#allocation32_spill]]  ;;  %s3049_s27 = smov %s1964_s28 }
 0x3dc   : > { %s3051_s30 = smov %s1976_s9 }
 0x3df   : > { %p32_p9 = scmp.ge.s32.totalorder %s3044_s11, 4   ;;  %s3050_s28 = smov %s3045_s5 }
 0x3e0   : > { %s3052_s9 = smov %s3047_s22 }
 0x3e1   :  { %34 = sbr.rel (!%p32_p9) target bundleno = 23 (0x17), region = 177 }
 0x3e8   :  { %1251 = vsyncpa [#allocation3], 1 }
 0x3e9   :  { %1253 = vsyncpa [#allocation3 + $0x1], 1 }
 0x3ea   :  { %1254 = vsyncpa [#allocation10], 1 }
 0x3eb   :  { %1256 = vsyncpa [#allocation10 + $0x1], 1 }
 0x3ec   :  { %1257 = vsyncpa [#allocation13], 1 }
 0x3ed   :  { %1259 = vsyncpa [#allocation13 + $0x1], 1 }
 0x3ee   :  { %1260 = vsyncpa [#allocation16], 1 }
 0x3ef   :  { %1262 = vsyncpa [#allocation16 + $0x1], 1 }
 0x3f0   :  { %1263 = vsyncpa [#allocation4], 1 }
 0x3f1   :  { %1265 = vsyncpa [#allocation4 + $0x1], 1 }
 0x3f2   :  { %1266 = vsyncpa [#allocation5], 1 }
 0x3f3   :  { %1268 = vsyncpa [#allocation5 + $0x1], 1 }
 0x3f4   :  { %1269 = vsyncpa [#allocation7], 1 }

</bundles_post_ra>
